<compile_context>
chip_gen: v7x
topology: tpu7x:2x2x1
jax: 0.10.0
libtpu: 0.0.40
codegen_flags: <defaults>
</compile_context>

<pallas_src>
import jax
import jax.numpy as jnp
from jax.experimental import pallas as pl
from jax.experimental.pallas import tpu as pltpu

HIDDEN_SIZES = [1280, 896, 512, 384, 256, 128, 64, 32]
N_LAYERS = len(HIDDEN_SIZES) + 1   # 8 hidden Linear+PReLU + 1 output Linear
LANE = 128
K0_ALIGN = 32                      # int8 sublane tile
TAIL_START = 5                     # layers [TAIL_START:] packed into one HBM slab


def _round_up(n, m):
    return ((n + m - 1) // m) * m


def _layer_dims(input_size, output_size):
    """Real and (lane/sublane)-padded (in, out) dims per layer."""
    real, prev = [], input_size
    for h in HIDDEN_SIZES:
        real.append((prev, h))
        prev = h
    real.append((prev, output_size))

    padded = []
    prev_pad = _round_up(input_size, K0_ALIGN)    # layer-0 K: no 128-row padding
    for (_i, o) in real:
        o_pad = _round_up(o, LANE)
        padded.append((prev_pad, o_pad))
        prev_pad = o_pad
    return real, padded


# --------------------------------------------------------------------------- #
# Parameter init / quantization / packing
# --------------------------------------------------------------------------- #
def init_params(key, input_size, output_size):
    """Deterministic init mimicking nn.Linear (uniform +-1/sqrt(fan_in)) and
    nn.PReLU (slope = 0.25). Weights stored (in, out), f32."""
    sizes = [input_size] + HIDDEN_SIZES + [output_size]
    params = []
    for i in range(len(sizes) - 1):
        key, wk, bk = jax.random.split(key, 3)
        bound = 1.0 / (sizes[i] ** 0.5)
        w = jax.random.uniform(wk, (sizes[i], sizes[i + 1]), jnp.float32, -bound, bound)
        b = jax.random.uniform(bk, (1, sizes[i + 1]), jnp.float32, -bound, bound)
        params.append((w, b))
    alphas = jnp.full((len(HIDDEN_SIZES),), 0.25, jnp.float32)
    return params, alphas


def quantize_per_channel(w):
    """Symmetric per-output-channel int8 quantization of an (in, out) weight."""
    amax = jnp.max(jnp.abs(w), axis=0, keepdims=True)              # (1, out)
    scale = jnp.where(amax > 0, amax / 127.0, jnp.ones_like(amax))
    wq = jnp.clip(jnp.round(w / scale), -127, 127).astype(jnp.int8)
    return wq, scale.astype(jnp.float32)


def prepare_packed_params(params, input_size, output_size):
    """Quantize to int8 (per-out-channel scales), zero-pad feature dims to 128
    lanes, pack the trailing small weights into one slab, and concatenate all
    scales+biases into a single lane-dense row.

    Zero padding is exact: padded activation columns stay 0 through the bias
    add (bias pad = 0), the scale multiply, PReLU (a*0 == 0), and the zeroed
    padded weight rows contribute nothing to the next layer."""
    _, padded = _layer_dims(input_size, output_size)
    wqs_pad, scales_pad, biases_pad, qparams_real = [], [], [], []
    for (w, b), (ip, op) in zip(params, padded):
        wq, s = quantize_per_channel(w)
        qparams_real.append((wq, s, b))
        wq_p = jnp.zeros((ip, op), jnp.int8).at[: w.shape[0], : w.shape[1]].set(wq)
        s_p = jnp.ones((1, op), jnp.float32).at[:, : w.shape[1]].set(s)
        b_p = jnp.zeros((1, op), jnp.float32).at[:, : b.shape[1]].set(b)
        wqs_pad.append(wq_p)
        scales_pad.append(s_p)
        biases_pad.append(b_p)

    # Per-layer HBM slabs for the big early weights; one packed slab for the tail.
    w_slabs = list(wqs_pad[:TAIL_START]) + [jnp.concatenate(wqs_pad[TAIL_START:], axis=0)]
    # One (1, 2*total_out) row: [ all scales | all biases ].
    scale_bias = jnp.concatenate(scales_pad + biases_pad, axis=1)
    return w_slabs, scale_bias, qparams_real


# --------------------------------------------------------------------------- #
# Kernel
# --------------------------------------------------------------------------- #
def _build_kernel(padded_dims):
    n_layers = len(padded_dims)
    n_hidden = n_layers - 1
    n_dma = TAIL_START + 1
    out_pads = [op for (_ip, op) in padded_dims]
    total_out = sum(out_pads)

    col_offs, c = [], 0
    for op in out_pads:
        col_offs.append(c)
        c += op
    tail_rows = [padded_dims[i][0] for i in range(TAIL_START, n_layers)]
    tail_offs, r = [], 0
    for tr in tail_rows:
        tail_offs.append(r)
        r += tr

    def kernel(x_ref, *refs):
        # refs: [w_hbm x n_dma] [scale_bias] [alphas] [out] [w_bufs x n_dma] [sem]
        w_hbm = refs[:n_dma]
        sb_ref = refs[n_dma]            # (1, 2*total_out) f32 VMEM: [scales|biases]
        al_ref = refs[n_dma + 1]        # (n_hidden,) f32 SMEM: PReLU slopes
        out_ref = refs[n_dma + 2]
        w_bufs = refs[n_dma + 3: 2 * n_dma + 3]
        sem = refs[2 * n_dma + 3]

        # Hoist all SMEM scalar reads before any DMA wait.
        alphas = [al_ref[i] for i in range(n_hidden)]

        # Issue every weight DMA up front; each layer waits only on its own sem,
        # so layer-i compute overlaps the DMAs of later layers.
        copies = [pltpu.make_async_copy(w_hbm[i], w_bufs[i], sem.at[i])
                  for i in range(n_dma)]
        for cp in copies:
            cp.start()

        h = x_ref[...]                  # (batch, k0) bf16
        for layer in range(n_layers):
            op = out_pads[layer]
            col = col_offs[layer]
            if layer < TAIL_START:
                copies[layer].wait()
                wq = w_bufs[layer][...]
            else:
                if layer == TAIL_START:
                    copies[TAIL_START].wait()
                r0 = tail_offs[layer - TAIL_START]
                rows = tail_rows[layer - TAIL_START]
                wq = w_bufs[TAIL_START][r0:r0 + rows, :]

            # Dequant folded into the accumulator: (h @ q) * scale == h @ (q*scale).
            z = jnp.dot(h, wq.astype(jnp.bfloat16),
                        preferred_element_type=jnp.float32)
            z = (z * sb_ref[:, col:col + op]
                 + sb_ref[:, total_out + col: total_out + col + op])

            if layer < n_layers - 1:
                a = alphas[layer]                                   # PReLU slope
                h = jnp.where(z > 0, z, a * z).astype(jnp.bfloat16)  # PReLU
                # Dropout(0.1): identity in eval/inference mode.
            else:
                out_ref[...] = z.astype(out_ref.dtype)

    return kernel


# --------------------------------------------------------------------------- #
# Wrapper
# --------------------------------------------------------------------------- #
def mlp_path_generator(x, w_slabs, scale_bias, alphas, input_size, output_size):
    batch = x.shape[0]
    _, padded = _layer_dims(input_size, output_size)
    k0 = padded[0][0]
    out_pad_last = padded[-1][1]
    n_dma = TAIL_START + 1

    xp = jnp.zeros((batch, k0), jnp.bfloat16)
    xp = xp.at[:, :input_size].set(x.astype(jnp.bfloat16))

    kernel = _build_kernel(padded)

    weight_elems = sum(int(w.size) for w in w_slabs)        # int8 -> bytes == elems
    flops = 2 * batch * weight_elems
    bytes_accessed = (weight_elems + int(scale_bias.size) * 4 + int(xp.size) * 2
                      + batch * out_pad_last * 4 + int(alphas.size) * 4)

    in_specs = (
        [pl.BlockSpec(memory_space=pltpu.MemorySpace.VMEM)]          # x
        + [pl.BlockSpec(memory_space=pl.ANY)] * n_dma                # int8 weights (HBM)
        + [pl.BlockSpec(memory_space=pltpu.MemorySpace.VMEM)]        # [scales | biases]
        + [pl.BlockSpec(memory_space=pltpu.MemorySpace.SMEM)]        # PReLU alphas
    )
    scratch_shapes = (
        [pltpu.VMEM(w.shape, jnp.int8) for w in w_slabs]             # weight buffers
        + [pltpu.SemaphoreType.DMA((n_dma,))]                        # per-slab DMA sems
    )

    out_padded = pl.pallas_call(
        kernel,
        out_shape=jax.ShapeDtypeStruct((batch, out_pad_last), jnp.float32),
        in_specs=in_specs,
        out_specs=pl.BlockSpec(memory_space=pltpu.MemorySpace.VMEM),
        scratch_shapes=scratch_shapes,
        compiler_params=pltpu.CompilerParams(vmem_limit_bytes=24 << 20),
        cost_estimate=pl.CostEstimate(flops=flops, transcendentals=0,
                                      bytes_accessed=bytes_accessed),
    )(xp, *w_slabs, scale_bias, alphas)
    return out_padded[:, :output_size]


# --------------------------------------------------------------------------- #
# Plain-JAX reference (same numerics recipe as the kernel)
# --------------------------------------------------------------------------- #
def reference_forward(x, qparams_real, alphas):
    """int8 weights cast to bf16, f32 MXU accumulation, scale folded into the
    accumulator, bf16 activations — matches the kernel; approximates the f32
    PyTorch module (eval mode) up to bf16 + int8 per-channel quant rounding."""
    h = x.astype(jnp.bfloat16)
    n = len(qparams_real)
    out = None
    for i, (wq, s, b) in enumerate(qparams_real):
        z = jnp.dot(h, wq.astype(jnp.bfloat16),
                    preferred_element_type=jnp.float32) * s + b
        if i < n - 1:
            h = jnp.where(z > 0, z, alphas[i] * z).astype(jnp.bfloat16)
        else:
            out = z
    return out


if __name__ == "__main__":
    key = jax.random.PRNGKey(0)
    batch = 8
    input_size = 64
    output_size = 48

    key, pk, xk = jax.random.split(key, 3)
    params, alphas = init_params(pk, input_size, output_size)
    x = jax.random.normal(xk, (batch, input_size), jnp.float32)

    w_slabs, scale_bias, qparams_real = prepare_packed_params(
        params, input_size, output_size)

    out = mlp_path_generator(x, w_slabs, scale_bias, alphas, input_size, output_size)
    out = jax.block_until_ready(out)

    ref = jax.block_until_ready(reference_forward(x, qparams_real, alphas))
    assert out.shape == (batch, output_size), out.shape
    assert jnp.allclose(out, ref, rtol=1e-2, atol=1e-2), (
        float(jnp.max(jnp.abs(out - ref)))
    )

    print("KERNEL_OK")
</pallas_src>

<mosaic_0001>
module attributes {stable_mosaic.version = 11 : i64} {
  func.func @kernel(%arg0: memref<8x64xbf16, #tpu.memory_space<vmem>>, %arg1: memref<64x1280xi8, #tpu.memory_space<any>>, %arg2: memref<1280x896xi8, #tpu.memory_space<any>>, %arg3: memref<896x512xi8, #tpu.memory_space<any>>, %arg4: memref<512x384xi8, #tpu.memory_space<any>>, %arg5: memref<384x256xi8, #tpu.memory_space<any>>, %arg6: memref<640x128xi8, #tpu.memory_space<any>>, %arg7: memref<1x7680xf32, #tpu.memory_space<vmem>>, %arg8: memref<8xf32, #tpu.memory_space<smem>>, %arg9: memref<8x128xf32, #tpu.memory_space<vmem>>, %arg10: memref<64x1280xi8, #tpu.memory_space<vmem>>, %arg11: memref<1280x896xi8, #tpu.memory_space<vmem>>, %arg12: memref<896x512xi8, #tpu.memory_space<vmem>>, %arg13: memref<512x384xi8, #tpu.memory_space<vmem>>, %arg14: memref<384x256xi8, #tpu.memory_space<vmem>>, %arg15: memref<640x128xi8, #tpu.memory_space<vmem>>, %arg16: memref<6x!tpu.dma_semaphore, #tpu.memory_space<semaphore_mem>>) attributes {dimension_semantics = [], scalar_prefetch = 0 : i64, scratch_operands = 7 : i64, tpu.core_type = #tpu.core_type<tc>} {
    %c0 = arith.constant 0 : index
    %0 = memref.load %arg8[%c0] : memref<8xf32, #tpu.memory_space<smem>>
    %c1 = arith.constant 1 : index
    %1 = memref.load %arg8[%c1] : memref<8xf32, #tpu.memory_space<smem>>
    %c2 = arith.constant 2 : index
    %2 = memref.load %arg8[%c2] : memref<8xf32, #tpu.memory_space<smem>>
    %c3 = arith.constant 3 : index
    %3 = memref.load %arg8[%c3] : memref<8xf32, #tpu.memory_space<smem>>
    %c4 = arith.constant 4 : index
    %4 = memref.load %arg8[%c4] : memref<8xf32, #tpu.memory_space<smem>>
    %c5 = arith.constant 5 : index
    %5 = memref.load %arg8[%c5] : memref<8xf32, #tpu.memory_space<smem>>
    %c6 = arith.constant 6 : index
    %6 = memref.load %arg8[%c6] : memref<8xf32, #tpu.memory_space<smem>>
    %c7 = arith.constant 7 : index
    %7 = memref.load %arg8[%c7] : memref<8xf32, #tpu.memory_space<smem>>
    %c0_i32 = arith.constant 0 : i32
    %8 = tpu.memref_slice %arg16[%c0_i32] : memref<6x!tpu.dma_semaphore, #tpu.memory_space<semaphore_mem>> -> memref<1x!tpu.dma_semaphore, #tpu.memory_space<semaphore_mem>>
    %9 = tpu.memref_squeeze %8 : memref<1x!tpu.dma_semaphore, #tpu.memory_space<semaphore_mem>> -> memref<!tpu.dma_semaphore, #tpu.memory_space<semaphore_mem>>
    tpu.enqueue_dma source(%arg1 : memref<64x1280xi8, #tpu.memory_space<any>>) target(%arg10 : memref<64x1280xi8, #tpu.memory_space<vmem>>) target_semaphore(%9 : memref<!tpu.dma_semaphore, #tpu.memory_space<semaphore_mem>>)
    %c1_i32 = arith.constant 1 : i32
    %10 = tpu.memref_slice %arg16[%c1_i32] : memref<6x!tpu.dma_semaphore, #tpu.memory_space<semaphore_mem>> -> memref<1x!tpu.dma_semaphore, #tpu.memory_space<semaphore_mem>>
    %11 = tpu.memref_squeeze %10 : memref<1x!tpu.dma_semaphore, #tpu.memory_space<semaphore_mem>> -> memref<!tpu.dma_semaphore, #tpu.memory_space<semaphore_mem>>
    tpu.enqueue_dma source(%arg2 : memref<1280x896xi8, #tpu.memory_space<any>>) target(%arg11 : memref<1280x896xi8, #tpu.memory_space<vmem>>) target_semaphore(%11 : memref<!tpu.dma_semaphore, #tpu.memory_space<semaphore_mem>>)
    %c2_i32 = arith.constant 2 : i32
    %12 = tpu.memref_slice %arg16[%c2_i32] : memref<6x!tpu.dma_semaphore, #tpu.memory_space<semaphore_mem>> -> memref<1x!tpu.dma_semaphore, #tpu.memory_space<semaphore_mem>>
    %13 = tpu.memref_squeeze %12 : memref<1x!tpu.dma_semaphore, #tpu.memory_space<semaphore_mem>> -> memref<!tpu.dma_semaphore, #tpu.memory_space<semaphore_mem>>
    tpu.enqueue_dma source(%arg3 : memref<896x512xi8, #tpu.memory_space<any>>) target(%arg12 : memref<896x512xi8, #tpu.memory_space<vmem>>) target_semaphore(%13 : memref<!tpu.dma_semaphore, #tpu.memory_space<semaphore_mem>>)
    %c3_i32 = arith.constant 3 : i32
    %14 = tpu.memref_slice %arg16[%c3_i32] : memref<6x!tpu.dma_semaphore, #tpu.memory_space<semaphore_mem>> -> memref<1x!tpu.dma_semaphore, #tpu.memory_space<semaphore_mem>>
    %15 = tpu.memref_squeeze %14 : memref<1x!tpu.dma_semaphore, #tpu.memory_space<semaphore_mem>> -> memref<!tpu.dma_semaphore, #tpu.memory_space<semaphore_mem>>
    tpu.enqueue_dma source(%arg4 : memref<512x384xi8, #tpu.memory_space<any>>) target(%arg13 : memref<512x384xi8, #tpu.memory_space<vmem>>) target_semaphore(%15 : memref<!tpu.dma_semaphore, #tpu.memory_space<semaphore_mem>>)
    %c4_i32 = arith.constant 4 : i32
    %16 = tpu.memref_slice %arg16[%c4_i32] : memref<6x!tpu.dma_semaphore, #tpu.memory_space<semaphore_mem>> -> memref<1x!tpu.dma_semaphore, #tpu.memory_space<semaphore_mem>>
    %17 = tpu.memref_squeeze %16 : memref<1x!tpu.dma_semaphore, #tpu.memory_space<semaphore_mem>> -> memref<!tpu.dma_semaphore, #tpu.memory_space<semaphore_mem>>
    tpu.enqueue_dma source(%arg5 : memref<384x256xi8, #tpu.memory_space<any>>) target(%arg14 : memref<384x256xi8, #tpu.memory_space<vmem>>) target_semaphore(%17 : memref<!tpu.dma_semaphore, #tpu.memory_space<semaphore_mem>>)
    %c5_i32 = arith.constant 5 : i32
    %18 = tpu.memref_slice %arg16[%c5_i32] : memref<6x!tpu.dma_semaphore, #tpu.memory_space<semaphore_mem>> -> memref<1x!tpu.dma_semaphore, #tpu.memory_space<semaphore_mem>>
    %19 = tpu.memref_squeeze %18 : memref<1x!tpu.dma_semaphore, #tpu.memory_space<semaphore_mem>> -> memref<!tpu.dma_semaphore, #tpu.memory_space<semaphore_mem>>
    tpu.enqueue_dma source(%arg6 : memref<640x128xi8, #tpu.memory_space<any>>) target(%arg15 : memref<640x128xi8, #tpu.memory_space<vmem>>) target_semaphore(%19 : memref<!tpu.dma_semaphore, #tpu.memory_space<semaphore_mem>>)
    %c0_0 = arith.constant 0 : index
    %c0_1 = arith.constant 0 : index
    %20 = vector.load %arg0[%c0_0, %c0_1] : memref<8x64xbf16, #tpu.memory_space<vmem>>, vector<8x64xbf16>
    %c0_i32_2 = arith.constant 0 : i32
    %21 = tpu.memref_slice %arg16[%c0_i32_2] : memref<6x!tpu.dma_semaphore, #tpu.memory_space<semaphore_mem>> -> memref<1x!tpu.dma_semaphore, #tpu.memory_space<semaphore_mem>>
    %22 = tpu.memref_squeeze %21 : memref<1x!tpu.dma_semaphore, #tpu.memory_space<semaphore_mem>> -> memref<!tpu.dma_semaphore, #tpu.memory_space<semaphore_mem>>
    tpu.wait_dma2 semaphore(%22 : memref<!tpu.dma_semaphore, #tpu.memory_space<semaphore_mem>>) src(%arg1 : memref<64x1280xi8, #tpu.memory_space<any>>) dst(%arg10 : memref<64x1280xi8, #tpu.memory_space<vmem>>)
    %c0_3 = arith.constant 0 : index
    %c0_4 = arith.constant 0 : index
    %23 = vector.load %arg10[%c0_3, %c0_4] : memref<64x1280xi8, #tpu.memory_space<vmem>>, vector<64x1280xi8>
    %24 = arith.sitofp %23 : vector<64x1280xi8> to vector<64x1280xbf16>
    %cst = arith.constant dense<0.000000e+00> : vector<8x1280xf32>
    %25 = tpu.matmul %20, %24, %cst {dimension_numbers = #tpu.dot_dimension_numbers<[1], [0], [0], [1], [0, 0, 1, 1], [], []>} : vector<8x64xbf16>, vector<64x1280xbf16>, vector<8x1280xf32> -> vector<8x1280xf32>
    %c0_5 = arith.constant 0 : index
    %c0_6 = arith.constant 0 : index
    %26 = vector.load %arg7[%c0_5, %c0_6] : memref<1x7680xf32, #tpu.memory_space<vmem>>, vector<1x1280xf32>
    %27 = vector.broadcast %26 : vector<1x1280xf32> to vector<8x1280xf32>
    %28 = arith.mulf %25, %27 : vector<8x1280xf32>
    %c0_7 = arith.constant 0 : index
    %c3840 = arith.constant 3840 : index
    %29 = vector.load %arg7[%c0_7, %c3840] : memref<1x7680xf32, #tpu.memory_space<vmem>>, vector<1x1280xf32>
    %30 = vector.broadcast %29 : vector<1x1280xf32> to vector<8x1280xf32>
    %31 = arith.addf %28, %30 : vector<8x1280xf32>
    %cst_8 = arith.constant 0.000000e+00 : f32
    %32 = vector.broadcast %cst_8 : f32 to vector<8x1280xf32>
    %33 = arith.cmpf ogt, %31, %32 : vector<8x1280xf32>
    %34 = vector.broadcast %0 : f32 to vector<8x1280xf32>
    %35 = arith.mulf %34, %31 : vector<8x1280xf32>
    %36 = arith.select %33, %31, %35 : vector<8x1280xi1>, vector<8x1280xf32>
    %37 = arith.truncf %36 : vector<8x1280xf32> to vector<8x1280xbf16>
    %c1_i32_9 = arith.constant 1 : i32
    %38 = tpu.memref_slice %arg16[%c1_i32_9] : memref<6x!tpu.dma_semaphore, #tpu.memory_space<semaphore_mem>> -> memref<1x!tpu.dma_semaphore, #tpu.memory_space<semaphore_mem>>
    %39 = tpu.memref_squeeze %38 : memref<1x!tpu.dma_semaphore, #tpu.memory_space<semaphore_mem>> -> memref<!tpu.dma_semaphore, #tpu.memory_space<semaphore_mem>>
    tpu.wait_dma2 semaphore(%39 : memref<!tpu.dma_semaphore, #tpu.memory_space<semaphore_mem>>) src(%arg2 : memref<1280x896xi8, #tpu.memory_space<any>>) dst(%arg11 : memref<1280x896xi8, #tpu.memory_space<vmem>>)
    %c0_10 = arith.constant 0 : index
    %c0_11 = arith.constant 0 : index
    %40 = vector.load %arg11[%c0_10, %c0_11] : memref<1280x896xi8, #tpu.memory_space<vmem>>, vector<1280x896xi8>
    %41 = arith.sitofp %40 : vector<1280x896xi8> to vector<1280x896xbf16>
    %cst_12 = arith.constant dense<0.000000e+00> : vector<8x896xf32>
    %42 = tpu.matmul %37, %41, %cst_12 {dimension_numbers = #tpu.dot_dimension_numbers<[1], [0], [0], [1], [0, 0, 1, 1], [], []>} : vector<8x1280xbf16>, vector<1280x896xbf16>, vector<8x896xf32> -> vector<8x896xf32>
    %c0_13 = arith.constant 0 : index
    %c1280 = arith.constant 1280 : index
    %43 = vector.load %arg7[%c0_13, %c1280] : memref<1x7680xf32, #tpu.memory_space<vmem>>, vector<1x896xf32>
    %44 = vector.broadcast %43 : vector<1x896xf32> to vector<8x896xf32>
    %45 = arith.mulf %42, %44 : vector<8x896xf32>
    %c0_14 = arith.constant 0 : index
    %c5120 = arith.constant 5120 : index
    %46 = vector.load %arg7[%c0_14, %c5120] : memref<1x7680xf32, #tpu.memory_space<vmem>>, vector<1x896xf32>
    %47 = vector.broadcast %46 : vector<1x896xf32> to vector<8x896xf32>
    %48 = arith.addf %45, %47 : vector<8x896xf32>
    %cst_15 = arith.constant 0.000000e+00 : f32
    %49 = vector.broadcast %cst_15 : f32 to vector<8x896xf32>
    %50 = arith.cmpf ogt, %48, %49 : vector<8x896xf32>
    %51 = vector.broadcast %1 : f32 to vector<8x896xf32>
    %52 = arith.mulf %51, %48 : vector<8x896xf32>
    %53 = arith.select %50, %48, %52 : vector<8x896xi1>, vector<8x896xf32>
    %54 = arith.truncf %53 : vector<8x896xf32> to vector<8x896xbf16>
    %c2_i32_16 = arith.constant 2 : i32
    %55 = tpu.memref_slice %arg16[%c2_i32_16] : memref<6x!tpu.dma_semaphore, #tpu.memory_space<semaphore_mem>> -> memref<1x!tpu.dma_semaphore, #tpu.memory_space<semaphore_mem>>
    %56 = tpu.memref_squeeze %55 : memref<1x!tpu.dma_semaphore, #tpu.memory_space<semaphore_mem>> -> memref<!tpu.dma_semaphore, #tpu.memory_space<semaphore_mem>>
    tpu.wait_dma2 semaphore(%56 : memref<!tpu.dma_semaphore, #tpu.memory_space<semaphore_mem>>) src(%arg3 : memref<896x512xi8, #tpu.memory_space<any>>) dst(%arg12 : memref<896x512xi8, #tpu.memory_space<vmem>>)
    %c0_17 = arith.constant 0 : index
    %c0_18 = arith.constant 0 : index
    %57 = vector.load %arg12[%c0_17, %c0_18] : memref<896x512xi8, #tpu.memory_space<vmem>>, vector<896x512xi8>
    %58 = arith.sitofp %57 : vector<896x512xi8> to vector<896x512xbf16>
    %cst_19 = arith.constant dense<0.000000e+00> : vector<8x512xf32>
    %59 = tpu.matmul %54, %58, %cst_19 {dimension_numbers = #tpu.dot_dimension_numbers<[1], [0], [0], [1], [0, 0, 1, 1], [], []>} : vector<8x896xbf16>, vector<896x512xbf16>, vector<8x512xf32> -> vector<8x512xf32>
    %c0_20 = arith.constant 0 : index
    %c2176 = arith.constant 2176 : index
    %60 = vector.load %arg7[%c0_20, %c2176] : memref<1x7680xf32, #tpu.memory_space<vmem>>, vector<1x512xf32>
    %61 = vector.broadcast %60 : vector<1x512xf32> to vector<8x512xf32>
    %62 = arith.mulf %59, %61 : vector<8x512xf32>
    %c0_21 = arith.constant 0 : index
    %c6016 = arith.constant 6016 : index
    %63 = vector.load %arg7[%c0_21, %c6016] : memref<1x7680xf32, #tpu.memory_space<vmem>>, vector<1x512xf32>
    %64 = vector.broadcast %63 : vector<1x512xf32> to vector<8x512xf32>
    %65 = arith.addf %62, %64 : vector<8x512xf32>
    %cst_22 = arith.constant 0.000000e+00 : f32
    %66 = vector.broadcast %cst_22 : f32 to vector<8x512xf32>
    %67 = arith.cmpf ogt, %65, %66 : vector<8x512xf32>
    %68 = vector.broadcast %2 : f32 to vector<8x512xf32>
    %69 = arith.mulf %68, %65 : vector<8x512xf32>
    %70 = arith.select %67, %65, %69 : vector<8x512xi1>, vector<8x512xf32>
    %71 = arith.truncf %70 : vector<8x512xf32> to vector<8x512xbf16>
    %c3_i32_23 = arith.constant 3 : i32
    %72 = tpu.memref_slice %arg16[%c3_i32_23] : memref<6x!tpu.dma_semaphore, #tpu.memory_space<semaphore_mem>> -> memref<1x!tpu.dma_semaphore, #tpu.memory_space<semaphore_mem>>
    %73 = tpu.memref_squeeze %72 : memref<1x!tpu.dma_semaphore, #tpu.memory_space<semaphore_mem>> -> memref<!tpu.dma_semaphore, #tpu.memory_space<semaphore_mem>>
    tpu.wait_dma2 semaphore(%73 : memref<!tpu.dma_semaphore, #tpu.memory_space<semaphore_mem>>) src(%arg4 : memref<512x384xi8, #tpu.memory_space<any>>) dst(%arg13 : memref<512x384xi8, #tpu.memory_space<vmem>>)
    %c0_24 = arith.constant 0 : index
    %c0_25 = arith.constant 0 : index
    %74 = vector.load %arg13[%c0_24, %c0_25] : memref<512x384xi8, #tpu.memory_space<vmem>>, vector<512x384xi8>
    %75 = arith.sitofp %74 : vector<512x384xi8> to vector<512x384xbf16>
    %cst_26 = arith.constant dense<0.000000e+00> : vector<8x384xf32>
    %76 = tpu.matmul %71, %75, %cst_26 {dimension_numbers = #tpu.dot_dimension_numbers<[1], [0], [0], [1], [0, 0, 1, 1], [], []>} : vector<8x512xbf16>, vector<512x384xbf16>, vector<8x384xf32> -> vector<8x384xf32>
    %c0_27 = arith.constant 0 : index
    %c2688 = arith.constant 2688 : index
    %77 = vector.load %arg7[%c0_27, %c2688] : memref<1x7680xf32, #tpu.memory_space<vmem>>, vector<1x384xf32>
    %78 = vector.broadcast %77 : vector<1x384xf32> to vector<8x384xf32>
    %79 = arith.mulf %76, %78 : vector<8x384xf32>
    %c0_28 = arith.constant 0 : index
    %c6528 = arith.constant 6528 : index
    %80 = vector.load %arg7[%c0_28, %c6528] : memref<1x7680xf32, #tpu.memory_space<vmem>>, vector<1x384xf32>
    %81 = vector.broadcast %80 : vector<1x384xf32> to vector<8x384xf32>
    %82 = arith.addf %79, %81 : vector<8x384xf32>
    %cst_29 = arith.constant 0.000000e+00 : f32
    %83 = vector.broadcast %cst_29 : f32 to vector<8x384xf32>
    %84 = arith.cmpf ogt, %82, %83 : vector<8x384xf32>
    %85 = vector.broadcast %3 : f32 to vector<8x384xf32>
    %86 = arith.mulf %85, %82 : vector<8x384xf32>
    %87 = arith.select %84, %82, %86 : vector<8x384xi1>, vector<8x384xf32>
    %88 = arith.truncf %87 : vector<8x384xf32> to vector<8x384xbf16>
    %c4_i32_30 = arith.constant 4 : i32
    %89 = tpu.memref_slice %arg16[%c4_i32_30] : memref<6x!tpu.dma_semaphore, #tpu.memory_space<semaphore_mem>> -> memref<1x!tpu.dma_semaphore, #tpu.memory_space<semaphore_mem>>
    %90 = tpu.memref_squeeze %89 : memref<1x!tpu.dma_semaphore, #tpu.memory_space<semaphore_mem>> -> memref<!tpu.dma_semaphore, #tpu.memory_space<semaphore_mem>>
    tpu.wait_dma2 semaphore(%90 : memref<!tpu.dma_semaphore, #tpu.memory_space<semaphore_mem>>) src(%arg5 : memref<384x256xi8, #tpu.memory_space<any>>) dst(%arg14 : memref<384x256xi8, #tpu.memory_space<vmem>>)
    %c0_31 = arith.constant 0 : index
    %c0_32 = arith.constant 0 : index
    %91 = vector.load %arg14[%c0_31, %c0_32] : memref<384x256xi8, #tpu.memory_space<vmem>>, vector<384x256xi8>
    %92 = arith.sitofp %91 : vector<384x256xi8> to vector<384x256xbf16>
    %cst_33 = arith.constant dense<0.000000e+00> : vector<8x256xf32>
    %93 = tpu.matmul %88, %92, %cst_33 {dimension_numbers = #tpu.dot_dimension_numbers<[1], [0], [0], [1], [0, 0, 1, 1], [], []>} : vector<8x384xbf16>, vector<384x256xbf16>, vector<8x256xf32> -> vector<8x256xf32>
    %c0_34 = arith.constant 0 : index
    %c3072 = arith.constant 3072 : index
    %94 = vector.load %arg7[%c0_34, %c3072] : memref<1x7680xf32, #tpu.memory_space<vmem>>, vector<1x256xf32>
    %95 = vector.broadcast %94 : vector<1x256xf32> to vector<8x256xf32>
    %96 = arith.mulf %93, %95 : vector<8x256xf32>
    %c0_35 = arith.constant 0 : index
    %c6912 = arith.constant 6912 : index
    %97 = vector.load %arg7[%c0_35, %c6912] : memref<1x7680xf32, #tpu.memory_space<vmem>>, vector<1x256xf32>
    %98 = vector.broadcast %97 : vector<1x256xf32> to vector<8x256xf32>
    %99 = arith.addf %96, %98 : vector<8x256xf32>
    %cst_36 = arith.constant 0.000000e+00 : f32
    %100 = vector.broadcast %cst_36 : f32 to vector<8x256xf32>
    %101 = arith.cmpf ogt, %99, %100 : vector<8x256xf32>
    %102 = vector.broadcast %4 : f32 to vector<8x256xf32>
    %103 = arith.mulf %102, %99 : vector<8x256xf32>
    %104 = arith.select %101, %99, %103 : vector<8x256xi1>, vector<8x256xf32>
    %105 = arith.truncf %104 : vector<8x256xf32> to vector<8x256xbf16>
    %c5_i32_37 = arith.constant 5 : i32
    %106 = tpu.memref_slice %arg16[%c5_i32_37] : memref<6x!tpu.dma_semaphore, #tpu.memory_space<semaphore_mem>> -> memref<1x!tpu.dma_semaphore, #tpu.memory_space<semaphore_mem>>
    %107 = tpu.memref_squeeze %106 : memref<1x!tpu.dma_semaphore, #tpu.memory_space<semaphore_mem>> -> memref<!tpu.dma_semaphore, #tpu.memory_space<semaphore_mem>>
    tpu.wait_dma2 semaphore(%107 : memref<!tpu.dma_semaphore, #tpu.memory_space<semaphore_mem>>) src(%arg6 : memref<640x128xi8, #tpu.memory_space<any>>) dst(%arg15 : memref<640x128xi8, #tpu.memory_space<vmem>>)
    %c0_38 = arith.constant 0 : index
    %c0_39 = arith.constant 0 : index
    %108 = vector.load %arg15[%c0_38, %c0_39] : memref<640x128xi8, #tpu.memory_space<vmem>>, vector<256x128xi8>
    %109 = arith.sitofp %108 : vector<256x128xi8> to vector<256x128xbf16>
    %cst_40 = arith.constant dense<0.000000e+00> : vector<8x128xf32>
    %110 = tpu.matmul %105, %109, %cst_40 {dimension_numbers = #tpu.dot_dimension_numbers<[1], [0], [0], [1], [0, 0, 1, 1], [], []>} : vector<8x256xbf16>, vector<256x128xbf16>, vector<8x128xf32> -> vector<8x128xf32>
    %c0_41 = arith.constant 0 : index
    %c3328 = arith.constant 3328 : index
    %111 = vector.load %arg7[%c0_41, %c3328] : memref<1x7680xf32, #tpu.memory_space<vmem>>, vector<1x128xf32>
    %112 = vector.broadcast %111 : vector<1x128xf32> to vector<8x128xf32>
    %113 = arith.mulf %110, %112 : vector<8x128xf32>
    %c0_42 = arith.constant 0 : index
    %c7168 = arith.constant 7168 : index
    %114 = vector.load %arg7[%c0_42, %c7168] : memref<1x7680xf32, #tpu.memory_space<vmem>>, vector<1x128xf32>
    %115 = vector.broadcast %114 : vector<1x128xf32> to vector<8x128xf32>
    %116 = arith.addf %113, %115 : vector<8x128xf32>
    %cst_43 = arith.constant 0.000000e+00 : f32
    %117 = vector.broadcast %cst_43 : f32 to vector<8x128xf32>
    %118 = arith.cmpf ogt, %116, %117 : vector<8x128xf32>
    %119 = vector.broadcast %5 : f32 to vector<8x128xf32>
    %120 = arith.mulf %119, %116 : vector<8x128xf32>
    %121 = arith.select %118, %116, %120 : vector<8x128xi1>, vector<8x128xf32>
    %122 = arith.truncf %121 : vector<8x128xf32> to vector<8x128xbf16>
    %c256 = arith.constant 256 : index
    %c0_44 = arith.constant 0 : index
    %123 = vector.load %arg15[%c256, %c0_44] : memref<640x128xi8, #tpu.memory_space<vmem>>, vector<128x128xi8>
    %124 = arith.sitofp %123 : vector<128x128xi8> to vector<128x128xbf16>
    %cst_45 = arith.constant dense<0.000000e+00> : vector<8x128xf32>
    %125 = tpu.matmul %122, %124, %cst_45 {dimension_numbers = #tpu.dot_dimension_numbers<[1], [0], [0], [1], [0, 0, 1, 1], [], []>} : vector<8x128xbf16>, vector<128x128xbf16>, vector<8x128xf32> -> vector<8x128xf32>
    %c0_46 = arith.constant 0 : index
    %c3456 = arith.constant 3456 : index
    %126 = vector.load %arg7[%c0_46, %c3456] : memref<1x7680xf32, #tpu.memory_space<vmem>>, vector<1x128xf32>
    %127 = vector.broadcast %126 : vector<1x128xf32> to vector<8x128xf32>
    %128 = arith.mulf %125, %127 : vector<8x128xf32>
    %c0_47 = arith.constant 0 : index
    %c7296 = arith.constant 7296 : index
    %129 = vector.load %arg7[%c0_47, %c7296] : memref<1x7680xf32, #tpu.memory_space<vmem>>, vector<1x128xf32>
    %130 = vector.broadcast %129 : vector<1x128xf32> to vector<8x128xf32>
    %131 = arith.addf %128, %130 : vector<8x128xf32>
    %cst_48 = arith.constant 0.000000e+00 : f32
    %132 = vector.broadcast %cst_48 : f32 to vector<8x128xf32>
    %133 = arith.cmpf ogt, %131, %132 : vector<8x128xf32>
    %134 = vector.broadcast %6 : f32 to vector<8x128xf32>
    %135 = arith.mulf %134, %131 : vector<8x128xf32>
    %136 = arith.select %133, %131, %135 : vector<8x128xi1>, vector<8x128xf32>
    %137 = arith.truncf %136 : vector<8x128xf32> to vector<8x128xbf16>
    %c384 = arith.constant 384 : index
    %c0_49 = arith.constant 0 : index
    %138 = vector.load %arg15[%c384, %c0_49] : memref<640x128xi8, #tpu.memory_space<vmem>>, vector<128x128xi8>
    %139 = arith.sitofp %138 : vector<128x128xi8> to vector<128x128xbf16>
    %cst_50 = arith.constant dense<0.000000e+00> : vector<8x128xf32>
    %140 = tpu.matmul %137, %139, %cst_50 {dimension_numbers = #tpu.dot_dimension_numbers<[1], [0], [0], [1], [0, 0, 1, 1], [], []>} : vector<8x128xbf16>, vector<128x128xbf16>, vector<8x128xf32> -> vector<8x128xf32>
    %c0_51 = arith.constant 0 : index
    %c3584 = arith.constant 3584 : index
    %141 = vector.load %arg7[%c0_51, %c3584] : memref<1x7680xf32, #tpu.memory_space<vmem>>, vector<1x128xf32>
    %142 = vector.broadcast %141 : vector<1x128xf32> to vector<8x128xf32>
    %143 = arith.mulf %140, %142 : vector<8x128xf32>
    %c0_52 = arith.constant 0 : index
    %c7424 = arith.constant 7424 : index
    %144 = vector.load %arg7[%c0_52, %c7424] : memref<1x7680xf32, #tpu.memory_space<vmem>>, vector<1x128xf32>
    %145 = vector.broadcast %144 : vector<1x128xf32> to vector<8x128xf32>
    %146 = arith.addf %143, %145 : vector<8x128xf32>
    %cst_53 = arith.constant 0.000000e+00 : f32
    %147 = vector.broadcast %cst_53 : f32 to vector<8x128xf32>
    %148 = arith.cmpf ogt, %146, %147 : vector<8x128xf32>
    %149 = vector.broadcast %7 : f32 to vector<8x128xf32>
    %150 = arith.mulf %149, %146 : vector<8x128xf32>
    %151 = arith.select %148, %146, %150 : vector<8x128xi1>, vector<8x128xf32>
    %152 = arith.truncf %151 : vector<8x128xf32> to vector<8x128xbf16>
    %c512 = arith.constant 512 : index
    %c0_54 = arith.constant 0 : index
    %153 = vector.load %arg15[%c512, %c0_54] : memref<640x128xi8, #tpu.memory_space<vmem>>, vector<128x128xi8>
    %154 = arith.sitofp %153 : vector<128x128xi8> to vector<128x128xbf16>
    %cst_55 = arith.constant dense<0.000000e+00> : vector<8x128xf32>
    %155 = tpu.matmul %152, %154, %cst_55 {dimension_numbers = #tpu.dot_dimension_numbers<[1], [0], [0], [1], [0, 0, 1, 1], [], []>} : vector<8x128xbf16>, vector<128x128xbf16>, vector<8x128xf32> -> vector<8x128xf32>
    %c0_56 = arith.constant 0 : index
    %c3712 = arith.constant 3712 : index
    %156 = vector.load %arg7[%c0_56, %c3712] : memref<1x7680xf32, #tpu.memory_space<vmem>>, vector<1x128xf32>
    %157 = vector.broadcast %156 : vector<1x128xf32> to vector<8x128xf32>
    %158 = arith.mulf %155, %157 : vector<8x128xf32>
    %c0_57 = arith.constant 0 : index
    %c7552 = arith.constant 7552 : index
    %159 = vector.load %arg7[%c0_57, %c7552] : memref<1x7680xf32, #tpu.memory_space<vmem>>, vector<1x128xf32>
    %160 = vector.broadcast %159 : vector<1x128xf32> to vector<8x128xf32>
    %161 = arith.addf %158, %160 : vector<8x128xf32>
    %c0_58 = arith.constant 0 : index
    %c0_59 = arith.constant 0 : index
    %162 = vector.load %arg9[%c0_58, %c0_59] : memref<8x128xf32, #tpu.memory_space<vmem>>, vector<8x128xf32>
    tpu.vector_store %arg9[%c0_58, %c0_59], %161 {strides = array<i32>} : memref<8x128xf32, #tpu.memory_space<vmem>>, vector<8x128xf32>,
    return
  }
}

</mosaic_0001>

<bundles_post_ra>
// kernel: tpu_custom_call.1
= control target key start
LH: loop header
LB: loop body
LE: loop exit
PB: predicated region body
PF: predicated region fallthrough
CT: control target
= control target key end

     0   :  { %14 = vsyncpa [#allocation10], 0  ;;  %s5130_s0 = inlined_call_operand.hbm [shape: bf16[8,64], index: 0, kind: input, shape index: {}]   ;;  %s5131_s1 = inlined_call_operand.hbm [shape: s8[64,1280], index: 1, kind: input, shape index: {}]   ;;  %s5132_s2 = inlined_call_operand.hbm [shape: s8[1280,896], index: 2, kind: input, shape index: {}]   ;;  %s5133_s3 = inlined_call_operand.hbm [shape: s8[896,512], index: 3, kind: input, shape index: {}]   ;;  %s5134_s4 = inlined_call_operand.hbm [shape: s8[512,384], index: 4, kind: input, shape index: {}]   ;;  %s5135_s5 = inlined_call_operand.hbm [shape: s8[384,256], index: 5, kind: input, shape index: {}]   ;;  %s5136_s6 = inlined_call_operand.hbm [shape: s8[640,128], index: 6, kind: input, shape index: {}]   ;;  %s5137_s7 = inlined_call_operand.hbm [shape: f32[1,7680], index: 7, kind: input, shape index: {}]   ;;  %s5138_s8 = inlined_call_operand.hbm [shape: f32[8], index: 8, kind: input, shape index: {}]   ;;  %s5139_s9 = inlined_call_operand.hbm [shape: f32[8,128], index: 9, kind: output, shape index: {}]  }
   0x1   :  { %15 = vsyncpa [#allocation14], 0 }
   0x2   :  { %16 = vsyncpa [#allocation12], 0 }
   0x3   :  { %17 = vsyncpa [#allocation11], 0  ;;  %s4622_s30 = smov [#allocation9]   ;;  %s4623_s11 = smov [#allocation13]  }
   0x4   :  { %s24_s10 = sshll.u32 %s4622_s30, 4  ;;  %s34_s12 = sshll.u32 %s4623_s11, 4  ;;  %s25_s10 = int_to_ptr.vmem [resolvable:$true] %s24_s10  ;;  %s35_s12 = int_to_ptr.vmem [resolvable:$true] %s34_s12 }
   0x5   :  { %s4394_s15 = scalar_lea.hbm %s5130_s0, 64 }
   0x6   :  { %p4395_p0 = scmp.ne.s32.totalorder %s5130_s0, %s4394_s15  ;;  %p4398_p1 = scmp.lt.u32.totalorder %s4394_s15, %s5130_s0 }
   0x8   :  { %p4400_p2 = pnand %p4398_p1, %p4395_p0 }
   0xa   :  { %4403 = shalt.err (!%p4400_p2)
}
   0xb   :  { %s4404_s20 = scalar_lea.vmem %s25_s10, 64  ;;  %p4409_p4 = scmp.lt.s32.totalorder %s25_s10, %s25_s10 }
   0xc   :  { %p4405_p3 = scmp.ne.s32.totalorder %s25_s10, %s4404_s20  ;;  %p4410_p5 = scmp.lt.s32.totalorder %s4404_s20, %s4404_s20 }
   0xe   :  { %p4411_p6 = por %p4410_p5, %p4409_p4 }
  0x10   :  { %p4412_p7 = pnand %p4411_p6, %p4405_p3 }
  0x12   :  { %4415 = shalt.err (!%p4412_p7)
}
  0x13   :  { %27 = dma.hbm_to_vmem [thread:$0]  %s5130_s0, 64, %s25_s10, [#allocation10]  }
  0x14   :  { %s4416_s25 = scalar_lea.hbm %s5137_s7, 960 }
  0x15   :  { %p4417_p8 = scmp.ne.s32.totalorder %s5137_s7, %s4416_s25  ;;  %p4420_p9 = scmp.lt.u32.totalorder %s4416_s25, %s5137_s7 }
  0x17   :  { %p4422_p10 = pnand %p4420_p9, %p4417_p8 }
  0x19   :  { %4425 = shalt.err (!%p4422_p10)
}
  0x1a   :  { %s4426_s30 = scalar_lea.vmem %s35_s12, 960  ;;  %p4431_p12 = scmp.lt.s32.totalorder %s35_s12, %s35_s12 }
  0x1b   :  { %p4427_p11 = scmp.ne.s32.totalorder %s35_s12, %s4426_s30  ;;  %p4432_p13 = scmp.lt.s32.totalorder %s4426_s30, %s4426_s30 }
  0x1d   :  { %p4433_p0 = por %p4432_p13, %p4431_p12 }
  0x1f   :  { %p4434_p1 = pnand %p4433_p0, %p4427_p11 }
  0x21   :  { %4437 = shalt.err (!%p4434_p1)
}
  0x22   :  { %37 = dma.hbm_to_vmem [thread:$0]  %s5137_s7, 960, %s35_s12, [#allocation14]  }
  0x23   :  { %s4438_s14 = scalar_lea.hbm %s5138_s8, 16 }
  0x24   :  { %p4439_p2 = scmp.ne.s32.totalorder %s5138_s8, %s4438_s14  ;;  %p4442_p3 = scmp.lt.u32.totalorder %s4438_s14, %s5138_s8 }
  0x26   :  { %p4444_p4 = pnand %p4442_p3, %p4439_p2 }
  0x28   :  { %4447 = shalt.err (!%p4444_p4)
}
  0x29   :  { %s4624_s19 = smov [#allocation15]  }
  0x2a   :  { %45 = dma.hbm_to_smem %s5138_s8, 16, %s4624_s19, [#allocation12]  }
  0x2b   :  { %4602 = dma.done.wait [#allocation10], 64  }
  0x2c   :  { %4603 = vsyncadd [#allocation10], 4294967232 }
  0x2d   :  { %4604 = dma.done.wait [#allocation14], 960  }
  0x2e   :  { %4605 = vsyncadd [#allocation14], 4294966336 }
  0x2f   :  { %4606 = dma.done.wait [#allocation12], 16  }
  0x30   :  { %4607 = vsyncadd [#allocation12], 4294967280 }
  0x31   :  { %55 = sfence }
  0x32   :  { %s4721_s7 = sld [smem:[#allocation15]]  ;;  %s4723_s12 = sld [smem:[#allocation15 + $0x1]]  ;;  %v4725_v0 = vld [vmem:[#allocation9] sm:$0xf] }
  0x33   :  { %s4727_s22 = sld [smem:[#allocation15 + $0x2]]  ;;  %s4729_s23 = sld [smem:[#allocation15 + $0x3]] }
  0x34   :  { %s4731_s24 = sld [smem:[#allocation15 + $0x4]]  ;;  %s4733_s8 = sld [smem:[#allocation15 + $0x5]] }
  0x35   :  { %s4735_s25 = sld [smem:[#allocation15 + $0x6]]  ;;  %s4737_s26 = sld [smem:[#allocation15 + $0x7]] }
  0x36   :  { %s4625_s27 = smov [#allocation2]   ;;  %s4626_s29 = smov [#allocation3]  }
  0x37   :  { %s72_s28 = sshll.u32 %s4625_s27, 4  ;;  %s84_s30 = sshll.u32 %s4626_s29, 4  ;;  %s73_s28 = int_to_ptr.vmem [resolvable:$true] %s72_s28  ;;  %s85_s30 = int_to_ptr.vmem [resolvable:$true] %s84_s30 }
  0x38   :  { %s4448_s11 = scalar_lea.hbm %s5131_s1, 2560 }
  0x39   :  { %p4449_p5 = scmp.ne.s32.totalorder %s5131_s1, %s4448_s11  ;;  %p4452_p6 = scmp.lt.u32.totalorder %s4448_s11, %s5131_s1 }
  0x3b   :  { %p4454_p7 = pnand %p4452_p6, %p4449_p5 }
  0x3d   :  { %4457 = shalt.err (!%p4454_p7)  }
  0x3e   :  { %s4458_s17 = scalar_lea.vmem %s73_s28, 2560  ;;  %p4463_p9 = scmp.lt.s32.totalorder %s73_s28, %s73_s28 }
  0x3f   :  { %p4459_p8 = scmp.ne.s32.totalorder %s73_s28, %s4458_s17  ;;  %p4464_p10 = scmp.lt.s32.totalorder %s4458_s17, %s4458_s17 }
  0x41   :  { %p4465_p11 = por %p4464_p10, %p4463_p9 }
  0x43   :  { %p4466_p12 = pnand %p4465_p11, %p4459_p8 }
  0x45   :  { %4469 = shalt.err (!%p4466_p12)  }
  0x46   :  { %75 = dma.hbm_to_vmem [thread:$0]  %s5131_s1, 2560, %s73_s28, [#allocation8] }
  0x47   :  { %s4470_s27 = scalar_lea.hbm %s5132_s2, 35840 }
  0x48   :  { %p4471_p13 = scmp.ne.s32.totalorder %s5132_s2, %s4470_s27  ;;  %p4474_p0 = scmp.lt.u32.totalorder %s4470_s27, %s5132_s2 }
  0x4a   :  { %p4476_p1 = pnand %p4474_p0, %p4471_p13 }
  0x4c   :  { %4479 = shalt.err (!%p4476_p1)  }
  0x4d   :  { %s4480_s13 = scalar_lea.vmem %s85_s30, 35840  ;;  %p4485_p3 = scmp.lt.s32.totalorder %s85_s30, %s85_s30 }
  0x4e   :  { %p4481_p2 = scmp.ne.s32.totalorder %s85_s30, %s4480_s13  ;;  %p4486_p4 = scmp.lt.s32.totalorder %s4480_s13, %s4480_s13 }
  0x50   :  { %p4487_p5 = por %p4486_p4, %p4485_p3 }
  0x52   :  { %p4488_p6 = pnand %p4487_p5, %p4481_p2 }
  0x54   :  { %4491 = shalt.err (!%p4488_p6)  }
  0x55   :  { %87 = dma.hbm_to_vmem [thread:$0]  %s5132_s2, 35840, %s85_s30, [#allocation8 + $0x1] }
  0x56   :  { %s4627_s14 = smov [#allocation4]   ;;  %s4628_s16 = smov [#allocation5]  }
  0x57   :  { %s96_s15 = sshll.u32 %s4627_s14, 4  ;;  %s108_s17 = sshll.u32 %s4628_s16, 4  ;;  %s97_s15 = int_to_ptr.vmem [resolvable:$true] %s96_s15  ;;  %s109_s17 = int_to_ptr.vmem [resolvable:$true] %s108_s17 }
  0x58   :  { %s4492_s20 = scalar_lea.hbm %s5133_s3, 14336 }
  0x59   :  { %p4493_p7 = scmp.ne.s32.totalorder %s5133_s3, %s4492_s20  ;;  %p4496_p8 = scmp.lt.u32.totalorder %s4492_s20, %s5133_s3 }
  0x5b   :  { %p4498_p9 = pnand %p4496_p8, %p4493_p7 }
  0x5d   :  { %4501 = shalt.err (!%p4498_p9)  }
  0x5e   :  { %s4502_s2 = scalar_lea.vmem %s97_s15, 14336  ;;  %p4507_p11 = scmp.lt.s32.totalorder %s97_s15, %s97_s15 }
  0x5f   :  { %p4503_p10 = scmp.ne.s32.totalorder %s97_s15, %s4502_s2  ;;  %p4508_p12 = scmp.lt.s32.totalorder %s4502_s2, %s4502_s2 }
  0x61   :  { %p4509_p13 = por %p4508_p12, %p4507_p11 }
  0x63   :  { %p4510_p0 = pnand %p4509_p13, %p4503_p10 }
  0x65   :  { %4513 = shalt.err (!%p4510_p0)  }
  0x66   :  { %99 = dma.hbm_to_vmem [thread:$0]  %s5133_s3, 14336, %s97_s15, [#allocation8 + $0x2] }
  0x67   :  { %s4514_s1 = scalar_lea.hbm %s5134_s4, 6144 }
  0x68   :  { %p4515_p1 = scmp.ne.s32.totalorder %s5134_s4, %s4514_s1  ;;  %p4518_p2 = scmp.lt.u32.totalorder %s4514_s1, %s5134_s4 }
  0x6a   :  { %p4520_p3 = pnand %p4518_p2, %p4515_p1 }
  0x6c   :  { %4523 = shalt.err (!%p4520_p3)  }
  0x6d   :  { %s4524_s19 = scalar_lea.vmem %s109_s17, 6144  ;;  %p4529_p5 = scmp.lt.s32.totalorder %s109_s17, %s109_s17 }
  0x6e   :  { %p4525_p4 = scmp.ne.s32.totalorder %s109_s17, %s4524_s19  ;;  %p4530_p6 = scmp.lt.s32.totalorder %s4524_s19, %s4524_s19 }
  0x70   :  { %p4531_p7 = por %p4530_p6, %p4529_p5 }
  0x72   :  { %p4532_p8 = pnand %p4531_p7, %p4525_p4 }
  0x74   :  { %4535 = shalt.err (!%p4532_p8)  }
  0x75   :  { %111 = dma.hbm_to_vmem [thread:$0]  %s5134_s4, 6144, %s109_s17, [#allocation8 + $0x3] }
  0x76   :  { %s4629_s20 = smov [#allocation6]   ;;  %s4630_s27 = smov [#allocation7]  }
  0x77   :  { %s120_s21 = sshll.u32 %s4629_s20, 4  ;;  %s132_s29 = sshll.u32 %s4630_s27, 4  ;;  %s121_s21 = int_to_ptr.vmem [resolvable:$true] %s120_s21  ;;  %s133_s29 = int_to_ptr.vmem [resolvable:$true] %s132_s29 }
  0x78   :  { %s4536_s30 = scalar_lea.hbm %s5135_s5, 3072 }
  0x79   :  { %p4537_p9 = scmp.ne.s32.totalorder %s5135_s5, %s4536_s30  ;;  %p4540_p10 = scmp.lt.u32.totalorder %s4536_s30, %s5135_s5 }
  0x7b   :  { %p4542_p11 = pnand %p4540_p10, %p4537_p9 }
  0x7d   :  { %4545 = shalt.err (!%p4542_p11)  }
  0x7e   :  { %s4546_s4 = scalar_lea.vmem %s121_s21, 3072  ;;  %p4551_p13 = scmp.lt.s32.totalorder %s121_s21, %s121_s21 }
  0x7f   :  { %p4547_p12 = scmp.ne.s32.totalorder %s121_s21, %s4546_s4  ;;  %p4552_p0 = scmp.lt.s32.totalorder %s4546_s4, %s4546_s4 }
  0x81   :  { %p4553_p1 = por %p4552_p0, %p4551_p13 }
  0x83   :  { %p4554_p2 = pnand %p4553_p1, %p4547_p12 }
  0x85   :  { %4557 = shalt.err (!%p4554_p2)  }
  0x86   :  { %123 = dma.hbm_to_vmem [thread:$0]  %s5135_s5, 3072, %s121_s21, [#allocation8 + $0x4] }
  0x87   :  { %s4558_s18 = scalar_lea.hbm %s5136_s6, 2560 }
  0x88   :  { %p4559_p3 = scmp.ne.s32.totalorder %s5136_s6, %s4558_s18  ;;  %p4562_p4 = scmp.lt.u32.totalorder %s4558_s18, %s5136_s6 }
  0x8a   :  { %p4564_p5 = pnand %p4562_p4, %p4559_p3 }
  0x8c   :  { %4567 = shalt.err (!%p4564_p5)  }
  0x8d   :  { %s4568_s27 = scalar_lea.vmem %s133_s29, 2560  ;;  %p4573_p7 = scmp.lt.s32.totalorder %s133_s29, %s133_s29 }
  0x8e   :  { %p4569_p6 = scmp.ne.s32.totalorder %s133_s29, %s4568_s27  ;;  %p4574_p8 = scmp.lt.s32.totalorder %s4568_s27, %s4568_s27 }
  0x90   :  { %p4575_p9 = por %p4574_p8, %p4573_p7 }
  0x92   :  { %p4576_p10 = pnand %p4575_p9, %p4569_p6 }
  0x94   :  { %4579 = shalt.err (!%p4576_p10)  }
  0x95   :  { %135 = dma.hbm_to_vmem [thread:$0]  %s5136_s6, 2560, %s133_s29, [#allocation8 + $0x5] }
  0x96   :  { %4608 = dma.done.wait [#allocation8], 2560 }
  0x97   :  { %4609 = vsyncadd [#allocation8], 4294964736  ;;  %v4631_v1 = vmov 0   ;;  %v142_v2 = vld [vmem:[#allocation2 + $0x8] sm:$0xff]  ;;  %v141_v3 = vld [vmem:[#allocation2] sm:$0xff]  ;;  %vm201_vm0 = vcmask 523264   ;;  %v414_v62 = vlaneseq }
  0x98   :  { %237 = vmatprep.mubr.bf16.mxu0 %v4631_v1  ;;  %278 = vmatprep.mubr.bf16.mxu1 %v4631_v1  ;;  %v162_v4 = vunpack.c.l.s8.bf16 %v142_v2  ;;  %v172_v5 = vunpack.c.h.s8.bf16 %v142_v2  ;;  %v161_v6 = vunpack.c.l.s8.bf16 %v141_v3  ;;  %v144_v7 = vld [vmem:[#allocation2 + $0x18] sm:$0xff]  ;;  %v143_v8 = vld [vmem:[#allocation2 + $0x10] sm:$0xff]  ;;  %v171_v13 = vunpack.c.h.s8.bf16 %v141_v3  ;;  %v154_v14 = vld [vmem:[#allocation2 + $0x68] sm:$0xff] }
  0x99   :  { %v152_v9 = vld [vmem:[#allocation2 + $0x58] sm:$0xff]  ;;  %v164_v10 = vunpack.c.l.s8.bf16 %v144_v7  ;;  %v174_v11 = vunpack.c.h.s8.bf16 %v144_v7  ;;  %v163_v12 = vunpack.c.l.s8.bf16 %v143_v8  ;;  %v151_v16 = vld [vmem:[#allocation2 + $0x50] sm:$0xff]  ;;  %v173_v17 = vunpack.c.h.s8.bf16 %v143_v8  ;;  %v153_v19 = vld [vmem:[#allocation2 + $0x60] sm:$0xff] }
  0x9a   :  { %205 = vmatprep.subr.bf16.mxu0 %v162_v4  ;;  %v182_v15 = vunpack.c.l.s8.bf16 %v152_v9  ;;  %v184_v18 = vunpack.c.l.s8.bf16 %v154_v14  ;;  %v181_v20 = vunpack.c.l.s8.bf16 %v151_v16  ;;  %v192_v21 = vunpack.c.h.s8.bf16 %v152_v9  ;;  %v146_v22 = vld [vmem:[#allocation2 + $0x28] sm:$0xff]  ;;  %v148_v26 = vld [vmem:[#allocation2 + $0x38] sm:$0xff]  ;;  %v145_v28 = vld [vmem:[#allocation2 + $0x20] sm:$0xff] }
  0x9b   :  { %206 = vmatpush1.bf16.msra.mxu0 %v161_v6  ;;  %246 = vmatprep.subr.bf16.mxu1 %v164_v10  ;;  %v183_v23 = vunpack.c.l.s8.bf16 %v153_v19  ;;  %v194_v24 = vunpack.c.h.s8.bf16 %v154_v14  ;;  %v191_v25 = vunpack.c.h.s8.bf16 %v151_v16  ;;  %v166_v27 = vunpack.c.l.s8.bf16 %v146_v22  ;;  %v147_v31 = vld [vmem:[#allocation2 + $0x30] sm:$0xff]  ;;  %v156_v34 = vld [vmem:[#allocation2 + $0x78] sm:$0xff]  ;;  %v158_v38 = vld [vmem:[#allocation2 + $0x88] sm:$0xff] }
  0x9c   :  { %207 = vmatprep.subr.bf16.mxu0 %v172_v5  ;;  %247 = vmatpush1.bf16.msra.mxu1 %v163_v12  ;;  %v193_v29 = vunpack.c.h.s8.bf16 %v153_v19  ;;  %v168_v30 = vunpack.c.l.s8.bf16 %v148_v26  ;;  %v165_v32 = vunpack.c.l.s8.bf16 %v145_v28  ;;  %v176_v33 = vunpack.c.h.s8.bf16 %v146_v22  ;;  %v155_v40 = vld [vmem:[#allocation2 + $0x70] sm:$0xff]  ;;  %v157_v43 = vld [vmem:[#allocation2 + $0x80] sm:$0xff]  ;;  %v150_v46 = vld [vmem:[#allocation2 + $0x48] sm:$0xff] }
  0x9d   :  { %248 = vmatprep.subr.bf16.mxu1 %v174_v11  ;;  %v167_v35 = vunpack.c.l.s8.bf16 %v147_v31  ;;  %v178_v36 = vunpack.c.h.s8.bf16 %v148_v26  ;;  %v175_v37 = vunpack.c.h.s8.bf16 %v145_v28  ;;  %v186_v39 = vunpack.c.l.s8.bf16 %v156_v34  ;;  %v149_v51 = vld [vmem:[#allocation2 + $0x40] sm:$0xff]  ;;  %v160_v55 = vld [vmem:[#allocation2 + $0x98] sm:$0xff]  ;;  %v159_v58 = vld [vmem:[#allocation2 + $0x90] sm:$0xff] }
  0x9e   :  { %v177_v41 = vunpack.c.h.s8.bf16 %v147_v31  ;;  %v188_v42 = vunpack.c.l.s8.bf16 %v158_v38  ;;  %v185_v44 = vunpack.c.l.s8.bf16 %v155_v40  ;;  %v196_v45 = vunpack.c.h.s8.bf16 %v156_v34  ;;  %v4831_v3 = vld [vmem:[#allocation13] sm:$0xff] }
  0x9f   :  { %208 = vmatpush1.bf16.msra.mxu0 %v171_v13  ;;  %v187_v47 = vunpack.c.l.s8.bf16 %v157_v43  ;;  %v198_v48 = vunpack.c.h.s8.bf16 %v158_v38  ;;  %v195_v49 = vunpack.c.h.s8.bf16 %v155_v40  ;;  %v170_v50 = vunpack.c.l.s8.bf16 %v150_v46  ;;  %v4839_v6 = vld [vmem:[#allocation13 + $0x1e] sm:$0xff] }
  0xa0   :  { %209 = vmatprep.subr.bf16.mxu0 %v182_v15  ;;  %249 = vmatpush1.bf16.msra.mxu1 %v173_v17  ;;  %v197_v52 = vunpack.c.h.s8.bf16 %v157_v43  ;;  %v169_v53 = vunpack.c.l.s8.bf16 %v149_v51  ;;  %v180_v54 = vunpack.c.h.s8.bf16 %v150_v46  ;;  %v179_v56 = vunpack.c.h.s8.bf16 %v149_v51 }
  0xa1   :  { %250 = vmatprep.subr.bf16.mxu1 %v184_v18  ;;  %v190_v57 = vunpack.c.l.s8.bf16 %v160_v55  ;;  %v189_v59 = vunpack.c.l.s8.bf16 %v159_v58  ;;  %v200_v60 = vunpack.c.h.s8.bf16 %v160_v55  ;;  %v199_v61 = vunpack.c.h.s8.bf16 %v159_v58 }
  0xa2   :  { %v4826_v63 = vshrl.u32 %v414_v62, 7  ;;  %v4859_v17 = vstv %s4721_s7 }
  0xa3   :  { %210 = vmatpush1.bf16.msra.mxu0 %v181_v20 }
  0xa4   :  { %211 = vmatprep.subr.bf16.mxu0 %v192_v21  ;;  %251 = vmatpush1.bf16.msra.mxu1 %v183_v23  ;;  %v4829_v2 = vsub.s32 0, %v4826_v63  ;;  %v4834_v4 = vsub.s32 1, %v4826_v63  ;;  %v4837_v5 = vsub.s32 2, %v4826_v63  ;;  %v4842_v7 = vsub.s32 3, %v4826_v63 }
  0xa5   :  { %252 = vmatprep.subr.bf16.mxu1 %v194_v24  ;;  %v4882_v46 = vsub.s32 6, %v4826_v63 }
  0xa6   :  { %v421_v8 = vrot.slane %v4831_v3, %v4834_v4  ;;  %v481_v9 = vrot.slane %v4839_v6, %v4829_v2  ;;  %v425_v10 = vrot.slane %v4831_v3, %v4837_v5  ;;  %v485_v12 = vrot.slane %v4839_v6, %v4834_v4 }
  0xa7   :  { %212 = vmatpush1.bf16.msra.mxu0 %v191_v25  ;;  %v429_v13 = vrot.slane %v4831_v3, %v4842_v7  ;;  %v489_v16 = vrot.slane %v4839_v6, %v4837_v5  ;;  %v493_v21 = vrot.slane %v4839_v6, %v4842_v7  ;;  %v441_v51 = vrot.slane %v4831_v3, %v4882_v46 }
  0xa8   :  { %287 = vmatprep.subr.bf16.mxu0 %v166_v27  ;;  %253 = vmatpush1.bf16.msra.mxu1 %v193_v29 }
  0xa9   :  { %328 = vmatprep.subr.bf16.mxu1 %v168_v30 }
  0xaa   :  { %4019 = vmatmul.mubr.msk.bf16.vlgmr.msra.gmra.mrb[0].mxu0 %vm201_vm0, %v4725_v0 }
  0xab   :  { %288 = vmatpush1.bf16.msra.mxu0 %v165_v32  ;;  %319 = vmatprep.mubr.bf16.mxu0 %v4631_v1 }
  0xac   :  { %289 = vmatprep.subr.bf16.mxu0 %v176_v33  ;;  %4020 = vmatmul.mubr.msk.bf16.vlgmr.msra.gmra.mrb[0].mxu1 %vm201_vm0, %v4725_v0 }
  0xad   :  { %329 = vmatpush1.bf16.msra.mxu1 %v167_v35  ;;  %360 = vmatprep.mubr.bf16.mxu1 %v4631_v1 }
  0xae   :  { %330 = vmatprep.subr.bf16.mxu1 %v178_v36 }
  0xaf   :  { %290 = vmatpush1.bf16.msra.mxu0 %v175_v37 }
  0xb0   :  { %291 = vmatprep.subr.bf16.mxu0 %v186_v39 }
  0xb1   :  { %331 = vmatpush1.bf16.msra.mxu1 %v177_v41  ;;  %v4872_v41 = vsub.s32 4, %v4826_v63 }
  0xb2   :  { %332 = vmatprep.subr.bf16.mxu1 %v188_v42 }
  0xb3   :  { %292 = vmatpush1.bf16.msra.mxu0 %v185_v44  ;;  %v4877_v44 = vsub.s32 5, %v4826_v63 }
  0xb4   :  { %293 = vmatprep.subr.bf16.mxu0 %v196_v45 }
  0xb5   :  { %333 = vmatpush1.bf16.msra.mxu1 %v187_v47  ;;  %v444_v47 = vsub.s32 7, %v4826_v63 }
  0xb6   :  { %334 = vmatprep.subr.bf16.mxu1 %v198_v48  ;;  %v433_v48 = vrot.slane %v4831_v3, %v4872_v41 }
  0xb7   :  { %294 = vmatpush1.bf16.msra.mxu0 %v195_v49  ;;  %v437_v49 = vrot.slane %v4831_v3, %v4877_v44 }
  0xb8   :  { %369 = vmatprep.subr.bf16.mxu0 %v170_v50  ;;  %v497_v50 = vrot.slane %v4839_v6, %v4872_v41 }
  0xb9   :  { %335 = vmatpush1.bf16.msra.mxu1 %v197_v52 }
  0xba   :  { %4021 = vmatmul.mubr.msk.bf16.vlgmr.msra.gmra.mrb[4].mxu0 %vm201_vm0, %v4725_v0 }
  0xbb   :  { %370 = vmatpush1.bf16.msra.mxu0 %v169_v53  ;;  %401 = vmatprep.mubr.bf16.mxu0 %v4631_v1  ;;  %v501_v53 = vrot.slane %v4839_v6, %v4877_v44 }
  0xbc   :  { %371 = vmatprep.subr.bf16.mxu0 %v180_v54  ;;  %4022 = vmatmul.mubr.msk.bf16.vlgmr.msra.gmra.mrb[4].mxu1 %vm201_vm0, %v4725_v0  ;;  %v445_v54 = vrot.slane %v4831_v3, %v444_v47 }
  0xbf   :  { %372 = vmatpush1.bf16.msra.mxu0 %v179_v56 }
  0xc0   :  { %373 = vmatprep.subr.bf16.mxu0 %v190_v57  ;;  %v505_v57 = vrot.slane %v4839_v6, %v4882_v46 }
  0xc3   :  { %374 = vmatpush1.bf16.msra.mxu0 %v189_v59 }
  0xc4   :  { %375 = vmatprep.subr.bf16.mxu0 %v200_v60 }
  0xc7   :  { %376 = vmatpush1.bf16.msra.mxu0 %v199_v61  ;;  %v509_v61 = vrot.slane %v4839_v6, %v444_v47 }
  0xca   :  { %4023 = vmatmul.mubr.msk.bf16.vlgmr.msra.gmra.mrb[8].mxu0 %vm201_vm0, %v4725_v0  ;;  %v417_v0 = vrot.slane %v4831_v3, %v4829_v2 }
 0x17d   :  { %v239_v11 = vpop.f32.mrb[0].mxu0 }
 0x17e   :  { %v464_v14 = vmul.f32 %v417_v0, %v239_v11  ;;  %v241_v15 = vpop.f32.mrb[1].mxu0 }
 0x17f   :  { %v465_v18 = vmul.f32 %v421_v8, %v241_v15  ;;  %v243_v19 = vpop.f32.mrb[2].mxu0  ;;  %v280_v20 = vpop.f32.mrb[0].mxu1 }
 0x180   :  { %v528_v22 = vadd.f32 %v481_v9, %v464_v14  ;;  %v244_v23 = vpop.f32.mrb[3].mxu0  ;;  %v466_v24 = vmul.f32 %v425_v10, %v280_v20  ;;  %v282_v25 = vpop.f32.mrb[1].mxu1 }
 0x181   :  { %v529_v26 = vadd.f32 %v485_v12, %v465_v18  ;;  %v467_v27 = vmul.f32 %v429_v13, %v282_v25  ;;  %v284_v28 = vpop.f32.mrb[2].mxu1  ;;  %v411_v25 = vld [vmem:[#allocation13 + $0x8] sm:$0x3] }
 0x182   :  { %vm538_vm1 = vcmp.gt.f32.partialorder %v528_v22, 0.0  ;;  %v549_v29 = vmul.f32 %v4859_v17, %v528_v22  ;;  %v530_v30 = vadd.f32 %v489_v16, %v466_v24  ;;  %v285_v31 = vpop.f32.mrb[3].mxu1  ;;  %v449_v28 = vrot.slane %v411_v25, %v4829_v2 }
 0x183   :  { %vm539_vm2 = vcmp.gt.f32.partialorder %v529_v26, 0.0  ;;  %v550_v32 = vmul.f32 %v4859_v17, %v529_v26  ;;  %v531_v33 = vadd.f32 %v493_v21, %v467_v27  ;;  %v475_v27 = vld [vmem:[#allocation13 + $0x26] sm:$0x3] }
 0x184   :  { %v559_v34 = vsel %vm538_vm1, %v528_v22, %v549_v29  ;;  %vm540_vm3 = vcmp.gt.f32.partialorder %v530_v30, 0.0  ;;  %v551_v35 = vmul.f32 %v4859_v17, %v530_v30  ;;  %v453_v29 = vrot.slane %v411_v25, %v4834_v4 }
 0x185   :  { %v4866_v36 = vpack.c.bf16 %v559_v34, %v559_v34  ;;  %v560_v37 = vsel %vm539_vm2, %v529_v26, %v550_v32  ;;  %vm541_vm4 = vcmp.gt.f32.partialorder %v531_v33, 0.0  ;;  %v552_v38 = vmul.f32 %v4859_v17, %v531_v33 }
 0x186   :  { %v4869_v39 = vpack.c.bf16 %v560_v37, %v560_v37  ;;  %v561_v40 = vsel %vm540_vm3, %v530_v30, %v551_v35  ;;  %v513_v30 = vrot.slane %v475_v27, %v4829_v2  ;;  %v517_v32 = vrot.slane %v475_v27, %v4834_v4 }
 0x187   :  { %v4874_v42 = vpack.c.bf16 %v561_v40, %v561_v40  ;;  %v562_v43 = vsel %vm541_vm4, %v531_v33, %v552_v38 }
 0x188   :  { %v4879_v45 = vpack.c.bf16 %v562_v43, %v562_v43 }
 0x18d   :  { %v321_v52 = vpop.f32.mrb[4].mxu0 }
 0x18e   :  { %v468_v55 = vmul.f32 %v433_v48, %v321_v52  ;;  %v323_v56 = vpop.f32.mrb[5].mxu0 }
 0x18f   :  { %v469_v58 = vmul.f32 %v437_v49, %v323_v56  ;;  %v325_v59 = vpop.f32.mrb[6].mxu0  ;;  %v362_v60 = vpop.f32.mrb[4].mxu1 }
 0x190   :  { %v532_v62 = vadd.f32 %v497_v50, %v468_v55  ;;  %v326_v63 = vpop.f32.mrb[7].mxu0  ;;  %v470_v0 = vmul.f32 %v441_v51, %v362_v60  ;;  %v364_v8 = vpop.f32.mrb[5].mxu1 }
 0x191   :  { %v533_v9 = vadd.f32 %v501_v53, %v469_v58  ;;  %v471_v10 = vmul.f32 %v445_v54, %v364_v8  ;;  %v366_v11 = vpop.f32.mrb[6].mxu1 }
 0x192   :  { %vm542_vm5 = vcmp.gt.f32.partialorder %v532_v62, 0.0  ;;  %v553_v3 = vmul.f32 %v4859_v17, %v532_v62  ;;  %v534_v12 = vadd.f32 %v505_v57, %v470_v0  ;;  %v367_v13 = vpop.f32.mrb[7].mxu1 }
 0x193   :  { %vm543_vm6 = vcmp.gt.f32.partialorder %v533_v9, 0.0  ;;  %v554_v14 = vmul.f32 %v4859_v17, %v533_v9  ;;  %v535_v15 = vadd.f32 %v509_v61, %v471_v10 }
 0x194   :  { %v563_v16 = vsel %vm542_vm5, %v532_v62, %v553_v3  ;;  %vm544_vm7 = vcmp.gt.f32.partialorder %v534_v12, 0.0  ;;  %v555_v6 = vmul.f32 %v4859_v17, %v534_v12 }
 0x195   :  { %v4902_v18 = vpack.c.bf16 %v563_v16, %v563_v16  ;;  %v564_v19 = vsel %vm543_vm6, %v533_v9, %v554_v14  ;;  %vm545_vm8 = vcmp.gt.f32.partialorder %v535_v15, 0.0  ;;  %v556_v20 = vmul.f32 %v4859_v17, %v535_v15 }
 0x196   :  { %v4905_v21 = vpack.c.bf16 %v564_v19, %v564_v19  ;;  %v565_v22 = vsel %vm544_vm7, %v534_v12, %v555_v6 }
 0x197   :  { %v4907_v23 = vpack.c.bf16 %v565_v22, %v565_v22  ;;  %v566_v24 = vsel %vm545_vm8, %v535_v15, %v556_v20 }
 0x198   :  { %v4909_v26 = vpack.c.bf16 %v566_v24, %v566_v24 }
 0x19d   :  { %v403_v31 = vpop.f32.mrb[8].mxu0 }
 0x19e   :  { %v472_v33 = vmul.f32 %v449_v28, %v403_v31  ;;  %v405_v34 = vpop.f32.mrb[9].mxu0 }
 0x19f   :  { %v473_v35 = vmul.f32 %v453_v29, %v405_v34  ;;  %v407_v37 = vpop.f32.mrb[10].mxu0 }
 0x1a0   :  { %v536_v38 = vadd.f32 %v513_v30, %v472_v33  ;;  %v408_v40 = vpop.f32.mrb[11].mxu0 }
 0x1a1   :  { %v537_v43 = vadd.f32 %v517_v32, %v473_v35 }
 0x1a2   :  { %vm546_vm9 = vcmp.gt.f32.partialorder %v536_v38, 0.0  ;;  %v557_v47 = vmul.f32 %v4859_v17, %v536_v38 }
 0x1a3   :  { %vm547_vm10 = vcmp.gt.f32.partialorder %v537_v43, 0.0  ;;  %v558_v48 = vmul.f32 %v4859_v17, %v537_v43 }
 0x1a4   :  { %v567_v49 = vsel %vm546_vm9, %v536_v38, %v557_v47 }
 0x1a5   :  { %v4917_v50 = vpack.c.bf16 %v567_v49, %v567_v49  ;;  %v568_v51 = vsel %vm547_vm10, %v537_v43, %v558_v48 }
 0x1a6   :  { %v4919_v52 = vpack.c.bf16 %v568_v51, %v568_v51 }
 0x1a7   :  { %4610 = dma.done.wait [#allocation8 + $0x1], 35840 }
 0x1a8   :  { %4611 = vsyncadd [#allocation8 + $0x1], 4294931456  ;;  %1455 = vmatprep.mubr.bf16.mxu1 %v4869_v39  ;;  %1660 = vmatprep.mubr.bf16.mxu0 %v4869_v39  ;;  %v584_v53 = vld [vmem:[#allocation3 + $0x8] sm:$0xff]  ;;  %v586_v54 = vld [vmem:[#allocation3 + $0x18] sm:$0xff] }
 0x1a9   :  { %v583_v55 = vld [vmem:[#allocation3] sm:$0xff]  ;;  %v864_v56 = vunpack.c.l.s8.bf16 %v584_v53  ;;  %v871_v57 = vunpack.c.h.s8.bf16 %v584_v53  ;;  %v866_v58 = vunpack.c.l.s8.bf16 %v586_v54  ;;  %v873_v59 = vunpack.c.h.s8.bf16 %v586_v54  ;;  %v585_v17 = vld [vmem:[#allocation3 + $0x10] sm:$0xff]  ;;  %v590_v11 = vld [vmem:[#allocation3 + $0x38] sm:$0xff] }
 0x1aa   :  { %v863_v60 = vunpack.c.l.s8.bf16 %v583_v55  ;;  %v865_v61 = vunpack.c.l.s8.bf16 %v585_v17  ;;  %v591_v62 = vld [vmem:[#allocation3 + $0x40] sm:$0xff]  ;;  %v593_v63 = vld [vmem:[#allocation3 + $0x50] sm:$0xff]  ;;  %v870_v0 = vunpack.c.h.s8.bf16 %v583_v55  ;;  %v872_v8 = vunpack.c.h.s8.bf16 %v585_v17  ;;  %v592_v3 = vld [vmem:[#allocation3 + $0x48] sm:$0xff] }
 0x1ab   :  { %1423 = vmatprep.subr.bf16.mxu1 %v864_v56  ;;  %1628 = vmatprep.subr.bf16.mxu0 %v866_v58  ;;  %v878_v9 = vunpack.c.l.s8.bf16 %v591_v62  ;;  %v880_v10 = vunpack.c.l.s8.bf16 %v593_v63  ;;  %v877_v12 = vunpack.c.l.s8.bf16 %v590_v11  ;;  %v879_v13 = vunpack.c.l.s8.bf16 %v592_v3  ;;  %v598_v16 = vld [vmem:[#allocation3 + $0x78] sm:$0xff]  ;;  %v600_v6 = vld [vmem:[#allocation3 + $0x88] sm:$0xff]  ;;  %v597_v25 = vld [vmem:[#allocation3 + $0x70] sm:$0xff] }
 0x1ac   :  { %1424 = vmatpush1.bf16.msra.mxu1 %v863_v60  ;;  %1629 = vmatpush1.bf16.msra.mxu0 %v865_v61  ;;  %v885_v14 = vunpack.c.h.s8.bf16 %v591_v62  ;;  %v887_v15 = vunpack.c.h.s8.bf16 %v593_v63  ;;  %v884_v19 = vunpack.c.h.s8.bf16 %v590_v11  ;;  %v886_v20 = vunpack.c.h.s8.bf16 %v592_v3  ;;  %v599_v27 = vld [vmem:[#allocation3 + $0x80] sm:$0xff]  ;;  %v605_v32 = vld [vmem:[#allocation3 + $0xb0] sm:$0xff]  ;;  %v604_v40 = vld [vmem:[#allocation3 + $0xa8] sm:$0xff] }
 0x1ad   :  { %1425 = vmatprep.subr.bf16.mxu1 %v871_v57  ;;  %1630 = vmatprep.subr.bf16.mxu0 %v873_v59  ;;  %v892_v22 = vunpack.c.l.s8.bf16 %v598_v16  ;;  %v894_v24 = vunpack.c.l.s8.bf16 %v600_v6  ;;  %v891_v28 = vunpack.c.l.s8.bf16 %v597_v25  ;;  %v893_v29 = vunpack.c.l.s8.bf16 %v599_v27  ;;  %v607_v33 = vld [vmem:[#allocation3 + $0xc0] sm:$0xff]  ;;  %v606_v43 = vld [vmem:[#allocation3 + $0xb8] sm:$0xff]  ;;  %v612_v53 = vld [vmem:[#allocation3 + $0xe8] sm:$0xff] }
 0x1ae   :  { %v899_v30 = vunpack.c.h.s8.bf16 %v598_v16  ;;  %v901_v31 = vunpack.c.h.s8.bf16 %v600_v6  ;;  %v898_v34 = vunpack.c.h.s8.bf16 %v597_v25  ;;  %v900_v35 = vunpack.c.h.s8.bf16 %v599_v27  ;;  %v614_v54 = vld [vmem:[#allocation3 + $0xf8] sm:$0xff]  ;;  %v611_v59 = vld [vmem:[#allocation3 + $0xe0] sm:$0xff]  ;;  %v613_v17 = vld [vmem:[#allocation3 + $0xf0] sm:$0xff] }
 0x1af   :  { %v906_v37 = vunpack.c.l.s8.bf16 %v605_v32  ;;  %v908_v38 = vunpack.c.l.s8.bf16 %v607_v33  ;;  %v905_v47 = vunpack.c.l.s8.bf16 %v604_v40  ;;  %v907_v48 = vunpack.c.l.s8.bf16 %v606_v43 }
 0x1b0   :  { %1426 = vmatpush1.bf16.msra.mxu1 %v870_v0  ;;  %1631 = vmatpush1.bf16.msra.mxu0 %v872_v8  ;;  %v913_v49 = vunpack.c.h.s8.bf16 %v605_v32  ;;  %v915_v51 = vunpack.c.h.s8.bf16 %v607_v33  ;;  %v912_v55 = vunpack.c.h.s8.bf16 %v604_v40  ;;  %v914_v56 = vunpack.c.h.s8.bf16 %v606_v43  ;;  %v619_v0 = vld [vmem:[#allocation3 + $0x120] sm:$0xff]  ;;  %v621_v8 = vld [vmem:[#allocation3 + $0x130] sm:$0xff] }
 0x1b1   :  { %1427 = vmatprep.subr.bf16.mxu1 %v878_v9  ;;  %1632 = vmatprep.subr.bf16.mxu0 %v880_v10  ;;  %v920_v57 = vunpack.c.l.s8.bf16 %v612_v53  ;;  %v922_v58 = vunpack.c.l.s8.bf16 %v614_v54  ;;  %v919_v60 = vunpack.c.l.s8.bf16 %v611_v59  ;;  %v921_v61 = vunpack.c.l.s8.bf16 %v613_v17 }
 0x1b2   :  { %v927_v62 = vunpack.c.h.s8.bf16 %v612_v53  ;;  %v929_v63 = vunpack.c.h.s8.bf16 %v614_v54  ;;  %v926_v9 = vunpack.c.h.s8.bf16 %v611_v59  ;;  %v928_v10 = vunpack.c.h.s8.bf16 %v613_v17 }
 0x1b3   :  { %v934_v11 = vunpack.c.l.s8.bf16 %v619_v0  ;;  %v936_v3 = vunpack.c.l.s8.bf16 %v621_v8  ;;  %v941_v16 = vunpack.c.h.s8.bf16 %v619_v0  ;;  %v943_v6 = vunpack.c.h.s8.bf16 %v621_v8 }
 0x1b4   :  { %1428 = vmatpush1.bf16.msra.mxu1 %v877_v12  ;;  %1633 = vmatpush1.bf16.msra.mxu0 %v879_v13  ;;  %v618_v12 = vld [vmem:[#allocation3 + $0x118] sm:$0xff]  ;;  %v620_v13 = vld [vmem:[#allocation3 + $0x128] sm:$0xff] }
 0x1b5   :  { %1429 = vmatprep.subr.bf16.mxu1 %v885_v14  ;;  %1634 = vmatprep.subr.bf16.mxu0 %v887_v15  ;;  %v933_v14 = vunpack.c.l.s8.bf16 %v618_v12  ;;  %v935_v15 = vunpack.c.l.s8.bf16 %v620_v13 }
 0x1b8   :  { %1430 = vmatpush1.bf16.msra.mxu1 %v884_v19  ;;  %1635 = vmatpush1.bf16.msra.mxu0 %v886_v20  ;;  %v626_v19 = vld [vmem:[#allocation3 + $0x158] sm:$0xff]  ;;  %v628_v20 = vld [vmem:[#allocation3 + $0x168] sm:$0xff] }
 0x1b9   :  { %1431 = vmatprep.subr.bf16.mxu1 %v892_v22  ;;  %1636 = vmatprep.subr.bf16.mxu0 %v894_v24  ;;  %v940_v22 = vunpack.c.h.s8.bf16 %v618_v12  ;;  %v942_v24 = vunpack.c.h.s8.bf16 %v620_v13  ;;  %v948_v25 = vunpack.c.l.s8.bf16 %v626_v19  ;;  %v950_v27 = vunpack.c.l.s8.bf16 %v628_v20 }
 0x1ba   :  { %v955_v32 = vunpack.c.h.s8.bf16 %v626_v19  ;;  %v957_v33 = vunpack.c.h.s8.bf16 %v628_v20 }
 0x1bc   :  { %1432 = vmatpush1.bf16.msra.mxu1 %v891_v28  ;;  %1637 = vmatpush1.bf16.msra.mxu0 %v893_v29  ;;  %v625_v28 = vld [vmem:[#allocation3 + $0x150] sm:$0xff]  ;;  %v627_v29 = vld [vmem:[#allocation3 + $0x160] sm:$0xff] }
 0x1bd   :  { %1433 = vmatprep.subr.bf16.mxu1 %v899_v30  ;;  %1638 = vmatprep.subr.bf16.mxu0 %v901_v31  ;;  %v947_v30 = vunpack.c.l.s8.bf16 %v625_v28  ;;  %v949_v31 = vunpack.c.l.s8.bf16 %v627_v29 }
 0x1c0   :  { %1434 = vmatpush1.bf16.msra.mxu1 %v898_v34  ;;  %1639 = vmatpush1.bf16.msra.mxu0 %v900_v35  ;;  %v633_v34 = vld [vmem:[#allocation3 + $0x190] sm:$0xff]  ;;  %v635_v35 = vld [vmem:[#allocation3 + $0x1a0] sm:$0xff] }
 0x1c1   :  { %1435 = vmatprep.subr.bf16.mxu1 %v906_v37  ;;  %1640 = vmatprep.subr.bf16.mxu0 %v908_v38  ;;  %v954_v37 = vunpack.c.h.s8.bf16 %v625_v28  ;;  %v956_v38 = vunpack.c.h.s8.bf16 %v627_v29  ;;  %v962_v40 = vunpack.c.l.s8.bf16 %v633_v34  ;;  %v964_v43 = vunpack.c.l.s8.bf16 %v635_v35 }
 0x1c2   :  { %v969_v53 = vunpack.c.h.s8.bf16 %v633_v34  ;;  %v971_v54 = vunpack.c.h.s8.bf16 %v635_v35 }
 0x1c4   :  { %1436 = vmatpush1.bf16.msra.mxu1 %v905_v47  ;;  %1641 = vmatpush1.bf16.msra.mxu0 %v907_v48  ;;  %v632_v47 = vld [vmem:[#allocation3 + $0x188] sm:$0xff]  ;;  %v634_v48 = vld [vmem:[#allocation3 + $0x198] sm:$0xff] }
 0x1c5   :  { %1437 = vmatprep.subr.bf16.mxu1 %v913_v49  ;;  %1642 = vmatprep.subr.bf16.mxu0 %v915_v51  ;;  %v961_v49 = vunpack.c.l.s8.bf16 %v632_v47  ;;  %v963_v51 = vunpack.c.l.s8.bf16 %v634_v48 }
 0x1c8   :  { %1438 = vmatpush1.bf16.msra.mxu1 %v912_v55  ;;  %1643 = vmatpush1.bf16.msra.mxu0 %v914_v56  ;;  %v640_v55 = vld [vmem:[#allocation3 + $0x1c8] sm:$0xff]  ;;  %v642_v56 = vld [vmem:[#allocation3 + $0x1d8] sm:$0xff] }
 0x1c9   :  { %1439 = vmatprep.subr.bf16.mxu1 %v920_v57  ;;  %1644 = vmatprep.subr.bf16.mxu0 %v922_v58  ;;  %v968_v57 = vunpack.c.h.s8.bf16 %v632_v47  ;;  %v970_v58 = vunpack.c.h.s8.bf16 %v634_v48  ;;  %v976_v59 = vunpack.c.l.s8.bf16 %v640_v55  ;;  %v978_v17 = vunpack.c.l.s8.bf16 %v642_v56 }
 0x1ca   :  { %v983_v0 = vunpack.c.h.s8.bf16 %v640_v55  ;;  %v985_v8 = vunpack.c.h.s8.bf16 %v642_v56 }
 0x1cc   :  { %1440 = vmatpush1.bf16.msra.mxu1 %v919_v60  ;;  %1645 = vmatpush1.bf16.msra.mxu0 %v921_v61  ;;  %v639_v60 = vld [vmem:[#allocation3 + $0x1c0] sm:$0xff]  ;;  %v641_v61 = vld [vmem:[#allocation3 + $0x1d0] sm:$0xff] }
 0x1cd   :  { %1441 = vmatprep.subr.bf16.mxu1 %v927_v62  ;;  %1646 = vmatprep.subr.bf16.mxu0 %v929_v63  ;;  %v975_v62 = vunpack.c.l.s8.bf16 %v639_v60  ;;  %v977_v63 = vunpack.c.l.s8.bf16 %v641_v61 }
 0x1d0   :  { %1442 = vmatpush1.bf16.msra.mxu1 %v926_v9  ;;  %1647 = vmatpush1.bf16.msra.mxu0 %v928_v10  ;;  %v647_v9 = vld [vmem:[#allocation3 + $0x200] sm:$0xff]  ;;  %v649_v10 = vld [vmem:[#allocation3 + $0x210] sm:$0xff] }
 0x1d1   :  { %1443 = vmatprep.subr.bf16.mxu1 %v934_v11  ;;  %1648 = vmatprep.subr.bf16.mxu0 %v936_v3  ;;  %v982_v11 = vunpack.c.h.s8.bf16 %v639_v60  ;;  %v984_v3 = vunpack.c.h.s8.bf16 %v641_v61  ;;  %v990_v12 = vunpack.c.l.s8.bf16 %v647_v9  ;;  %v992_v13 = vunpack.c.l.s8.bf16 %v649_v10 }
 0x1d2   :  { %v997_v19 = vunpack.c.h.s8.bf16 %v647_v9  ;;  %v999_v20 = vunpack.c.h.s8.bf16 %v649_v10 }
 0x1d4   :  { %1444 = vmatpush1.bf16.msra.mxu1 %v933_v14  ;;  %1649 = vmatpush1.bf16.msra.mxu0 %v935_v15  ;;  %v646_v14 = vld [vmem:[#allocation3 + $0x1f8] sm:$0xff]  ;;  %v648_v15 = vld [vmem:[#allocation3 + $0x208] sm:$0xff] }
 0x1d5   :  { %1445 = vmatprep.subr.bf16.mxu1 %v941_v16  ;;  %1650 = vmatprep.subr.bf16.mxu0 %v943_v6  ;;  %v989_v16 = vunpack.c.l.s8.bf16 %v646_v14  ;;  %v991_v6 = vunpack.c.l.s8.bf16 %v648_v15 }
 0x1d8   :  { %1446 = vmatpush1.bf16.msra.mxu1 %v940_v22  ;;  %1651 = vmatpush1.bf16.msra.mxu0 %v942_v24  ;;  %v654_v22 = vld [vmem:[#allocation3 + $0x238] sm:$0xff]  ;;  %v656_v24 = vld [vmem:[#allocation3 + $0x248] sm:$0xff] }
 0x1d9   :  { %1447 = vmatprep.subr.bf16.mxu1 %v948_v25  ;;  %1652 = vmatprep.subr.bf16.mxu0 %v950_v27  ;;  %v996_v25 = vunpack.c.h.s8.bf16 %v646_v14  ;;  %v998_v27 = vunpack.c.h.s8.bf16 %v648_v15  ;;  %v1004_v28 = vunpack.c.l.s8.bf16 %v654_v22  ;;  %v1006_v29 = vunpack.c.l.s8.bf16 %v656_v24 }
 0x1da   :  { %v1011_v34 = vunpack.c.h.s8.bf16 %v654_v22  ;;  %v1013_v35 = vunpack.c.h.s8.bf16 %v656_v24 }
 0x1dc   :  { %1448 = vmatpush1.bf16.msra.mxu1 %v947_v30  ;;  %1653 = vmatpush1.bf16.msra.mxu0 %v949_v31  ;;  %v653_v30 = vld [vmem:[#allocation3 + $0x230] sm:$0xff]  ;;  %v655_v31 = vld [vmem:[#allocation3 + $0x240] sm:$0xff] }
 0x1dd   :  { %1449 = vmatprep.subr.bf16.mxu1 %v955_v32  ;;  %1654 = vmatprep.subr.bf16.mxu0 %v957_v33  ;;  %v1003_v32 = vunpack.c.l.s8.bf16 %v653_v30  ;;  %v1005_v33 = vunpack.c.l.s8.bf16 %v655_v31 }
 0x1e0   :  { %1450 = vmatpush1.bf16.msra.mxu1 %v954_v37  ;;  %1655 = vmatpush1.bf16.msra.mxu0 %v956_v38  ;;  %v661_v37 = vld [vmem:[#allocation3 + $0x270] sm:$0xff]  ;;  %v663_v38 = vld [vmem:[#allocation3 + $0x280] sm:$0xff] }
 0x1e1   :  { %1451 = vmatprep.subr.bf16.mxu1 %v962_v40  ;;  %1656 = vmatprep.subr.bf16.mxu0 %v964_v43  ;;  %v1010_v40 = vunpack.c.h.s8.bf16 %v653_v30  ;;  %v1012_v43 = vunpack.c.h.s8.bf16 %v655_v31  ;;  %v1018_v47 = vunpack.c.l.s8.bf16 %v661_v37  ;;  %v1020_v48 = vunpack.c.l.s8.bf16 %v663_v38 }
 0x1e2   :  { %v1025_v55 = vunpack.c.h.s8.bf16 %v661_v37  ;;  %v1027_v56 = vunpack.c.h.s8.bf16 %v663_v38 }
 0x1e4   :  { %1452 = vmatpush1.bf16.msra.mxu1 %v961_v49  ;;  %1657 = vmatpush1.bf16.msra.mxu0 %v963_v51  ;;  %v660_v49 = vld [vmem:[#allocation3 + $0x268] sm:$0xff]  ;;  %v662_v51 = vld [vmem:[#allocation3 + $0x278] sm:$0xff] }
 0x1e5   :  { %1453 = vmatprep.subr.bf16.mxu1 %v969_v53  ;;  %1658 = vmatprep.subr.bf16.mxu0 %v971_v54  ;;  %v1017_v53 = vunpack.c.l.s8.bf16 %v660_v49  ;;  %v1019_v54 = vunpack.c.l.s8.bf16 %v662_v51 }
 0x1e8   :  { %1454 = vmatpush1.bf16.msra.mxu1 %v968_v57  ;;  %1659 = vmatpush1.bf16.msra.mxu0 %v970_v58  ;;  %v668_v57 = vld [vmem:[#allocation3 + $0x2a8] sm:$0xff]  ;;  %v670_v58 = vld [vmem:[#allocation3 + $0x2b8] sm:$0xff] }
 0x1e9   :  { %1464 = vmatprep.subr.bf16.mxu1 %v976_v59  ;;  %1669 = vmatprep.subr.bf16.mxu0 %v978_v17  ;;  %v1024_v59 = vunpack.c.h.s8.bf16 %v660_v49  ;;  %v1026_v17 = vunpack.c.h.s8.bf16 %v662_v51  ;;  %v1032_v60 = vunpack.c.l.s8.bf16 %v668_v57  ;;  %v1034_v61 = vunpack.c.l.s8.bf16 %v670_v58 }
 0x1ea   :  { %v1039_v9 = vunpack.c.h.s8.bf16 %v668_v57  ;;  %v1041_v10 = vunpack.c.h.s8.bf16 %v670_v58 }
 0x1eb   :  { %1456 = vmatmul.mubr.bf16.vlgmr.msra.gmra.mrb[8].mxu1 %v4866_v36  ;;  %1661 = vmatmul.mubr.bf16.vlgmr.msra.gmra.mrb[12].mxu0 %v4866_v36 }
 0x1ec   :  { %1465 = vmatpush1.bf16.msra.mxu1 %v975_v62  ;;  %1670 = vmatpush1.bf16.msra.mxu0 %v977_v63  ;;  %v667_v62 = vld [vmem:[#allocation3 + $0x2a0] sm:$0xff]  ;;  %v669_v63 = vld [vmem:[#allocation3 + $0x2b0] sm:$0xff] }
 0x1ed   :  { %1466 = vmatprep.subr.bf16.mxu1 %v983_v0  ;;  %1671 = vmatprep.subr.bf16.mxu0 %v985_v8  ;;  %v1031_v0 = vunpack.c.l.s8.bf16 %v667_v62  ;;  %v1033_v8 = vunpack.c.l.s8.bf16 %v669_v63 }
 0x1ee   :  { %1496 = vmatprep.mubr.bf16.mxu1 %v4879_v45  ;;  %1701 = vmatprep.mubr.bf16.mxu0 %v4879_v45 }
 0x1f0   :  { %1467 = vmatpush1.bf16.msra.mxu1 %v982_v11  ;;  %1672 = vmatpush1.bf16.msra.mxu0 %v984_v3  ;;  %v675_v11 = vld [vmem:[#allocation3 + $0x2e0] sm:$0xff]  ;;  %v677_v3 = vld [vmem:[#allocation3 + $0x2f0] sm:$0xff] }
 0x1f1   :  { %1468 = vmatprep.subr.bf16.mxu1 %v990_v12  ;;  %1673 = vmatprep.subr.bf16.mxu0 %v992_v13  ;;  %v1038_v12 = vunpack.c.h.s8.bf16 %v667_v62  ;;  %v1040_v13 = vunpack.c.h.s8.bf16 %v669_v63  ;;  %v1046_v14 = vunpack.c.l.s8.bf16 %v675_v11  ;;  %v1048_v15 = vunpack.c.l.s8.bf16 %v677_v3 }
 0x1f2   :  { %v1053_v22 = vunpack.c.h.s8.bf16 %v675_v11  ;;  %v1055_v24 = vunpack.c.h.s8.bf16 %v677_v3 }
 0x1f4   :  { %1469 = vmatpush1.bf16.msra.mxu1 %v989_v16  ;;  %1674 = vmatpush1.bf16.msra.mxu0 %v991_v6  ;;  %v674_v16 = vld [vmem:[#allocation3 + $0x2d8] sm:$0xff]  ;;  %v676_v6 = vld [vmem:[#allocation3 + $0x2e8] sm:$0xff] }
 0x1f5   :  { %1470 = vmatprep.subr.bf16.mxu1 %v997_v19  ;;  %1675 = vmatprep.subr.bf16.mxu0 %v999_v20  ;;  %v1045_v19 = vunpack.c.l.s8.bf16 %v674_v16  ;;  %v1047_v20 = vunpack.c.l.s8.bf16 %v676_v6 }
 0x1f8   :  { %1471 = vmatpush1.bf16.msra.mxu1 %v996_v25  ;;  %1676 = vmatpush1.bf16.msra.mxu0 %v998_v27  ;;  %v682_v25 = vld [vmem:[#allocation3 + $0x318] sm:$0xff]  ;;  %v684_v27 = vld [vmem:[#allocation3 + $0x328] sm:$0xff] }
 0x1f9   :  { %1472 = vmatprep.subr.bf16.mxu1 %v1004_v28  ;;  %1677 = vmatprep.subr.bf16.mxu0 %v1006_v29  ;;  %v1052_v28 = vunpack.c.h.s8.bf16 %v674_v16  ;;  %v1054_v29 = vunpack.c.h.s8.bf16 %v676_v6  ;;  %v1060_v30 = vunpack.c.l.s8.bf16 %v682_v25  ;;  %v1062_v31 = vunpack.c.l.s8.bf16 %v684_v27 }
 0x1fa   :  { %v1067_v37 = vunpack.c.h.s8.bf16 %v682_v25  ;;  %v1069_v38 = vunpack.c.h.s8.bf16 %v684_v27 }
 0x1fc   :  { %1473 = vmatpush1.bf16.msra.mxu1 %v1003_v32  ;;  %1678 = vmatpush1.bf16.msra.mxu0 %v1005_v33  ;;  %v681_v32 = vld [vmem:[#allocation3 + $0x310] sm:$0xff]  ;;  %v683_v33 = vld [vmem:[#allocation3 + $0x320] sm:$0xff] }
 0x1fd   :  { %1474 = vmatprep.subr.bf16.mxu1 %v1011_v34  ;;  %1679 = vmatprep.subr.bf16.mxu0 %v1013_v35  ;;  %v1059_v34 = vunpack.c.l.s8.bf16 %v681_v32  ;;  %v1061_v35 = vunpack.c.l.s8.bf16 %v683_v33 }
 0x200   :  { %1475 = vmatpush1.bf16.msra.mxu1 %v1010_v40  ;;  %1680 = vmatpush1.bf16.msra.mxu0 %v1012_v43  ;;  %v689_v40 = vld [vmem:[#allocation3 + $0x350] sm:$0xff]  ;;  %v691_v43 = vld [vmem:[#allocation3 + $0x360] sm:$0xff] }
 0x201   :  { %1476 = vmatprep.subr.bf16.mxu1 %v1018_v47  ;;  %1681 = vmatprep.subr.bf16.mxu0 %v1020_v48  ;;  %v1066_v47 = vunpack.c.h.s8.bf16 %v681_v32  ;;  %v1068_v48 = vunpack.c.h.s8.bf16 %v683_v33  ;;  %v1074_v49 = vunpack.c.l.s8.bf16 %v689_v40  ;;  %v1076_v51 = vunpack.c.l.s8.bf16 %v691_v43 }
 0x202   :  { %v1081_v57 = vunpack.c.h.s8.bf16 %v689_v40  ;;  %v1083_v58 = vunpack.c.h.s8.bf16 %v691_v43 }
 0x204   :  { %1477 = vmatpush1.bf16.msra.mxu1 %v1017_v53  ;;  %1682 = vmatpush1.bf16.msra.mxu0 %v1019_v54  ;;  %v688_v53 = vld [vmem:[#allocation3 + $0x348] sm:$0xff]  ;;  %v690_v54 = vld [vmem:[#allocation3 + $0x358] sm:$0xff] }
 0x205   :  { %1478 = vmatprep.subr.bf16.mxu1 %v1025_v55  ;;  %1683 = vmatprep.subr.bf16.mxu0 %v1027_v56  ;;  %v1073_v55 = vunpack.c.l.s8.bf16 %v688_v53  ;;  %v1075_v56 = vunpack.c.l.s8.bf16 %v690_v54 }
 0x208   :  { %1479 = vmatpush1.bf16.msra.mxu1 %v1024_v59  ;;  %1684 = vmatpush1.bf16.msra.mxu0 %v1026_v17  ;;  %v696_v59 = vld [vmem:[#allocation3 + $0x388] sm:$0xff]  ;;  %v698_v17 = vld [vmem:[#allocation3 + $0x398] sm:$0xff] }
 0x209   :  { %1480 = vmatprep.subr.bf16.mxu1 %v1032_v60  ;;  %1685 = vmatprep.subr.bf16.mxu0 %v1034_v61  ;;  %v1080_v60 = vunpack.c.h.s8.bf16 %v688_v53  ;;  %v1082_v61 = vunpack.c.h.s8.bf16 %v690_v54  ;;  %v1088_v62 = vunpack.c.l.s8.bf16 %v696_v59  ;;  %v1090_v63 = vunpack.c.l.s8.bf16 %v698_v17 }
 0x20a   :  { %v1095_v11 = vunpack.c.h.s8.bf16 %v696_v59  ;;  %v1097_v3 = vunpack.c.h.s8.bf16 %v698_v17 }
 0x20c   :  { %1481 = vmatpush1.bf16.msra.mxu1 %v1031_v0  ;;  %1686 = vmatpush1.bf16.msra.mxu0 %v1033_v8  ;;  %v695_v0 = vld [vmem:[#allocation3 + $0x380] sm:$0xff]  ;;  %v697_v8 = vld [vmem:[#allocation3 + $0x390] sm:$0xff] }
 0x20d   :  { %1482 = vmatprep.subr.bf16.mxu1 %v1039_v9  ;;  %1687 = vmatprep.subr.bf16.mxu0 %v1041_v10  ;;  %v1087_v9 = vunpack.c.l.s8.bf16 %v695_v0  ;;  %v1089_v10 = vunpack.c.l.s8.bf16 %v697_v8 }
 0x210   :  { %1483 = vmatpush1.bf16.msra.mxu1 %v1038_v12  ;;  %1688 = vmatpush1.bf16.msra.mxu0 %v1040_v13  ;;  %v703_v12 = vld [vmem:[#allocation3 + $0x3c0] sm:$0xff]  ;;  %v705_v13 = vld [vmem:[#allocation3 + $0x3d0] sm:$0xff] }
 0x211   :  { %1484 = vmatprep.subr.bf16.mxu1 %v1046_v14  ;;  %1689 = vmatprep.subr.bf16.mxu0 %v1048_v15  ;;  %v1094_v14 = vunpack.c.h.s8.bf16 %v695_v0  ;;  %v1096_v15 = vunpack.c.h.s8.bf16 %v697_v8  ;;  %v1102_v16 = vunpack.c.l.s8.bf16 %v703_v12  ;;  %v1104_v6 = vunpack.c.l.s8.bf16 %v705_v13 }
 0x212   :  { %v1109_v25 = vunpack.c.h.s8.bf16 %v703_v12  ;;  %v1111_v27 = vunpack.c.h.s8.bf16 %v705_v13 }
 0x214   :  { %1485 = vmatpush1.bf16.msra.mxu1 %v1045_v19  ;;  %1690 = vmatpush1.bf16.msra.mxu0 %v1047_v20  ;;  %v702_v19 = vld [vmem:[#allocation3 + $0x3b8] sm:$0xff]  ;;  %v704_v20 = vld [vmem:[#allocation3 + $0x3c8] sm:$0xff] }
 0x215   :  { %1486 = vmatprep.subr.bf16.mxu1 %v1053_v22  ;;  %1691 = vmatprep.subr.bf16.mxu0 %v1055_v24  ;;  %v1101_v22 = vunpack.c.l.s8.bf16 %v702_v19  ;;  %v1103_v24 = vunpack.c.l.s8.bf16 %v704_v20 }
 0x218   :  { %1487 = vmatpush1.bf16.msra.mxu1 %v1052_v28  ;;  %1692 = vmatpush1.bf16.msra.mxu0 %v1054_v29  ;;  %v710_v28 = vld [vmem:[#allocation3 + $0x3f8] sm:$0xff]  ;;  %v712_v29 = vld [vmem:[#allocation3 + $0x408] sm:$0xff] }
 0x219   :  { %1488 = vmatprep.subr.bf16.mxu1 %v1060_v30  ;;  %1693 = vmatprep.subr.bf16.mxu0 %v1062_v31  ;;  %v1108_v30 = vunpack.c.h.s8.bf16 %v702_v19  ;;  %v1110_v31 = vunpack.c.h.s8.bf16 %v704_v20  ;;  %v1116_v32 = vunpack.c.l.s8.bf16 %v710_v28  ;;  %v1118_v33 = vunpack.c.l.s8.bf16 %v712_v29 }
 0x21a   :  { %v1123_v40 = vunpack.c.h.s8.bf16 %v710_v28  ;;  %v1125_v43 = vunpack.c.h.s8.bf16 %v712_v29 }
 0x21c   :  { %1489 = vmatpush1.bf16.msra.mxu1 %v1059_v34  ;;  %1694 = vmatpush1.bf16.msra.mxu0 %v1061_v35  ;;  %v709_v34 = vld [vmem:[#allocation3 + $0x3f0] sm:$0xff]  ;;  %v711_v35 = vld [vmem:[#allocation3 + $0x400] sm:$0xff] }
 0x21d   :  { %1490 = vmatprep.subr.bf16.mxu1 %v1067_v37  ;;  %1695 = vmatprep.subr.bf16.mxu0 %v1069_v38  ;;  %v1115_v37 = vunpack.c.l.s8.bf16 %v709_v34  ;;  %v1117_v38 = vunpack.c.l.s8.bf16 %v711_v35 }
 0x220   :  { %1491 = vmatpush1.bf16.msra.mxu1 %v1066_v47  ;;  %1696 = vmatpush1.bf16.msra.mxu0 %v1068_v48  ;;  %v717_v47 = vld [vmem:[#allocation3 + $0x430] sm:$0xff]  ;;  %v719_v48 = vld [vmem:[#allocation3 + $0x440] sm:$0xff] }
 0x221   :  { %1492 = vmatprep.subr.bf16.mxu1 %v1074_v49  ;;  %1697 = vmatprep.subr.bf16.mxu0 %v1076_v51  ;;  %v1122_v49 = vunpack.c.h.s8.bf16 %v709_v34  ;;  %v1124_v51 = vunpack.c.h.s8.bf16 %v711_v35  ;;  %v1130_v53 = vunpack.c.l.s8.bf16 %v717_v47  ;;  %v1132_v54 = vunpack.c.l.s8.bf16 %v719_v48 }
 0x222   :  { %v1137_v59 = vunpack.c.h.s8.bf16 %v717_v47  ;;  %v1139_v17 = vunpack.c.h.s8.bf16 %v719_v48 }
 0x224   :  { %1493 = vmatpush1.bf16.msra.mxu1 %v1073_v55  ;;  %1698 = vmatpush1.bf16.msra.mxu0 %v1075_v56  ;;  %v716_v55 = vld [vmem:[#allocation3 + $0x428] sm:$0xff]  ;;  %v718_v56 = vld [vmem:[#allocation3 + $0x438] sm:$0xff] }
 0x225   :  { %1494 = vmatprep.subr.bf16.mxu1 %v1081_v57  ;;  %1699 = vmatprep.subr.bf16.mxu0 %v1083_v58  ;;  %v1129_v57 = vunpack.c.l.s8.bf16 %v716_v55  ;;  %v1131_v58 = vunpack.c.l.s8.bf16 %v718_v56 }
 0x228   :  { %1495 = vmatpush1.bf16.msra.mxu1 %v1080_v60  ;;  %1700 = vmatpush1.bf16.msra.mxu0 %v1082_v61  ;;  %v724_v60 = vld [vmem:[#allocation3 + $0x468] sm:$0xff]  ;;  %v726_v61 = vld [vmem:[#allocation3 + $0x478] sm:$0xff] }
 0x229   :  { %1505 = vmatprep.subr.bf16.mxu1 %v1088_v62  ;;  %1710 = vmatprep.subr.bf16.mxu0 %v1090_v63  ;;  %v1136_v62 = vunpack.c.h.s8.bf16 %v716_v55  ;;  %v1138_v63 = vunpack.c.h.s8.bf16 %v718_v56  ;;  %v1144_v0 = vunpack.c.l.s8.bf16 %v724_v60  ;;  %v1146_v8 = vunpack.c.l.s8.bf16 %v726_v61 }
 0x22a   :  { %v1151_v12 = vunpack.c.h.s8.bf16 %v724_v60  ;;  %v1153_v13 = vunpack.c.h.s8.bf16 %v726_v61 }
 0x22b   :  { %1497 = vmatmul.mubr.bf16.vlgmr.msra.gmra.mrb[8].mxu1 %v4874_v42  ;;  %1702 = vmatmul.mubr.bf16.vlgmr.msra.gmra.mrb[12].mxu0 %v4874_v42 }
 0x22c   :  { %1506 = vmatpush1.bf16.msra.mxu1 %v1087_v9  ;;  %1711 = vmatpush1.bf16.msra.mxu0 %v1089_v10  ;;  %v723_v9 = vld [vmem:[#allocation3 + $0x460] sm:$0xff]  ;;  %v725_v10 = vld [vmem:[#allocation3 + $0x470] sm:$0xff] }
 0x22d   :  { %1507 = vmatprep.subr.bf16.mxu1 %v1095_v11  ;;  %1712 = vmatprep.subr.bf16.mxu0 %v1097_v3  ;;  %v1143_v11 = vunpack.c.l.s8.bf16 %v723_v9  ;;  %v1145_v3 = vunpack.c.l.s8.bf16 %v725_v10 }
 0x22e   :  { %1537 = vmatprep.mubr.bf16.mxu1 %v4905_v21  ;;  %1742 = vmatprep.mubr.bf16.mxu0 %v4905_v21 }
 0x230   :  { %1508 = vmatpush1.bf16.msra.mxu1 %v1094_v14  ;;  %1713 = vmatpush1.bf16.msra.mxu0 %v1096_v15  ;;  %v731_v14 = vld [vmem:[#allocation3 + $0x4a0] sm:$0xff]  ;;  %v733_v15 = vld [vmem:[#allocation3 + $0x4b0] sm:$0xff] }
 0x231   :  { %1509 = vmatprep.subr.bf16.mxu1 %v1102_v16  ;;  %1714 = vmatprep.subr.bf16.mxu0 %v1104_v6  ;;  %v1150_v16 = vunpack.c.h.s8.bf16 %v723_v9  ;;  %v1152_v6 = vunpack.c.h.s8.bf16 %v725_v10  ;;  %v1158_v19 = vunpack.c.l.s8.bf16 %v731_v14  ;;  %v1160_v20 = vunpack.c.l.s8.bf16 %v733_v15 }
 0x232   :  { %v1165_v28 = vunpack.c.h.s8.bf16 %v731_v14  ;;  %v1167_v29 = vunpack.c.h.s8.bf16 %v733_v15 }
 0x234   :  { %1510 = vmatpush1.bf16.msra.mxu1 %v1101_v22  ;;  %1715 = vmatpush1.bf16.msra.mxu0 %v1103_v24  ;;  %v730_v22 = vld [vmem:[#allocation3 + $0x498] sm:$0xff]  ;;  %v732_v24 = vld [vmem:[#allocation3 + $0x4a8] sm:$0xff] }
 0x235   :  { %1511 = vmatprep.subr.bf16.mxu1 %v1109_v25  ;;  %1716 = vmatprep.subr.bf16.mxu0 %v1111_v27  ;;  %v1157_v25 = vunpack.c.l.s8.bf16 %v730_v22  ;;  %v1159_v27 = vunpack.c.l.s8.bf16 %v732_v24 }
 0x238   :  { %1512 = vmatpush1.bf16.msra.mxu1 %v1108_v30  ;;  %1717 = vmatpush1.bf16.msra.mxu0 %v1110_v31  ;;  %v738_v30 = vld [vmem:[#allocation3 + $0x4d8] sm:$0xff]  ;;  %v740_v31 = vld [vmem:[#allocation3 + $0x4e8] sm:$0xff] }
 0x239   :  { %1513 = vmatprep.subr.bf16.mxu1 %v1116_v32  ;;  %1718 = vmatprep.subr.bf16.mxu0 %v1118_v33  ;;  %v1164_v32 = vunpack.c.h.s8.bf16 %v730_v22  ;;  %v1166_v33 = vunpack.c.h.s8.bf16 %v732_v24  ;;  %v1172_v34 = vunpack.c.l.s8.bf16 %v738_v30  ;;  %v1174_v35 = vunpack.c.l.s8.bf16 %v740_v31 }
 0x23a   :  { %v1179_v47 = vunpack.c.h.s8.bf16 %v738_v30  ;;  %v1181_v48 = vunpack.c.h.s8.bf16 %v740_v31 }
 0x23c   :  { %1514 = vmatpush1.bf16.msra.mxu1 %v1115_v37  ;;  %1719 = vmatpush1.bf16.msra.mxu0 %v1117_v38  ;;  %v737_v37 = vld [vmem:[#allocation3 + $0x4d0] sm:$0xff]  ;;  %v739_v38 = vld [vmem:[#allocation3 + $0x4e0] sm:$0xff] }
 0x23d   :  { %1515 = vmatprep.subr.bf16.mxu1 %v1123_v40  ;;  %1720 = vmatprep.subr.bf16.mxu0 %v1125_v43  ;;  %v1171_v40 = vunpack.c.l.s8.bf16 %v737_v37  ;;  %v1173_v43 = vunpack.c.l.s8.bf16 %v739_v38 }
 0x240   :  { %1516 = vmatpush1.bf16.msra.mxu1 %v1122_v49  ;;  %1721 = vmatpush1.bf16.msra.mxu0 %v1124_v51  ;;  %v745_v49 = vld [vmem:[#allocation3 + $0x510] sm:$0xff]  ;;  %v747_v51 = vld [vmem:[#allocation3 + $0x520] sm:$0xff] }
 0x241   :  { %1517 = vmatprep.subr.bf16.mxu1 %v1130_v53  ;;  %1722 = vmatprep.subr.bf16.mxu0 %v1132_v54  ;;  %v1178_v53 = vunpack.c.h.s8.bf16 %v737_v37  ;;  %v1180_v54 = vunpack.c.h.s8.bf16 %v739_v38  ;;  %v1186_v55 = vunpack.c.l.s8.bf16 %v745_v49  ;;  %v1188_v56 = vunpack.c.l.s8.bf16 %v747_v51 }
 0x242   :  { %v1193_v60 = vunpack.c.h.s8.bf16 %v745_v49  ;;  %v1195_v61 = vunpack.c.h.s8.bf16 %v747_v51 }
 0x244   :  { %1518 = vmatpush1.bf16.msra.mxu1 %v1129_v57  ;;  %1723 = vmatpush1.bf16.msra.mxu0 %v1131_v58  ;;  %v744_v57 = vld [vmem:[#allocation3 + $0x508] sm:$0xff]  ;;  %v746_v58 = vld [vmem:[#allocation3 + $0x518] sm:$0xff] }
 0x245   :  { %1519 = vmatprep.subr.bf16.mxu1 %v1137_v59  ;;  %1724 = vmatprep.subr.bf16.mxu0 %v1139_v17  ;;  %v1185_v59 = vunpack.c.l.s8.bf16 %v744_v57  ;;  %v1187_v17 = vunpack.c.l.s8.bf16 %v746_v58 }
 0x248   :  { %1520 = vmatpush1.bf16.msra.mxu1 %v1136_v62  ;;  %1725 = vmatpush1.bf16.msra.mxu0 %v1138_v63  ;;  %v752_v62 = vld [vmem:[#allocation3 + $0x548] sm:$0xff]  ;;  %v754_v63 = vld [vmem:[#allocation3 + $0x558] sm:$0xff] }
 0x249   :  { %1521 = vmatprep.subr.bf16.mxu1 %v1144_v0  ;;  %1726 = vmatprep.subr.bf16.mxu0 %v1146_v8  ;;  %v1192_v0 = vunpack.c.h.s8.bf16 %v744_v57  ;;  %v1194_v8 = vunpack.c.h.s8.bf16 %v746_v58  ;;  %v1200_v9 = vunpack.c.l.s8.bf16 %v752_v62  ;;  %v1202_v10 = vunpack.c.l.s8.bf16 %v754_v63 }
 0x24a   :  { %v1207_v14 = vunpack.c.h.s8.bf16 %v752_v62  ;;  %v1209_v15 = vunpack.c.h.s8.bf16 %v754_v63 }
 0x24c   :  { %1522 = vmatpush1.bf16.msra.mxu1 %v1143_v11  ;;  %1727 = vmatpush1.bf16.msra.mxu0 %v1145_v3  ;;  %v751_v11 = vld [vmem:[#allocation3 + $0x540] sm:$0xff]  ;;  %v753_v3 = vld [vmem:[#allocation3 + $0x550] sm:$0xff] }
 0x24d   :  { %1523 = vmatprep.subr.bf16.mxu1 %v1151_v12  ;;  %1728 = vmatprep.subr.bf16.mxu0 %v1153_v13  ;;  %v1199_v12 = vunpack.c.l.s8.bf16 %v751_v11  ;;  %v1201_v13 = vunpack.c.l.s8.bf16 %v753_v3 }
 0x250   :  { %1524 = vmatpush1.bf16.msra.mxu1 %v1150_v16  ;;  %1729 = vmatpush1.bf16.msra.mxu0 %v1152_v6  ;;  %v759_v16 = vld [vmem:[#allocation3 + $0x580] sm:$0xff]  ;;  %v761_v6 = vld [vmem:[#allocation3 + $0x590] sm:$0xff] }
 0x251   :  { %1525 = vmatprep.subr.bf16.mxu1 %v1158_v19  ;;  %1730 = vmatprep.subr.bf16.mxu0 %v1160_v20  ;;  %v1206_v19 = vunpack.c.h.s8.bf16 %v751_v11  ;;  %v1208_v20 = vunpack.c.h.s8.bf16 %v753_v3  ;;  %v1214_v22 = vunpack.c.l.s8.bf16 %v759_v16  ;;  %v1216_v24 = vunpack.c.l.s8.bf16 %v761_v6 }
 0x252   :  { %v1221_v30 = vunpack.c.h.s8.bf16 %v759_v16  ;;  %v1223_v31 = vunpack.c.h.s8.bf16 %v761_v6 }
 0x254   :  { %1526 = vmatpush1.bf16.msra.mxu1 %v1157_v25  ;;  %1731 = vmatpush1.bf16.msra.mxu0 %v1159_v27  ;;  %v758_v25 = vld [vmem:[#allocation3 + $0x578] sm:$0xff]  ;;  %v760_v27 = vld [vmem:[#allocation3 + $0x588] sm:$0xff] }
 0x255   :  { %1527 = vmatprep.subr.bf16.mxu1 %v1165_v28  ;;  %1732 = vmatprep.subr.bf16.mxu0 %v1167_v29  ;;  %v1213_v28 = vunpack.c.l.s8.bf16 %v758_v25  ;;  %v1215_v29 = vunpack.c.l.s8.bf16 %v760_v27 }
 0x258   :  { %1528 = vmatpush1.bf16.msra.mxu1 %v1164_v32  ;;  %1733 = vmatpush1.bf16.msra.mxu0 %v1166_v33  ;;  %v766_v32 = vld [vmem:[#allocation3 + $0x5b8] sm:$0xff]  ;;  %v768_v33 = vld [vmem:[#allocation3 + $0x5c8] sm:$0xff] }
 0x259   :  { %1529 = vmatprep.subr.bf16.mxu1 %v1172_v34  ;;  %1734 = vmatprep.subr.bf16.mxu0 %v1174_v35  ;;  %v1220_v34 = vunpack.c.h.s8.bf16 %v758_v25  ;;  %v1222_v35 = vunpack.c.h.s8.bf16 %v760_v27  ;;  %v1228_v37 = vunpack.c.l.s8.bf16 %v766_v32  ;;  %v1230_v38 = vunpack.c.l.s8.bf16 %v768_v33 }
 0x25a   :  { %v1235_v49 = vunpack.c.h.s8.bf16 %v766_v32  ;;  %v1237_v51 = vunpack.c.h.s8.bf16 %v768_v33 }
 0x25c   :  { %1530 = vmatpush1.bf16.msra.mxu1 %v1171_v40  ;;  %1735 = vmatpush1.bf16.msra.mxu0 %v1173_v43  ;;  %v765_v40 = vld [vmem:[#allocation3 + $0x5b0] sm:$0xff]  ;;  %v767_v43 = vld [vmem:[#allocation3 + $0x5c0] sm:$0xff] }
 0x25d   :  { %1531 = vmatprep.subr.bf16.mxu1 %v1179_v47  ;;  %1736 = vmatprep.subr.bf16.mxu0 %v1181_v48  ;;  %v1227_v47 = vunpack.c.l.s8.bf16 %v765_v40  ;;  %v1229_v48 = vunpack.c.l.s8.bf16 %v767_v43 }
 0x260   :  { %1532 = vmatpush1.bf16.msra.mxu1 %v1178_v53  ;;  %1737 = vmatpush1.bf16.msra.mxu0 %v1180_v54  ;;  %v773_v53 = vld [vmem:[#allocation3 + $0x5f0] sm:$0xff]  ;;  %v775_v54 = vld [vmem:[#allocation3 + $0x600] sm:$0xff] }
 0x261   :  { %1533 = vmatprep.subr.bf16.mxu1 %v1186_v55  ;;  %1738 = vmatprep.subr.bf16.mxu0 %v1188_v56  ;;  %v1234_v55 = vunpack.c.h.s8.bf16 %v765_v40  ;;  %v1236_v56 = vunpack.c.h.s8.bf16 %v767_v43  ;;  %v1242_v57 = vunpack.c.l.s8.bf16 %v773_v53  ;;  %v1244_v58 = vunpack.c.l.s8.bf16 %v775_v54 }
 0x262   :  { %v1249_v62 = vunpack.c.h.s8.bf16 %v773_v53  ;;  %v1251_v63 = vunpack.c.h.s8.bf16 %v775_v54 }
 0x264   :  { %1534 = vmatpush1.bf16.msra.mxu1 %v1185_v59  ;;  %1739 = vmatpush1.bf16.msra.mxu0 %v1187_v17  ;;  %v772_v59 = vld [vmem:[#allocation3 + $0x5e8] sm:$0xff]  ;;  %v774_v17 = vld [vmem:[#allocation3 + $0x5f8] sm:$0xff] }
 0x265   :  { %1535 = vmatprep.subr.bf16.mxu1 %v1193_v60  ;;  %1740 = vmatprep.subr.bf16.mxu0 %v1195_v61  ;;  %v1241_v60 = vunpack.c.l.s8.bf16 %v772_v59  ;;  %v1243_v61 = vunpack.c.l.s8.bf16 %v774_v17 }
 0x268   :  { %1536 = vmatpush1.bf16.msra.mxu1 %v1192_v0  ;;  %1741 = vmatpush1.bf16.msra.mxu0 %v1194_v8  ;;  %v780_v0 = vld [vmem:[#allocation3 + $0x628] sm:$0xff]  ;;  %v782_v8 = vld [vmem:[#allocation3 + $0x638] sm:$0xff] }
 0x269   :  { %1546 = vmatprep.subr.bf16.mxu1 %v1200_v9  ;;  %1751 = vmatprep.subr.bf16.mxu0 %v1202_v10  ;;  %v1248_v9 = vunpack.c.h.s8.bf16 %v772_v59  ;;  %v1250_v10 = vunpack.c.h.s8.bf16 %v774_v17  ;;  %v1256_v11 = vunpack.c.l.s8.bf16 %v780_v0  ;;  %v1258_v3 = vunpack.c.l.s8.bf16 %v782_v8 }
 0x26a   :  { %v1263_v16 = vunpack.c.h.s8.bf16 %v780_v0  ;;  %v1265_v6 = vunpack.c.h.s8.bf16 %v782_v8 }
 0x26b   :  { %1538 = vmatmul.mubr.bf16.vlgmr.msra.gmra.mrb[8].mxu1 %v4902_v18  ;;  %1743 = vmatmul.mubr.bf16.vlgmr.msra.gmra.mrb[12].mxu0 %v4902_v18 }
 0x26c   :  { %1547 = vmatpush1.bf16.msra.mxu1 %v1199_v12  ;;  %1752 = vmatpush1.bf16.msra.mxu0 %v1201_v13  ;;  %v779_v12 = vld [vmem:[#allocation3 + $0x620] sm:$0xff]  ;;  %v781_v13 = vld [vmem:[#allocation3 + $0x630] sm:$0xff] }
 0x26d   :  { %1548 = vmatprep.subr.bf16.mxu1 %v1207_v14  ;;  %1753 = vmatprep.subr.bf16.mxu0 %v1209_v15  ;;  %v1255_v14 = vunpack.c.l.s8.bf16 %v779_v12  ;;  %v1257_v15 = vunpack.c.l.s8.bf16 %v781_v13 }
 0x26e   :  { %1578 = vmatprep.mubr.bf16.mxu1 %v4909_v26  ;;  %1783 = vmatprep.mubr.bf16.mxu0 %v4909_v26 }
 0x270   :  { %1549 = vmatpush1.bf16.msra.mxu1 %v1206_v19  ;;  %1754 = vmatpush1.bf16.msra.mxu0 %v1208_v20  ;;  %v787_v19 = vld [vmem:[#allocation3 + $0x660] sm:$0xff]  ;;  %v789_v20 = vld [vmem:[#allocation3 + $0x670] sm:$0xff] }
 0x271   :  { %1550 = vmatprep.subr.bf16.mxu1 %v1214_v22  ;;  %1755 = vmatprep.subr.bf16.mxu0 %v1216_v24  ;;  %v1262_v22 = vunpack.c.h.s8.bf16 %v779_v12  ;;  %v1264_v24 = vunpack.c.h.s8.bf16 %v781_v13  ;;  %v1270_v25 = vunpack.c.l.s8.bf16 %v787_v19  ;;  %v1272_v27 = vunpack.c.l.s8.bf16 %v789_v20 }
 0x272   :  { %v1277_v32 = vunpack.c.h.s8.bf16 %v787_v19  ;;  %v1279_v33 = vunpack.c.h.s8.bf16 %v789_v20 }
 0x274   :  { %1551 = vmatpush1.bf16.msra.mxu1 %v1213_v28  ;;  %1756 = vmatpush1.bf16.msra.mxu0 %v1215_v29  ;;  %v786_v28 = vld [vmem:[#allocation3 + $0x658] sm:$0xff]  ;;  %v788_v29 = vld [vmem:[#allocation3 + $0x668] sm:$0xff] }
 0x275   :  { %1552 = vmatprep.subr.bf16.mxu1 %v1221_v30  ;;  %1757 = vmatprep.subr.bf16.mxu0 %v1223_v31  ;;  %v1269_v30 = vunpack.c.l.s8.bf16 %v786_v28  ;;  %v1271_v31 = vunpack.c.l.s8.bf16 %v788_v29 }
 0x278   :  { %1553 = vmatpush1.bf16.msra.mxu1 %v1220_v34  ;;  %1758 = vmatpush1.bf16.msra.mxu0 %v1222_v35  ;;  %v794_v34 = vld [vmem:[#allocation3 + $0x698] sm:$0xff]  ;;  %v796_v35 = vld [vmem:[#allocation3 + $0x6a8] sm:$0xff] }
 0x279   :  { %1554 = vmatprep.subr.bf16.mxu1 %v1228_v37  ;;  %1759 = vmatprep.subr.bf16.mxu0 %v1230_v38  ;;  %v1276_v37 = vunpack.c.h.s8.bf16 %v786_v28  ;;  %v1278_v38 = vunpack.c.h.s8.bf16 %v788_v29  ;;  %v1284_v40 = vunpack.c.l.s8.bf16 %v794_v34  ;;  %v1286_v43 = vunpack.c.l.s8.bf16 %v796_v35 }
 0x27a   :  { %v1291_v53 = vunpack.c.h.s8.bf16 %v794_v34  ;;  %v1293_v54 = vunpack.c.h.s8.bf16 %v796_v35 }
 0x27c   :  { %1555 = vmatpush1.bf16.msra.mxu1 %v1227_v47  ;;  %1760 = vmatpush1.bf16.msra.mxu0 %v1229_v48  ;;  %v793_v47 = vld [vmem:[#allocation3 + $0x690] sm:$0xff]  ;;  %v795_v48 = vld [vmem:[#allocation3 + $0x6a0] sm:$0xff] }
 0x27d   :  { %1556 = vmatprep.subr.bf16.mxu1 %v1235_v49  ;;  %1761 = vmatprep.subr.bf16.mxu0 %v1237_v51  ;;  %v1283_v49 = vunpack.c.l.s8.bf16 %v793_v47  ;;  %v1285_v51 = vunpack.c.l.s8.bf16 %v795_v48 }
 0x280   :  { %1557 = vmatpush1.bf16.msra.mxu1 %v1234_v55  ;;  %1762 = vmatpush1.bf16.msra.mxu0 %v1236_v56  ;;  %v801_v55 = vld [vmem:[#allocation3 + $0x6d0] sm:$0xff]  ;;  %v803_v56 = vld [vmem:[#allocation3 + $0x6e0] sm:$0xff] }
 0x281   :  { %1558 = vmatprep.subr.bf16.mxu1 %v1242_v57  ;;  %1763 = vmatprep.subr.bf16.mxu0 %v1244_v58  ;;  %v1290_v57 = vunpack.c.h.s8.bf16 %v793_v47  ;;  %v1292_v58 = vunpack.c.h.s8.bf16 %v795_v48  ;;  %v1298_v59 = vunpack.c.l.s8.bf16 %v801_v55  ;;  %v1300_v17 = vunpack.c.l.s8.bf16 %v803_v56 }
 0x282   :  { %v1305_v0 = vunpack.c.h.s8.bf16 %v801_v55  ;;  %v1307_v8 = vunpack.c.h.s8.bf16 %v803_v56 }
 0x284   :  { %1559 = vmatpush1.bf16.msra.mxu1 %v1241_v60  ;;  %1764 = vmatpush1.bf16.msra.mxu0 %v1243_v61  ;;  %v800_v60 = vld [vmem:[#allocation3 + $0x6c8] sm:$0xff]  ;;  %v802_v61 = vld [vmem:[#allocation3 + $0x6d8] sm:$0xff] }
 0x285   :  { %1560 = vmatprep.subr.bf16.mxu1 %v1249_v62  ;;  %1765 = vmatprep.subr.bf16.mxu0 %v1251_v63  ;;  %v1297_v62 = vunpack.c.l.s8.bf16 %v800_v60  ;;  %v1299_v63 = vunpack.c.l.s8.bf16 %v802_v61 }
 0x288   :  { %1561 = vmatpush1.bf16.msra.mxu1 %v1248_v9  ;;  %1766 = vmatpush1.bf16.msra.mxu0 %v1250_v10  ;;  %v808_v9 = vld [vmem:[#allocation3 + $0x708] sm:$0xff]  ;;  %v810_v10 = vld [vmem:[#allocation3 + $0x718] sm:$0xff] }
 0x289   :  { %1562 = vmatprep.subr.bf16.mxu1 %v1256_v11  ;;  %1767 = vmatprep.subr.bf16.mxu0 %v1258_v3  ;;  %v1304_v11 = vunpack.c.h.s8.bf16 %v800_v60  ;;  %v1306_v3 = vunpack.c.h.s8.bf16 %v802_v61  ;;  %v1312_v12 = vunpack.c.l.s8.bf16 %v808_v9  ;;  %v1314_v13 = vunpack.c.l.s8.bf16 %v810_v10 }
 0x28a   :  { %v1319_v19 = vunpack.c.h.s8.bf16 %v808_v9  ;;  %v1321_v20 = vunpack.c.h.s8.bf16 %v810_v10 }
 0x28c   :  { %1563 = vmatpush1.bf16.msra.mxu1 %v1255_v14  ;;  %1768 = vmatpush1.bf16.msra.mxu0 %v1257_v15  ;;  %v807_v14 = vld [vmem:[#allocation3 + $0x700] sm:$0xff]  ;;  %v809_v15 = vld [vmem:[#allocation3 + $0x710] sm:$0xff] }
 0x28d   :  { %1564 = vmatprep.subr.bf16.mxu1 %v1263_v16  ;;  %1769 = vmatprep.subr.bf16.mxu0 %v1265_v6  ;;  %v1311_v16 = vunpack.c.l.s8.bf16 %v807_v14  ;;  %v1313_v6 = vunpack.c.l.s8.bf16 %v809_v15 }
 0x290   :  { %1565 = vmatpush1.bf16.msra.mxu1 %v1262_v22  ;;  %1770 = vmatpush1.bf16.msra.mxu0 %v1264_v24  ;;  %v815_v22 = vld [vmem:[#allocation3 + $0x740] sm:$0xff]  ;;  %v817_v24 = vld [vmem:[#allocation3 + $0x750] sm:$0xff] }
 0x291   :  { %1566 = vmatprep.subr.bf16.mxu1 %v1270_v25  ;;  %1771 = vmatprep.subr.bf16.mxu0 %v1272_v27  ;;  %v1318_v25 = vunpack.c.h.s8.bf16 %v807_v14  ;;  %v1320_v27 = vunpack.c.h.s8.bf16 %v809_v15  ;;  %v1326_v28 = vunpack.c.l.s8.bf16 %v815_v22  ;;  %v1328_v29 = vunpack.c.l.s8.bf16 %v817_v24 }
 0x292   :  { %v1333_v34 = vunpack.c.h.s8.bf16 %v815_v22  ;;  %v1335_v35 = vunpack.c.h.s8.bf16 %v817_v24 }
 0x294   :  { %1567 = vmatpush1.bf16.msra.mxu1 %v1269_v30  ;;  %1772 = vmatpush1.bf16.msra.mxu0 %v1271_v31  ;;  %v814_v30 = vld [vmem:[#allocation3 + $0x738] sm:$0xff]  ;;  %v816_v31 = vld [vmem:[#allocation3 + $0x748] sm:$0xff] }
 0x295   :  { %1568 = vmatprep.subr.bf16.mxu1 %v1277_v32  ;;  %1773 = vmatprep.subr.bf16.mxu0 %v1279_v33  ;;  %v1325_v32 = vunpack.c.l.s8.bf16 %v814_v30  ;;  %v1327_v33 = vunpack.c.l.s8.bf16 %v816_v31 }
 0x298   :  { %1569 = vmatpush1.bf16.msra.mxu1 %v1276_v37  ;;  %1774 = vmatpush1.bf16.msra.mxu0 %v1278_v38  ;;  %v822_v37 = vld [vmem:[#allocation3 + $0x778] sm:$0xff]  ;;  %v824_v38 = vld [vmem:[#allocation3 + $0x788] sm:$0xff] }
 0x299   :  { %1570 = vmatprep.subr.bf16.mxu1 %v1284_v40  ;;  %1775 = vmatprep.subr.bf16.mxu0 %v1286_v43  ;;  %v1332_v40 = vunpack.c.h.s8.bf16 %v814_v30  ;;  %v1334_v43 = vunpack.c.h.s8.bf16 %v816_v31  ;;  %v1340_v47 = vunpack.c.l.s8.bf16 %v822_v37  ;;  %v1342_v48 = vunpack.c.l.s8.bf16 %v824_v38 }
 0x29a   :  { %v1347_v55 = vunpack.c.h.s8.bf16 %v822_v37  ;;  %v1349_v56 = vunpack.c.h.s8.bf16 %v824_v38 }
 0x29c   :  { %1571 = vmatpush1.bf16.msra.mxu1 %v1283_v49  ;;  %1776 = vmatpush1.bf16.msra.mxu0 %v1285_v51  ;;  %v821_v49 = vld [vmem:[#allocation3 + $0x770] sm:$0xff]  ;;  %v823_v51 = vld [vmem:[#allocation3 + $0x780] sm:$0xff] }
 0x29d   :  { %1572 = vmatprep.subr.bf16.mxu1 %v1291_v53  ;;  %1777 = vmatprep.subr.bf16.mxu0 %v1293_v54  ;;  %v1339_v53 = vunpack.c.l.s8.bf16 %v821_v49  ;;  %v1341_v54 = vunpack.c.l.s8.bf16 %v823_v51 }
 0x2a0   :  { %1573 = vmatpush1.bf16.msra.mxu1 %v1290_v57  ;;  %1778 = vmatpush1.bf16.msra.mxu0 %v1292_v58  ;;  %v829_v57 = vld [vmem:[#allocation3 + $0x7b0] sm:$0xff]  ;;  %v831_v58 = vld [vmem:[#allocation3 + $0x7c0] sm:$0xff] }
 0x2a1   :  { %1574 = vmatprep.subr.bf16.mxu1 %v1298_v59  ;;  %1779 = vmatprep.subr.bf16.mxu0 %v1300_v17  ;;  %v1346_v59 = vunpack.c.h.s8.bf16 %v821_v49  ;;  %v1348_v17 = vunpack.c.h.s8.bf16 %v823_v51  ;;  %v1354_v60 = vunpack.c.l.s8.bf16 %v829_v57  ;;  %v1356_v61 = vunpack.c.l.s8.bf16 %v831_v58 }
 0x2a2   :  { %v1361_v9 = vunpack.c.h.s8.bf16 %v829_v57  ;;  %v1363_v10 = vunpack.c.h.s8.bf16 %v831_v58 }
 0x2a4   :  { %1575 = vmatpush1.bf16.msra.mxu1 %v1297_v62  ;;  %1780 = vmatpush1.bf16.msra.mxu0 %v1299_v63  ;;  %v828_v62 = vld [vmem:[#allocation3 + $0x7a8] sm:$0xff]  ;;  %v830_v63 = vld [vmem:[#allocation3 + $0x7b8] sm:$0xff] }
 0x2a5   :  { %1576 = vmatprep.subr.bf16.mxu1 %v1305_v0  ;;  %1781 = vmatprep.subr.bf16.mxu0 %v1307_v8  ;;  %v1353_v0 = vunpack.c.l.s8.bf16 %v828_v62  ;;  %v1355_v8 = vunpack.c.l.s8.bf16 %v830_v63 }
 0x2a8   :  { %1577 = vmatpush1.bf16.msra.mxu1 %v1304_v11  ;;  %1782 = vmatpush1.bf16.msra.mxu0 %v1306_v3  ;;  %v836_v11 = vld [vmem:[#allocation3 + $0x7e8] sm:$0xff]  ;;  %v838_v3 = vld [vmem:[#allocation3 + $0x7f8] sm:$0xff] }
 0x2a9   :  { %1587 = vmatprep.subr.bf16.mxu1 %v1312_v12  ;;  %1792 = vmatprep.subr.bf16.mxu0 %v1314_v13  ;;  %v1360_v12 = vunpack.c.h.s8.bf16 %v828_v62  ;;  %v1362_v13 = vunpack.c.h.s8.bf16 %v830_v63  ;;  %v1368_v14 = vunpack.c.l.s8.bf16 %v836_v11  ;;  %v1370_v15 = vunpack.c.l.s8.bf16 %v838_v3 }
 0x2aa   :  { %v1375_v22 = vunpack.c.h.s8.bf16 %v836_v11  ;;  %v1377_v24 = vunpack.c.h.s8.bf16 %v838_v3 }
 0x2ab   :  { %1579 = vmatmul.mubr.bf16.vlgmr.msra.gmra.mrb[8].mxu1 %v4907_v23  ;;  %1784 = vmatmul.mubr.bf16.vlgmr.msra.gmra.mrb[12].mxu0 %v4907_v23 }
 0x2ac   :  { %1588 = vmatpush1.bf16.msra.mxu1 %v1311_v16  ;;  %1793 = vmatpush1.bf16.msra.mxu0 %v1313_v6  ;;  %v835_v16 = vld [vmem:[#allocation3 + $0x7e0] sm:$0xff]  ;;  %v837_v6 = vld [vmem:[#allocation3 + $0x7f0] sm:$0xff] }
 0x2ad   :  { %1589 = vmatprep.subr.bf16.mxu1 %v1319_v19  ;;  %1794 = vmatprep.subr.bf16.mxu0 %v1321_v20  ;;  %v1367_v19 = vunpack.c.l.s8.bf16 %v835_v16  ;;  %v1369_v20 = vunpack.c.l.s8.bf16 %v837_v6 }
 0x2ae   :  { %1619 = vmatprep.mubr.bf16.mxu1 %v4919_v52  ;;  %1824 = vmatprep.mubr.bf16.mxu0 %v4919_v52 }
 0x2b0   :  { %1590 = vmatpush1.bf16.msra.mxu1 %v1318_v25  ;;  %1795 = vmatpush1.bf16.msra.mxu0 %v1320_v27  ;;  %v843_v25 = vld [vmem:[#allocation3 + $0x820] sm:$0xff]  ;;  %v845_v27 = vld [vmem:[#allocation3 + $0x830] sm:$0xff] }
 0x2b1   :  { %1591 = vmatprep.subr.bf16.mxu1 %v1326_v28  ;;  %1796 = vmatprep.subr.bf16.mxu0 %v1328_v29  ;;  %v1374_v28 = vunpack.c.h.s8.bf16 %v835_v16  ;;  %v1376_v29 = vunpack.c.h.s8.bf16 %v837_v6  ;;  %v1382_v30 = vunpack.c.l.s8.bf16 %v843_v25  ;;  %v1384_v31 = vunpack.c.l.s8.bf16 %v845_v27  ;;  %v587_v6 = vld [vmem:[#allocation3 + $0x20] sm:$0xff] }
 0x2b2   :  { %v1389_v37 = vunpack.c.h.s8.bf16 %v843_v25  ;;  %v1391_v38 = vunpack.c.h.s8.bf16 %v845_v27 }
 0x2b4   :  { %1592 = vmatpush1.bf16.msra.mxu1 %v1325_v32  ;;  %1797 = vmatpush1.bf16.msra.mxu0 %v1327_v33  ;;  %v842_v32 = vld [vmem:[#allocation3 + $0x818] sm:$0xff]  ;;  %v844_v33 = vld [vmem:[#allocation3 + $0x828] sm:$0xff] }
 0x2b5   :  { %1593 = vmatprep.subr.bf16.mxu1 %v1333_v34  ;;  %1798 = vmatprep.subr.bf16.mxu0 %v1335_v35  ;;  %v1381_v34 = vunpack.c.l.s8.bf16 %v842_v32  ;;  %v1383_v35 = vunpack.c.l.s8.bf16 %v844_v33 }
 0x2b8   :  { %1594 = vmatpush1.bf16.msra.mxu1 %v1332_v40  ;;  %1799 = vmatpush1.bf16.msra.mxu0 %v1334_v43  ;;  %v850_v40 = vld [vmem:[#allocation3 + $0x858] sm:$0xff]  ;;  %v852_v43 = vld [vmem:[#allocation3 + $0x868] sm:$0xff] }
 0x2b9   :  { %1595 = vmatprep.subr.bf16.mxu1 %v1340_v47  ;;  %1800 = vmatprep.subr.bf16.mxu0 %v1342_v48  ;;  %v1388_v47 = vunpack.c.h.s8.bf16 %v842_v32  ;;  %v1390_v48 = vunpack.c.h.s8.bf16 %v844_v33  ;;  %v1396_v49 = vunpack.c.l.s8.bf16 %v850_v40  ;;  %v1398_v51 = vunpack.c.l.s8.bf16 %v852_v43  ;;  %v594_v33 = vld [vmem:[#allocation3 + $0x58] sm:$0xff] }
 0x2ba   :  { %v1403_v57 = vunpack.c.h.s8.bf16 %v850_v40  ;;  %v1405_v58 = vunpack.c.h.s8.bf16 %v852_v43 }
 0x2bc   :  { %1596 = vmatpush1.bf16.msra.mxu1 %v1339_v53  ;;  %1801 = vmatpush1.bf16.msra.mxu0 %v1341_v54  ;;  %v849_v53 = vld [vmem:[#allocation3 + $0x850] sm:$0xff]  ;;  %v851_v54 = vld [vmem:[#allocation3 + $0x860] sm:$0xff] }
 0x2bd   :  { %1597 = vmatprep.subr.bf16.mxu1 %v1347_v55  ;;  %1802 = vmatprep.subr.bf16.mxu0 %v1349_v56  ;;  %v1395_v55 = vunpack.c.l.s8.bf16 %v849_v53  ;;  %v1397_v56 = vunpack.c.l.s8.bf16 %v851_v54 }
 0x2c0   :  { %1598 = vmatpush1.bf16.msra.mxu1 %v1346_v59  ;;  %1803 = vmatpush1.bf16.msra.mxu0 %v1348_v17  ;;  %v857_v59 = vld [vmem:[#allocation3 + $0x890] sm:$0xff]  ;;  %v859_v17 = vld [vmem:[#allocation3 + $0x8a0] sm:$0xff] }
 0x2c1   :  { %1599 = vmatprep.subr.bf16.mxu1 %v1354_v60  ;;  %1804 = vmatprep.subr.bf16.mxu0 %v1356_v61  ;;  %v1402_v60 = vunpack.c.h.s8.bf16 %v849_v53  ;;  %v1404_v61 = vunpack.c.h.s8.bf16 %v851_v54  ;;  %v1410_v62 = vunpack.c.l.s8.bf16 %v857_v59  ;;  %v1412_v63 = vunpack.c.l.s8.bf16 %v859_v17  ;;  %v601_v54 = vld [vmem:[#allocation3 + $0x90] sm:$0xff] }
 0x2c2   :  { %v1417_v11 = vunpack.c.h.s8.bf16 %v857_v59  ;;  %v1419_v3 = vunpack.c.h.s8.bf16 %v859_v17  ;;  %v609_v17 = vld [vmem:[#allocation3 + $0xd0] sm:$0xff] }
 0x2c4   :  { %1600 = vmatpush1.bf16.msra.mxu1 %v1353_v0  ;;  %1805 = vmatpush1.bf16.msra.mxu0 %v1355_v8  ;;  %v856_v0 = vld [vmem:[#allocation3 + $0x888] sm:$0xff]  ;;  %v858_v8 = vld [vmem:[#allocation3 + $0x898] sm:$0xff] }
 0x2c5   :  { %1601 = vmatprep.subr.bf16.mxu1 %v1361_v9  ;;  %1806 = vmatprep.subr.bf16.mxu0 %v1363_v10  ;;  %v1409_v9 = vunpack.c.l.s8.bf16 %v856_v0  ;;  %v1411_v10 = vunpack.c.l.s8.bf16 %v858_v8 }
 0x2c8   :  { %1602 = vmatpush1.bf16.msra.mxu1 %v1360_v12  ;;  %1807 = vmatpush1.bf16.msra.mxu0 %v1362_v13  ;;  %v588_v12 = vld [vmem:[#allocation3 + $0x28] sm:$0xff]  ;;  %v617_v13 = vld [vmem:[#allocation3 + $0x110] sm:$0xff] }
 0x2c9   :  { %1603 = vmatprep.subr.bf16.mxu1 %v1368_v14  ;;  %1808 = vmatprep.subr.bf16.mxu0 %v1370_v15  ;;  %v1416_v14 = vunpack.c.h.s8.bf16 %v856_v0  ;;  %v1418_v15 = vunpack.c.h.s8.bf16 %v858_v8  ;;  %v868_v16 = vunpack.c.l.s8.bf16 %v588_v12  ;;  %v875_v25 = vunpack.c.h.s8.bf16 %v588_v12  ;;  %v608_v0 = vld [vmem:[#allocation3 + $0xc8] sm:$0xff] }
 0x2ca   :  { %v932_v27 = vunpack.c.h.s8.bf16 %v617_v13 }
 0x2cc   :  { %1604 = vmatpush1.bf16.msra.mxu1 %v1367_v19  ;;  %1809 = vmatpush1.bf16.msra.mxu0 %v1369_v20  ;;  %v925_v19 = vunpack.c.l.s8.bf16 %v617_v13  ;;  %v589_v20 = vld [vmem:[#allocation3 + $0x30] sm:$0xff]  ;;  %v616_v13 = vld [vmem:[#allocation3 + $0x108] sm:$0xff] }
 0x2cd   :  { %1605 = vmatprep.subr.bf16.mxu1 %v1375_v22  ;;  %1810 = vmatprep.subr.bf16.mxu0 %v1377_v24  ;;  %v867_v22 = vunpack.c.l.s8.bf16 %v587_v6  ;;  %v869_v24 = vunpack.c.l.s8.bf16 %v589_v20 }
 0x2d0   :  { %1606 = vmatpush1.bf16.msra.mxu1 %v1374_v28  ;;  %1811 = vmatpush1.bf16.msra.mxu0 %v1376_v29  ;;  %v595_v28 = vld [vmem:[#allocation3 + $0x60] sm:$0xff]  ;;  %v624_v29 = vld [vmem:[#allocation3 + $0x148] sm:$0xff] }
 0x2d1   :  { %1607 = vmatprep.subr.bf16.mxu1 %v1382_v30  ;;  %1812 = vmatprep.subr.bf16.mxu0 %v1384_v31  ;;  %v874_v30 = vunpack.c.h.s8.bf16 %v587_v6  ;;  %v876_v31 = vunpack.c.h.s8.bf16 %v589_v20  ;;  %v882_v32 = vunpack.c.l.s8.bf16 %v595_v28  ;;  %v889_v40 = vunpack.c.h.s8.bf16 %v595_v28 }
 0x2d2   :  { %v946_v43 = vunpack.c.h.s8.bf16 %v624_v29  ;;  %v924_v6 = vunpack.c.l.s8.bf16 %v616_v13 }
 0x2d4   :  { %1608 = vmatpush1.bf16.msra.mxu1 %v1381_v34  ;;  %1813 = vmatpush1.bf16.msra.mxu0 %v1383_v35  ;;  %v939_v34 = vunpack.c.l.s8.bf16 %v624_v29  ;;  %v596_v35 = vld [vmem:[#allocation3 + $0x68] sm:$0xff]  ;;  %v623_v29 = vld [vmem:[#allocation3 + $0x140] sm:$0xff] }
 0x2d5   :  { %1609 = vmatprep.subr.bf16.mxu1 %v1389_v37  ;;  %1814 = vmatprep.subr.bf16.mxu0 %v1391_v38  ;;  %v881_v37 = vunpack.c.l.s8.bf16 %v594_v33  ;;  %v883_v38 = vunpack.c.l.s8.bf16 %v596_v35 }
 0x2d8   :  { %1610 = vmatpush1.bf16.msra.mxu1 %v1388_v47  ;;  %1815 = vmatpush1.bf16.msra.mxu0 %v1390_v48  ;;  %v602_v47 = vld [vmem:[#allocation3 + $0x98] sm:$0xff]  ;;  %v631_v48 = vld [vmem:[#allocation3 + $0x180] sm:$0xff] }
 0x2d9   :  { %1611 = vmatprep.subr.bf16.mxu1 %v1396_v49  ;;  %1816 = vmatprep.subr.bf16.mxu0 %v1398_v51  ;;  %v888_v49 = vunpack.c.h.s8.bf16 %v594_v33  ;;  %v890_v51 = vunpack.c.h.s8.bf16 %v596_v35  ;;  %v896_v53 = vunpack.c.l.s8.bf16 %v602_v47  ;;  %v960_v59 = vunpack.c.h.s8.bf16 %v631_v48 }
 0x2da   :  { %v938_v33 = vunpack.c.l.s8.bf16 %v623_v29 }
 0x2dc   :  { %1612 = vmatpush1.bf16.msra.mxu1 %v1395_v55  ;;  %1817 = vmatpush1.bf16.msra.mxu0 %v1397_v56  ;;  %v953_v55 = vunpack.c.l.s8.bf16 %v631_v48  ;;  %v895_v56 = vunpack.c.l.s8.bf16 %v601_v54  ;;  %v630_v48 = vld [vmem:[#allocation3 + $0x178] sm:$0xff] }
 0x2dd   :  { %1613 = vmatprep.subr.bf16.mxu1 %v1403_v57  ;;  %1818 = vmatprep.subr.bf16.mxu0 %v1405_v58  ;;  %v903_v58 = vunpack.c.h.s8.bf16 %v602_v47 }
 0x2e0   :  { %1614 = vmatpush1.bf16.msra.mxu1 %v1402_v60  ;;  %1819 = vmatpush1.bf16.msra.mxu0 %v1404_v61  ;;  %v638_v60 = vld [vmem:[#allocation3 + $0x1b8] sm:$0xff]  ;;  %v902_v61 = vunpack.c.h.s8.bf16 %v601_v54  ;;  %v952_v54 = vunpack.c.l.s8.bf16 %v630_v48 }
 0x2e1   :  { %1615 = vmatprep.subr.bf16.mxu1 %v1410_v62  ;;  %1820 = vmatprep.subr.bf16.mxu0 %v1412_v63  ;;  %v910_v63 = vunpack.c.l.s8.bf16 %v609_v17  ;;  %v967_v8 = vunpack.c.l.s8.bf16 %v638_v60  ;;  %v974_v12 = vunpack.c.h.s8.bf16 %v638_v60  ;;  %v637_v60 = vld [vmem:[#allocation3 + $0x1b0] sm:$0xff] }
 0x2e4   :  { %1616 = vmatpush1.bf16.msra.mxu1 %v1409_v9  ;;  %1821 = vmatpush1.bf16.msra.mxu0 %v1411_v10  ;;  %v610_v9 = vld [vmem:[#allocation3 + $0xd8] sm:$0xff]  ;;  %v909_v10 = vunpack.c.l.s8.bf16 %v608_v0 }
 0x2e5   :  { %1617 = vmatprep.subr.bf16.mxu1 %v1417_v11  ;;  %1822 = vmatprep.subr.bf16.mxu0 %v1419_v3  ;;  %v911_v11 = vunpack.c.l.s8.bf16 %v610_v9  ;;  %v917_v3 = vunpack.c.h.s8.bf16 %v609_v17 }
 0x2e8   :  { %1618 = vmatpush1.bf16.msra.mxu1 %v1416_v14  ;;  %1823 = vmatpush1.bf16.msra.mxu0 %v1418_v15  ;;  %v673_v14 = vld [vmem:[#allocation3 + $0x2d0] sm:$0xff]  ;;  %v916_v15 = vunpack.c.h.s8.bf16 %v608_v0  ;;  %v966_v0 = vunpack.c.l.s8.bf16 %v637_v60 }
 0x2e9   :  { %1833 = vmatprep.subr.bf16.mxu1 %v868_v16  ;;  %4038 = vmatprep.subr.bf16.mxu0 %v925_v19  ;;  %v918_v16 = vunpack.c.h.s8.bf16 %v610_v9  ;;  %v615_v19 = vld [vmem:[#allocation3 + $0x100] sm:$0xff]  ;;  %v1037_v20 = vunpack.c.l.s8.bf16 %v673_v14  ;;  %v1044_v28 = vunpack.c.h.s8.bf16 %v673_v14  ;;  %v644_v14 = vld [vmem:[#allocation3 + $0x1e8] sm:$0xff] }
 0x2eb   :  { %1620 = vmatmul.mubr.bf16.vlgmr.msra.gmra.mrb[8].mxu1 %v4917_v50  ;;  %1825 = vmatmul.mubr.bf16.vlgmr.msra.gmra.mrb[12].mxu0 %v4917_v50 }
 0x2ec   :  { %1834 = vmatpush1.bf16.msra.mxu1 %v867_v22  ;;  %4039 = vmatpush3.bf16.msra.mxu0 %v869_v24  ;;  %v645_v22 = vld [vmem:[#allocation3 + $0x1f0] sm:$0xff]  ;;  %v923_v24 = vunpack.c.l.s8.bf16 %v615_v19 }
 0x2ed   :  { %1835 = vmatprep.subr.bf16.mxu1 %v875_v25  ;;  %4040 = vmatprep.subr.bf16.mxu0 %v932_v27  ;;  %v981_v25 = vunpack.c.l.s8.bf16 %v645_v22  ;;  %v931_v27 = vunpack.c.h.s8.bf16 %v616_v13 }
 0x2ee   :  { %1865 = vmatprep.mubr.bf16.mxu1 %v4869_v39  ;;  %2070 = vmatprep.mubr.bf16.mxu0 %v4869_v39  ;;  %v603_v39 = vld [vmem:[#allocation3 + $0xa0] sm:$0xff] }
 0x2ef   :  { %v897_v57 = vunpack.c.l.s8.bf16 %v603_v39  ;;  %v904_v62 = vunpack.c.h.s8.bf16 %v603_v39 }
 0x2f0   :  { %1836 = vmatpush1.bf16.msra.mxu1 %v874_v30  ;;  %4041 = vmatpush3.bf16.msra.mxu0 %v876_v31  ;;  %v680_v30 = vld [vmem:[#allocation3 + $0x308] sm:$0xff]  ;;  %v930_v31 = vunpack.c.h.s8.bf16 %v615_v19  ;;  %v980_v19 = vunpack.c.l.s8.bf16 %v644_v14 }
 0x2f1   :  { %1837 = vmatprep.subr.bf16.mxu1 %v882_v32  ;;  %4042 = vmatprep.subr.bf16.mxu0 %v939_v34  ;;  %v988_v32 = vunpack.c.h.s8.bf16 %v645_v22  ;;  %v622_v34 = vld [vmem:[#allocation3 + $0x138] sm:$0xff]  ;;  %v1051_v35 = vunpack.c.l.s8.bf16 %v680_v30  ;;  %v1058_v47 = vunpack.c.h.s8.bf16 %v680_v30  ;;  %v651_v30 = vld [vmem:[#allocation3 + $0x220] sm:$0xff] }
 0x2f4   :  { %1838 = vmatpush1.bf16.msra.mxu1 %v881_v37  ;;  %4043 = vmatpush3.bf16.msra.mxu0 %v883_v38  ;;  %v652_v37 = vld [vmem:[#allocation3 + $0x228] sm:$0xff]  ;;  %v937_v38 = vunpack.c.l.s8.bf16 %v622_v34 }
 0x2f5   :  { %1839 = vmatprep.subr.bf16.mxu1 %v889_v40  ;;  %4044 = vmatprep.subr.bf16.mxu0 %v946_v43  ;;  %v995_v40 = vunpack.c.l.s8.bf16 %v652_v37  ;;  %v945_v43 = vunpack.c.h.s8.bf16 %v623_v29 }
 0x2f8   :  { %1840 = vmatpush1.bf16.msra.mxu1 %v888_v49  ;;  %4045 = vmatpush3.bf16.msra.mxu0 %v890_v51  ;;  %v687_v49 = vld [vmem:[#allocation3 + $0x340] sm:$0xff]  ;;  %v944_v51 = vunpack.c.h.s8.bf16 %v622_v34  ;;  %v994_v34 = vunpack.c.l.s8.bf16 %v651_v30 }
 0x2f9   :  { %1841 = vmatprep.subr.bf16.mxu1 %v896_v53  ;;  %4046 = vmatprep.subr.bf16.mxu0 %v953_v55  ;;  %v1002_v53 = vunpack.c.h.s8.bf16 %v652_v37  ;;  %v629_v55 = vld [vmem:[#allocation3 + $0x170] sm:$0xff]  ;;  %v1065_v39 = vunpack.c.l.s8.bf16 %v687_v49  ;;  %v1072_v17 = vunpack.c.h.s8.bf16 %v687_v49  ;;  %v743_v49 = vld [vmem:[#allocation3 + $0x500] sm:$0xff] }
 0x2fc   :  { %1842 = vmatpush1.bf16.msra.mxu1 %v895_v56  ;;  %4047 = vmatpush3.bf16.msra.mxu0 %v897_v57  ;;  %v659_v56 = vld [vmem:[#allocation3 + $0x260] sm:$0xff]  ;;  %v951_v57 = vunpack.c.l.s8.bf16 %v629_v55 }
 0x2fd   :  { %1843 = vmatprep.subr.bf16.mxu1 %v903_v58  ;;  %4048 = vmatprep.subr.bf16.mxu0 %v960_v59  ;;  %v1009_v58 = vunpack.c.l.s8.bf16 %v659_v56  ;;  %v959_v59 = vunpack.c.h.s8.bf16 %v630_v48  ;;  %v658_v48 = vld [vmem:[#allocation3 + $0x258] sm:$0xff] }
 0x300   :  { %1844 = vmatpush1.bf16.msra.mxu1 %v902_v61  ;;  %4049 = vmatpush3.bf16.msra.mxu0 %v904_v62  ;;  %v694_v61 = vld [vmem:[#allocation3 + $0x378] sm:$0xff]  ;;  %v958_v62 = vunpack.c.h.s8.bf16 %v629_v55  ;;  %v657_v55 = vld [vmem:[#allocation3 + $0x250] sm:$0xff] }
 0x301   :  { %1845 = vmatprep.subr.bf16.mxu1 %v910_v63  ;;  %4050 = vmatprep.subr.bf16.mxu0 %v967_v8  ;;  %v1016_v63 = vunpack.c.h.s8.bf16 %v659_v56  ;;  %v636_v8 = vld [vmem:[#allocation3 + $0x1a8] sm:$0xff]  ;;  %v1079_v9 = vunpack.c.l.s8.bf16 %v694_v61  ;;  %v1086_v13 = vunpack.c.h.s8.bf16 %v694_v61  ;;  %v1007_v56 = vunpack.c.l.s8.bf16 %v657_v55 }
 0x302   :  { %v1014_v61 = vunpack.c.h.s8.bf16 %v657_v55 }
 0x304   :  { %1846 = vmatpush1.bf16.msra.mxu1 %v909_v10  ;;  %4051 = vmatpush3.bf16.msra.mxu0 %v911_v11  ;;  %v666_v10 = vld [vmem:[#allocation3 + $0x298] sm:$0xff]  ;;  %v965_v11 = vunpack.c.l.s8.bf16 %v636_v8 }
 0x305   :  { %1847 = vmatprep.subr.bf16.mxu1 %v917_v3  ;;  %4052 = vmatprep.subr.bf16.mxu0 %v974_v12  ;;  %v1023_v3 = vunpack.c.l.s8.bf16 %v666_v10  ;;  %v973_v12 = vunpack.c.h.s8.bf16 %v637_v60  ;;  %v750_v60 = vld [vmem:[#allocation3 + $0x538] sm:$0xff] }
 0x308   :  { %1848 = vmatpush1.bf16.msra.mxu1 %v916_v15  ;;  %4053 = vmatpush3.bf16.msra.mxu0 %v918_v16  ;;  %v729_v15 = vld [vmem:[#allocation3 + $0x490] sm:$0xff]  ;;  %v972_v16 = vunpack.c.h.s8.bf16 %v636_v8  ;;  %v1191_v8 = vunpack.c.l.s8.bf16 %v750_v60 }
 0x309   :  { %1849 = vmatprep.subr.bf16.mxu1 %v924_v6  ;;  %4060 = vmatprep.subr.bf16.mxu0 %v1037_v20  ;;  %v1030_v6 = vunpack.c.h.s8.bf16 %v666_v10  ;;  %v643_v20 = vld [vmem:[#allocation3 + $0x1e0] sm:$0xff]  ;;  %v1149_v22 = vunpack.c.l.s8.bf16 %v729_v15  ;;  %v1156_v29 = vunpack.c.h.s8.bf16 %v729_v15 }
 0x30b   :  { %2071 = vmatmul.mubr.bf16.vlgmr.msra.gmra.mrb[16].mxu0 %v4866_v36 }
 0x30c   :  { %1850 = vmatpush1.bf16.msra.mxu1 %v923_v24  ;;  %4061 = vmatpush3.bf16.msra.mxu0 %v981_v25  ;;  %v701_v24 = vld [vmem:[#allocation3 + $0x3b0] sm:$0xff]  ;;  %v979_v25 = vunpack.c.l.s8.bf16 %v643_v20 }
 0x30d   :  { %1851 = vmatprep.subr.bf16.mxu1 %v931_v27  ;;  %4062 = vmatprep.subr.bf16.mxu0 %v1044_v28  ;;  %v1093_v27 = vunpack.c.l.s8.bf16 %v701_v24  ;;  %v987_v28 = vunpack.c.h.s8.bf16 %v644_v14  ;;  %v785_v14 = vld [vmem:[#allocation3 + $0x650] sm:$0xff] }
 0x30e   :  { %2110 = vmatprep.mubr.bf16.mxu0 %v4879_v45 }
 0x310   :  { %1852 = vmatpush1.bf16.msra.mxu1 %v930_v31  ;;  %4063 = vmatpush3.bf16.msra.mxu0 %v988_v32  ;;  %v736_v31 = vld [vmem:[#allocation3 + $0x4c8] sm:$0xff]  ;;  %v986_v32 = vunpack.c.h.s8.bf16 %v643_v20  ;;  %v1261_v20 = vunpack.c.l.s8.bf16 %v785_v14 }
 0x311   :  { %1853 = vmatprep.subr.bf16.mxu1 %v938_v33  ;;  %4064 = vmatprep.subr.bf16.mxu0 %v1051_v35  ;;  %v1100_v33 = vunpack.c.h.s8.bf16 %v701_v24  ;;  %v650_v35 = vld [vmem:[#allocation3 + $0x218] sm:$0xff]  ;;  %v1163_v37 = vunpack.c.l.s8.bf16 %v736_v31 }
 0x314   :  { %1854 = vmatpush1.bf16.msra.mxu1 %v937_v38  ;;  %4065 = vmatpush3.bf16.msra.mxu0 %v995_v40  ;;  %v708_v38 = vld [vmem:[#allocation3 + $0x3e8] sm:$0xff]  ;;  %v993_v40 = vunpack.c.l.s8.bf16 %v650_v35 }
 0x315   :  { %1855 = vmatprep.subr.bf16.mxu1 %v945_v43  ;;  %4066 = vmatprep.subr.bf16.mxu0 %v1058_v47  ;;  %v1001_v43 = vunpack.c.h.s8.bf16 %v651_v30  ;;  %v1170_v47 = vunpack.c.h.s8.bf16 %v736_v31  ;;  %v792_v30 = vld [vmem:[#allocation3 + $0x688] sm:$0xff] }
 0x318   :  { %1856 = vmatpush1.bf16.msra.mxu1 %v944_v51  ;;  %4067 = vmatpush3.bf16.msra.mxu0 %v1002_v53  ;;  %v1000_v51 = vunpack.c.h.s8.bf16 %v650_v35  ;;  %v1114_v53 = vunpack.c.h.s8.bf16 %v708_v38  ;;  %v1275_v35 = vunpack.c.l.s8.bf16 %v792_v30 }
 0x319   :  { %1857 = vmatprep.subr.bf16.mxu1 %v952_v54  ;;  %4068 = vmatprep.subr.bf16.mxu0 %v1065_v39  ;;  %v1008_v54 = vunpack.c.l.s8.bf16 %v658_v48  ;;  %v715_v39 = vld [vmem:[#allocation3 + $0x420] sm:$0xff] }
 0x31c   :  { %1858 = vmatpush1.bf16.msra.mxu1 %v951_v57  ;;  %4069 = vmatpush3.bf16.msra.mxu0 %v1009_v58  ;;  %v1121_v57 = vunpack.c.l.s8.bf16 %v715_v39  ;;  %v1015_v58 = vunpack.c.h.s8.bf16 %v658_v48  ;;  %v799_v48 = vld [vmem:[#allocation3 + $0x6c0] sm:$0xff] }
 0x31d   :  { %1859 = vmatprep.subr.bf16.mxu1 %v959_v59  ;;  %4070 = vmatprep.subr.bf16.mxu0 %v1072_v17  ;;  %v1184_v59 = vunpack.c.h.s8.bf16 %v743_v49  ;;  %v665_v17 = vld [vmem:[#allocation3 + $0x290] sm:$0xff]  ;;  %v1289_v55 = vunpack.c.l.s8.bf16 %v799_v48 }
 0x320   :  { %1860 = vmatpush1.bf16.msra.mxu1 %v958_v62  ;;  %4071 = vmatpush3.bf16.msra.mxu0 %v1016_v63  ;;  %v1128_v62 = vunpack.c.h.s8.bf16 %v715_v39  ;;  %v1022_v63 = vunpack.c.l.s8.bf16 %v665_v17 }
 0x321   :  { %1861 = vmatprep.subr.bf16.mxu1 %v966_v0  ;;  %4072 = vmatprep.subr.bf16.mxu0 %v1079_v9  ;;  %v664_v0 = vld [vmem:[#allocation3 + $0x288] sm:$0xff]  ;;  %v722_v9 = vld [vmem:[#allocation3 + $0x458] sm:$0xff] }
 0x322   :  { %v1021_v10 = vunpack.c.l.s8.bf16 %v664_v0  ;;  %v1028_v15 = vunpack.c.h.s8.bf16 %v664_v0 }
 0x324   :  { %1862 = vmatpush1.bf16.msra.mxu1 %v965_v11  ;;  %4073 = vmatpush3.bf16.msra.mxu0 %v1023_v3  ;;  %v1135_v11 = vunpack.c.l.s8.bf16 %v722_v9  ;;  %v1029_v3 = vunpack.c.h.s8.bf16 %v665_v17  ;;  %v806_v17 = vld [vmem:[#allocation3 + $0x6f8] sm:$0xff] }
 0x325   :  { %1863 = vmatprep.subr.bf16.mxu1 %v973_v12  ;;  %4074 = vmatprep.subr.bf16.mxu0 %v1086_v13  ;;  %v1198_v12 = vunpack.c.h.s8.bf16 %v750_v60  ;;  %v672_v13 = vld [vmem:[#allocation3 + $0x2c8] sm:$0xff]  ;;  %v1303_v0 = vunpack.c.l.s8.bf16 %v806_v17 }
 0x328   :  { %1864 = vmatpush1.bf16.msra.mxu1 %v972_v16  ;;  %4075 = vmatpush3.bf16.msra.mxu0 %v1030_v6  ;;  %v1142_v16 = vunpack.c.h.s8.bf16 %v722_v9  ;;  %v1036_v6 = vunpack.c.l.s8.bf16 %v672_v13 }
 0x329   :  { %1874 = vmatprep.subr.bf16.mxu1 %v980_v19  ;;  %4082 = vmatprep.subr.bf16.mxu0 %v1149_v22  ;;  %v671_v19 = vld [vmem:[#allocation3 + $0x2c0] sm:$0xff]  ;;  %v757_v22 = vld [vmem:[#allocation3 + $0x570] sm:$0xff] }
 0x32a   :  { %v1035_v24 = vunpack.c.l.s8.bf16 %v671_v19  ;;  %v1042_v31 = vunpack.c.h.s8.bf16 %v671_v19 }
 0x32b   :  { %1866 = vmatmul.mubr.bf16.vlgmr.msra.gmra.mrb[12].mxu1 %v4866_v36  ;;  %2111 = vmatmul.mubr.bf16.vlgmr.msra.gmra.mrb[20].mxu0 %v4874_v42  ;;  %v1107_v36 = vunpack.c.l.s8.bf16 %v708_v38 }
 0x32c   :  { %1875 = vmatpush1.bf16.msra.mxu1 %v979_v25  ;;  %4083 = vmatpush3.bf16.msra.mxu0 %v1093_v27  ;;  %v1205_v25 = vunpack.c.l.s8.bf16 %v757_v22  ;;  %v1043_v27 = vunpack.c.h.s8.bf16 %v672_v13  ;;  %v841_v13 = vld [vmem:[#allocation3 + $0x810] sm:$0xff] }
 0x32d   :  { %1876 = vmatprep.subr.bf16.mxu1 %v987_v28  ;;  %4084 = vmatprep.subr.bf16.mxu0 %v1156_v29  ;;  %v1268_v28 = vunpack.c.h.s8.bf16 %v785_v14  ;;  %v679_v29 = vld [vmem:[#allocation3 + $0x300] sm:$0xff]  ;;  %v1373_v19 = vunpack.c.l.s8.bf16 %v841_v13 }
 0x32e   :  { %1906 = vmatprep.mubr.bf16.mxu1 %v4879_v45  ;;  %2150 = vmatprep.mubr.bf16.mxu0 %v4905_v21  ;;  %v1177_v45 = vunpack.c.l.s8.bf16 %v743_v49 }
 0x330   :  { %1877 = vmatpush1.bf16.msra.mxu1 %v986_v32  ;;  %4085 = vmatpush3.bf16.msra.mxu0 %v1100_v33  ;;  %v1212_v32 = vunpack.c.h.s8.bf16 %v757_v22  ;;  %v1050_v33 = vunpack.c.l.s8.bf16 %v679_v29 }
 0x331   :  { %1878 = vmatprep.subr.bf16.mxu1 %v994_v34  ;;  %4086 = vmatprep.subr.bf16.mxu0 %v1163_v37  ;;  %v678_v34 = vld [vmem:[#allocation3 + $0x2f8] sm:$0xff]  ;;  %v764_v37 = vld [vmem:[#allocation3 + $0x5a8] sm:$0xff] }
 0x332   :  { %v1049_v38 = vunpack.c.l.s8.bf16 %v678_v34  ;;  %v1056_v49 = vunpack.c.h.s8.bf16 %v678_v34 }
 0x334   :  { %1879 = vmatpush1.bf16.msra.mxu1 %v993_v40  ;;  %4087 = vmatpush3.bf16.msra.mxu0 %v1107_v36  ;;  %v1219_v40 = vunpack.c.l.s8.bf16 %v764_v37  ;;  %v1057_v36 = vunpack.c.h.s8.bf16 %v679_v29  ;;  %v848_v29 = vld [vmem:[#allocation3 + $0x848] sm:$0xff] }
 0x335   :  { %1880 = vmatprep.subr.bf16.mxu1 %v1001_v43  ;;  %4088 = vmatprep.subr.bf16.mxu0 %v1170_v47  ;;  %v1282_v43 = vunpack.c.h.s8.bf16 %v792_v30  ;;  %v686_v47 = vld [vmem:[#allocation3 + $0x338] sm:$0xff]  ;;  %v1387_v34 = vunpack.c.l.s8.bf16 %v848_v29 }
 0x338   :  { %1881 = vmatpush1.bf16.msra.mxu1 %v1000_v51  ;;  %4089 = vmatpush3.bf16.msra.mxu0 %v1114_v53  ;;  %v1226_v51 = vunpack.c.h.s8.bf16 %v764_v37  ;;  %v1064_v53 = vunpack.c.l.s8.bf16 %v686_v47 }
 0x339   :  { %1882 = vmatprep.subr.bf16.mxu1 %v1008_v54  ;;  %4090 = vmatprep.subr.bf16.mxu0 %v1177_v45  ;;  %v685_v54 = vld [vmem:[#allocation3 + $0x330] sm:$0xff]  ;;  %v771_v45 = vld [vmem:[#allocation3 + $0x5e0] sm:$0xff] }
 0x33a   :  { %v1063_v39 = vunpack.c.l.s8.bf16 %v685_v54  ;;  %v1070_v60 = vunpack.c.h.s8.bf16 %v685_v54 }
 0x33c   :  { %1883 = vmatpush1.bf16.msra.mxu1 %v1007_v56  ;;  %4091 = vmatpush3.bf16.msra.mxu0 %v1121_v57  ;;  %v1233_v56 = vunpack.c.l.s8.bf16 %v771_v45  ;;  %v1071_v57 = vunpack.c.h.s8.bf16 %v686_v47 }
 0x33d   :  { %1884 = vmatprep.subr.bf16.mxu1 %v1015_v58  ;;  %4092 = vmatprep.subr.bf16.mxu0 %v1184_v59  ;;  %v1296_v58 = vunpack.c.h.s8.bf16 %v799_v48  ;;  %v693_v59 = vld [vmem:[#allocation3 + $0x370] sm:$0xff] }
 0x340   :  { %1885 = vmatpush1.bf16.msra.mxu1 %v1014_v61  ;;  %4093 = vmatpush3.bf16.msra.mxu0 %v1128_v62  ;;  %v1240_v61 = vunpack.c.h.s8.bf16 %v771_v45  ;;  %v1078_v62 = vunpack.c.l.s8.bf16 %v693_v59 }
 0x341   :  { %1886 = vmatprep.subr.bf16.mxu1 %v1022_v63  ;;  %4094 = vmatprep.subr.bf16.mxu0 %v1191_v8  ;;  %v692_v63 = vld [vmem:[#allocation3 + $0x368] sm:$0xff]  ;;  %v778_v8 = vld [vmem:[#allocation3 + $0x618] sm:$0xff] }
 0x342   :  { %v1077_v9 = vunpack.c.l.s8.bf16 %v692_v63  ;;  %v1084_v14 = vunpack.c.h.s8.bf16 %v692_v63 }
 0x344   :  { %1887 = vmatpush1.bf16.msra.mxu1 %v1021_v10  ;;  %4095 = vmatpush3.bf16.msra.mxu0 %v1135_v11  ;;  %v1247_v10 = vunpack.c.l.s8.bf16 %v778_v8  ;;  %v1085_v11 = vunpack.c.h.s8.bf16 %v693_v59 }
 0x345   :  { %1888 = vmatprep.subr.bf16.mxu1 %v1029_v3  ;;  %4096 = vmatprep.subr.bf16.mxu0 %v1198_v12  ;;  %v1310_v3 = vunpack.c.h.s8.bf16 %v806_v17  ;;  %v700_v12 = vld [vmem:[#allocation3 + $0x3a8] sm:$0xff] }
 0x348   :  { %1889 = vmatpush1.bf16.msra.mxu1 %v1028_v15  ;;  %4097 = vmatpush3.bf16.msra.mxu0 %v1142_v16  ;;  %v1254_v15 = vunpack.c.h.s8.bf16 %v778_v8  ;;  %v1092_v16 = vunpack.c.l.s8.bf16 %v700_v12 }
 0x349   :  { %1890 = vmatprep.subr.bf16.mxu1 %v1036_v6  ;;  %4104 = vmatprep.subr.bf16.mxu0 %v1261_v20  ;;  %v699_v6 = vld [vmem:[#allocation3 + $0x3a0] sm:$0xff]  ;;  %v813_v20 = vld [vmem:[#allocation3 + $0x730] sm:$0xff] }
 0x34a   :  { %v1091_v22 = vunpack.c.l.s8.bf16 %v699_v6  ;;  %v1098_v30 = vunpack.c.h.s8.bf16 %v699_v6 }
 0x34b   :  { %2151 = vmatmul.mubr.bf16.vlgmr.msra.gmra.mrb[24].mxu0 %v4902_v18 }
 0x34c   :  { %1891 = vmatpush1.bf16.msra.mxu1 %v1035_v24  ;;  %4105 = vmatpush3.bf16.msra.mxu0 %v1205_v25  ;;  %v1317_v24 = vunpack.c.l.s8.bf16 %v813_v20  ;;  %v1099_v25 = vunpack.c.h.s8.bf16 %v700_v12 }
 0x34d   :  { %1892 = vmatprep.subr.bf16.mxu1 %v1043_v27  ;;  %4106 = vmatprep.subr.bf16.mxu0 %v1268_v28  ;;  %v1380_v27 = vunpack.c.h.s8.bf16 %v841_v13  ;;  %v707_v28 = vld [vmem:[#allocation3 + $0x3e0] sm:$0xff] }
 0x34e   :  { %2190 = vmatprep.mubr.bf16.mxu0 %v4909_v26  ;;  %v727_v13 = vld [vmem:[#allocation3 + $0x480] sm:$0xff] }
 0x34f   :  { %v1154_v6 = vunpack.c.h.s8.bf16 %v727_v13 }
 0x350   :  { %1893 = vmatpush1.bf16.msra.mxu1 %v1042_v31  ;;  %4107 = vmatpush3.bf16.msra.mxu0 %v1212_v32  ;;  %v1324_v31 = vunpack.c.h.s8.bf16 %v813_v20  ;;  %v1106_v32 = vunpack.c.l.s8.bf16 %v707_v28  ;;  %v734_v20 = vld [vmem:[#allocation3 + $0x4b8] sm:$0xff] }
 0x351   :  { %1894 = vmatprep.subr.bf16.mxu1 %v1050_v33  ;;  %4108 = vmatprep.subr.bf16.mxu0 %v1275_v35  ;;  %v706_v33 = vld [vmem:[#allocation3 + $0x3d8] sm:$0xff]  ;;  %v820_v35 = vld [vmem:[#allocation3 + $0x768] sm:$0xff] }
 0x352   :  { %v1105_v37 = vunpack.c.l.s8.bf16 %v706_v33  ;;  %v1112_v47 = vunpack.c.h.s8.bf16 %v706_v33  ;;  %v1338_v48 = vunpack.c.h.s8.bf16 %v820_v35 }
 0x354   :  { %1895 = vmatpush1.bf16.msra.mxu1 %v1049_v38  ;;  %4109 = vmatpush3.bf16.msra.mxu0 %v1219_v40  ;;  %v1113_v38 = vunpack.c.h.s8.bf16 %v707_v28  ;;  %v1394_v40 = vunpack.c.h.s8.bf16 %v848_v29  ;;  %v741_v29 = vld [vmem:[#allocation3 + $0x4f0] sm:$0xff] }
 0x355   :  { %1896 = vmatprep.subr.bf16.mxu1 %v1057_v36  ;;  %4110 = vmatprep.subr.bf16.mxu0 %v1282_v43  ;;  %v714_v36 = vld [vmem:[#allocation3 + $0x418] sm:$0xff]  ;;  %v855_v43 = vld [vmem:[#allocation3 + $0x880] sm:$0xff]  ;;  %v1182_v33 = vunpack.c.h.s8.bf16 %v741_v29 }
 0x356   :  { %v1127_v45 = vunpack.c.h.s8.bf16 %v714_v36 }
 0x358   :  { %1897 = vmatpush1.bf16.msra.mxu1 %v1056_v49  ;;  %4111 = vmatpush3.bf16.msra.mxu0 %v1226_v51  ;;  %v1120_v49 = vunpack.c.l.s8.bf16 %v714_v36  ;;  %v713_v51 = vld [vmem:[#allocation3 + $0x410] sm:$0xff] }
 0x359   :  { %1898 = vmatprep.subr.bf16.mxu1 %v1064_v53  ;;  %4112 = vmatprep.subr.bf16.mxu0 %v1289_v55  ;;  %v1401_v53 = vunpack.c.l.s8.bf16 %v855_v43  ;;  %v1119_v54 = vunpack.c.l.s8.bf16 %v713_v51 }
 0x35c   :  { %1899 = vmatpush1.bf16.msra.mxu1 %v1063_v39  ;;  %4113 = vmatpush3.bf16.msra.mxu0 %v1233_v56  ;;  %v1408_v39 = vunpack.c.h.s8.bf16 %v855_v43  ;;  %v721_v56 = vld [vmem:[#allocation3 + $0x450] sm:$0xff]  ;;  %v755_v43 = vld [vmem:[#allocation3 + $0x560] sm:$0xff] }
 0x35d   :  { %1900 = vmatprep.subr.bf16.mxu1 %v1071_v57  ;;  %4114 = vmatprep.subr.bf16.mxu0 %v1296_v58  ;;  %v862_v57 = vld [vmem:[#allocation3 + $0x8b8] sm:$0xff]  ;;  %v1126_v58 = vunpack.c.h.s8.bf16 %v713_v51  ;;  %v1134_v17 = vunpack.c.l.s8.bf16 %v721_v56  ;;  %v1141_v8 = vunpack.c.h.s8.bf16 %v721_v56  ;;  %v1210_v51 = vunpack.c.h.s8.bf16 %v755_v43 }
 0x360   :  { %1901 = vmatpush1.bf16.msra.mxu1 %v1070_v60  ;;  %4115 = vmatpush3.bf16.msra.mxu0 %v1240_v61  ;;  %v720_v60 = vld [vmem:[#allocation3 + $0x448] sm:$0xff]  ;;  %v1415_v61 = vunpack.c.l.s8.bf16 %v862_v57 }
 0x361   :  { %1902 = vmatprep.subr.bf16.mxu1 %v1078_v62  ;;  %4116 = vmatprep.subr.bf16.mxu0 %v1303_v0  ;;  %v834_v62 = vld [vmem:[#allocation3 + $0x7d8] sm:$0xff]  ;;  %v1133_v63 = vunpack.c.l.s8.bf16 %v720_v60 }
 0x362   :  { %v1359_v0 = vunpack.c.l.s8.bf16 %v834_v62 }
 0x364   :  { %1903 = vmatpush1.bf16.msra.mxu1 %v1077_v9  ;;  %4117 = vmatpush3.bf16.msra.mxu0 %v1247_v10  ;;  %v1422_v9 = vunpack.c.h.s8.bf16 %v862_v57  ;;  %v728_v10 = vld [vmem:[#allocation3 + $0x488] sm:$0xff]  ;;  %v769_v57 = vld [vmem:[#allocation3 + $0x5d0] sm:$0xff] }
 0x365   :  { %1904 = vmatprep.subr.bf16.mxu1 %v1085_v11  ;;  %4118 = vmatprep.subr.bf16.mxu0 %v1310_v3  ;;  %v1140_v11 = vunpack.c.h.s8.bf16 %v720_v60  ;;  %v1366_v3 = vunpack.c.h.s8.bf16 %v834_v62  ;;  %v1148_v12 = vunpack.c.l.s8.bf16 %v728_v10 }
 0x368   :  { %1905 = vmatpush1.bf16.msra.mxu1 %v1084_v14  ;;  %4119 = vmatpush3.bf16.msra.mxu0 %v1254_v15  ;;  %v1147_v14 = vunpack.c.l.s8.bf16 %v727_v13  ;;  %v1155_v15 = vunpack.c.h.s8.bf16 %v728_v10 }
 0x369   :  { %1915 = vmatprep.subr.bf16.mxu1 %v1092_v16  ;;  %4126 = vmatprep.subr.bf16.mxu0 %v1373_v19  ;;  %v735_v16 = vld [vmem:[#allocation3 + $0x4c0] sm:$0xff] }
 0x36a   :  { %v1162_v19 = vunpack.c.l.s8.bf16 %v735_v16 }
 0x36b   :  { %1907 = vmatmul.mubr.bf16.vlgmr.msra.gmra.mrb[12].mxu1 %v4874_v42  ;;  %2191 = vmatmul.mubr.bf16.vlgmr.msra.gmra.mrb[28].mxu0 %v4907_v23  ;;  %v1331_v42 = vunpack.c.l.s8.bf16 %v820_v35  ;;  %v748_v35 = vld [vmem:[#allocation3 + $0x528] sm:$0xff] }
 0x36c   :  { %1916 = vmatpush1.bf16.msra.mxu1 %v1091_v22  ;;  %4127 = vmatpush3.bf16.msra.mxu0 %v1317_v24  ;;  %v1161_v22 = vunpack.c.l.s8.bf16 %v734_v20  ;;  %v1169_v24 = vunpack.c.h.s8.bf16 %v735_v16 }
 0x36d   :  { %1917 = vmatprep.subr.bf16.mxu1 %v1099_v25  ;;  %4128 = vmatprep.subr.bf16.mxu0 %v1380_v27  ;;  %v742_v25 = vld [vmem:[#allocation3 + $0x4f8] sm:$0xff]  ;;  %v1168_v27 = vunpack.c.h.s8.bf16 %v734_v20  ;;  %v4979_v20 = vstv %s4723_s12 }
 0x36e   :  { %2230 = vmatprep.mubr.bf16.mxu0 %v4919_v52  ;;  %1947 = vmatprep.mubr.bf16.mxu1 %v4905_v21  ;;  %v827_v21 = vld [vmem:[#allocation3 + $0x7a0] sm:$0xff]  ;;  %v1176_v28 = vunpack.c.l.s8.bf16 %v742_v25 }
 0x36f   :  { %v1345_v55 = vunpack.c.l.s8.bf16 %v827_v21  ;;  %v1352_v59 = vunpack.c.h.s8.bf16 %v827_v21  ;;  %v762_v21 = vld [vmem:[#allocation3 + $0x598] sm:$0xff] }
 0x370   :  { %1918 = vmatpush1.bf16.msra.mxu1 %v1098_v30  ;;  %4129 = vmatpush3.bf16.msra.mxu0 %v1324_v31  ;;  %v1175_v30 = vunpack.c.l.s8.bf16 %v741_v29  ;;  %v1183_v31 = vunpack.c.h.s8.bf16 %v742_v25 }
 0x371   :  { %1919 = vmatprep.subr.bf16.mxu1 %v1106_v32  ;;  %4130 = vmatprep.subr.bf16.mxu0 %v1387_v34  ;;  %v749_v32 = vld [vmem:[#allocation3 + $0x530] sm:$0xff] }
 0x372   :  { %v1190_v34 = vunpack.c.l.s8.bf16 %v749_v32 }
 0x374   :  { %1920 = vmatpush1.bf16.msra.mxu1 %v1105_v37  ;;  %4131 = vmatpush3.bf16.msra.mxu0 %v1331_v42  ;;  %v1189_v37 = vunpack.c.l.s8.bf16 %v748_v35  ;;  %v1197_v42 = vunpack.c.h.s8.bf16 %v749_v32 }
 0x375   :  { %1921 = vmatprep.subr.bf16.mxu1 %v1113_v38  ;;  %4132 = vmatprep.subr.bf16.mxu0 %v1394_v40  ;;  %v756_v38 = vld [vmem:[#allocation3 + $0x568] sm:$0xff]  ;;  %v1196_v40 = vunpack.c.h.s8.bf16 %v748_v35 }
 0x376   :  { %v1204_v36 = vunpack.c.l.s8.bf16 %v756_v38 }
 0x378   :  { %1922 = vmatpush1.bf16.msra.mxu1 %v1112_v47  ;;  %4133 = vmatpush3.bf16.msra.mxu0 %v1338_v48  ;;  %v1203_v47 = vunpack.c.l.s8.bf16 %v755_v43  ;;  %v1211_v48 = vunpack.c.h.s8.bf16 %v756_v38 }
 0x379   :  { %1923 = vmatprep.subr.bf16.mxu1 %v1120_v49  ;;  %4134 = vmatprep.subr.bf16.mxu0 %v1401_v53  ;;  %v763_v49 = vld [vmem:[#allocation3 + $0x5a0] sm:$0xff] }
 0x37a   :  { %v1218_v53 = vunpack.c.l.s8.bf16 %v763_v49 }
 0x37c   :  { %1924 = vmatpush1.bf16.msra.mxu1 %v1119_v54  ;;  %4135 = vmatpush3.bf16.msra.mxu0 %v1345_v55  ;;  %v1217_v54 = vunpack.c.l.s8.bf16 %v762_v21  ;;  %v1225_v55 = vunpack.c.h.s8.bf16 %v763_v49 }
 0x37d   :  { %1925 = vmatprep.subr.bf16.mxu1 %v1127_v45  ;;  %4136 = vmatprep.subr.bf16.mxu0 %v1408_v39  ;;  %v770_v45 = vld [vmem:[#allocation3 + $0x5d8] sm:$0xff]  ;;  %v1224_v39 = vunpack.c.h.s8.bf16 %v762_v21 }
 0x37e   :  { %v1232_v56 = vunpack.c.l.s8.bf16 %v770_v45 }
 0x380   :  { %1926 = vmatpush1.bf16.msra.mxu1 %v1126_v58  ;;  %4137 = vmatpush3.bf16.msra.mxu0 %v1352_v59  ;;  %v1231_v58 = vunpack.c.l.s8.bf16 %v769_v57  ;;  %v1239_v59 = vunpack.c.h.s8.bf16 %v770_v45 }
 0x381   :  { %1927 = vmatprep.subr.bf16.mxu1 %v1134_v17  ;;  %4138 = vmatprep.subr.bf16.mxu0 %v1415_v61  ;;  %v777_v17 = vld [vmem:[#allocation3 + $0x610] sm:$0xff] }
 0x382   :  { %v1246_v10 = vunpack.c.l.s8.bf16 %v777_v17 }
 0x384   :  { %1928 = vmatpush1.bf16.msra.mxu1 %v1133_v63  ;;  %4139 = vmatpush3.bf16.msra.mxu0 %v1359_v0  ;;  %v1238_v0 = vunpack.c.h.s8.bf16 %v769_v57 }
 0x385   :  { %1929 = vmatprep.subr.bf16.mxu1 %v1141_v8  ;;  %4140 = vmatprep.subr.bf16.mxu0 %v1422_v9 }
 0x388   :  { %1930 = vmatpush1.bf16.msra.mxu1 %v1140_v11  ;;  %4141 = vmatpush3.bf16.msra.mxu0 %v1366_v3  ;;  %v776_v11 = vld [vmem:[#allocation3 + $0x608] sm:$0xff] }
 0x389   :  { %1931 = vmatprep.subr.bf16.mxu1 %v1148_v12 }
 0x38b   :  { %2231 = vmatmul.mubr.bf16.vlgmr.msra.gmra.mrb[32].mxu0 %v4917_v50 }
 0x38c   :  { %1932 = vmatpush1.bf16.msra.mxu1 %v1147_v14 }
 0x38d   :  { %1933 = vmatprep.subr.bf16.mxu1 %v1155_v15 }
 0x390   :  { %1934 = vmatpush1.bf16.msra.mxu1 %v1154_v6 }
 0x391   :  { %1935 = vmatprep.subr.bf16.mxu1 %v1162_v19 }
 0x394   :  { %1936 = vmatpush1.bf16.msra.mxu1 %v1161_v22 }
 0x395   :  { %1937 = vmatprep.subr.bf16.mxu1 %v1169_v24 }
 0x398   :  { %1938 = vmatpush1.bf16.msra.mxu1 %v1168_v27 }
 0x399   :  { %1939 = vmatprep.subr.bf16.mxu1 %v1176_v28  ;;  %v1245_v28 = vunpack.c.l.s8.bf16 %v776_v11 }
 0x39c   :  { %1940 = vmatpush1.bf16.msra.mxu1 %v1175_v30 }
 0x39d   :  { %1941 = vmatprep.subr.bf16.mxu1 %v1183_v31 }
 0x3a0   :  { %1942 = vmatpush1.bf16.msra.mxu1 %v1182_v33  ;;  %v1253_v33 = vunpack.c.h.s8.bf16 %v777_v17 }
 0x3a1   :  { %1943 = vmatprep.subr.bf16.mxu1 %v1190_v34 }
 0x3a4   :  { %1944 = vmatpush1.bf16.msra.mxu1 %v1189_v37  ;;  %v1252_v37 = vunpack.c.h.s8.bf16 %v776_v11 }
 0x3a5   :  { %1945 = vmatprep.subr.bf16.mxu1 %v1197_v42  ;;  %v784_v42 = vld [vmem:[#allocation3 + $0x648] sm:$0xff] }
 0x3a6   :  { %v1260_v49 = vunpack.c.l.s8.bf16 %v784_v42  ;;  %v1267_v57 = vunpack.c.h.s8.bf16 %v784_v42 }
 0x3a8   :  { %1946 = vmatpush1.bf16.msra.mxu1 %v1196_v40 }
 0x3a9   :  { %1956 = vmatprep.subr.bf16.mxu1 %v1204_v36 }
 0x3ab   :  { %1948 = vmatmul.mubr.bf16.vlgmr.msra.gmra.mrb[12].mxu1 %v4902_v18  ;;  %v4958_v18 = vld [vmem:[#allocation13 + $0xa] sm:$0xff] }
 0x3ac   :  { %1957 = vmatpush1.bf16.msra.mxu1 %v1203_v47  ;;  %1988 = vmatprep.mubr.bf16.mxu1 %v4909_v26  ;;  %v4960_v26 = vld [vmem:[#allocation13 + $0x28] sm:$0xff]  ;;  %v2243_v60 = vrot.slane %v4958_v18, %v4829_v2  ;;  %v2251_v61 = vrot.slane %v4958_v18, %v4837_v5  ;;  %v2247_v62 = vrot.slane %v4958_v18, %v4834_v4 }
 0x3ad   :  { %1958 = vmatprep.subr.bf16.mxu1 %v1211_v48  ;;  %v2255_v63 = vrot.slane %v4958_v18, %v4842_v7  ;;  %v2287_v8 = vrot.slane %v4960_v26, %v4829_v2  ;;  %v2295_v9 = vrot.slane %v4960_v26, %v4837_v5  ;;  %v2291_v13 = vrot.slane %v4960_v26, %v4834_v4 }
 0x3ae   :  { %v2299_v14 = vrot.slane %v4960_v26, %v4842_v7 }
 0x3b0   :  { %1959 = vmatpush1.bf16.msra.mxu1 %v1210_v51  ;;  %v783_v51 = vld [vmem:[#allocation3 + $0x640] sm:$0xff] }
 0x3b1   :  { %1960 = vmatprep.subr.bf16.mxu1 %v1218_v53 }
 0x3b4   :  { %1961 = vmatpush1.bf16.msra.mxu1 %v1217_v54 }
 0x3b5   :  { %1962 = vmatprep.subr.bf16.mxu1 %v1225_v55 }
 0x3b8   :  { %1963 = vmatpush1.bf16.msra.mxu1 %v1224_v39 }
 0x3b9   :  { %1964 = vmatprep.subr.bf16.mxu1 %v1232_v56  ;;  %v1259_v56 = vunpack.c.l.s8.bf16 %v783_v51 }
 0x3bc   :  { %1965 = vmatpush1.bf16.msra.mxu1 %v1231_v58  ;;  %v791_v58 = vld [vmem:[#allocation3 + $0x680] sm:$0xff] }
 0x3bd   :  { %1966 = vmatprep.subr.bf16.mxu1 %v1239_v59  ;;  %v1266_v59 = vunpack.c.h.s8.bf16 %v783_v51  ;;  %v1274_v17 = vunpack.c.l.s8.bf16 %v791_v58 }
 0x3be   :  { %v1621_v3 = vpop.f32.mrb[8].mxu1  ;;  %v1826_v12 = vpop.f32.mrb[12].mxu0 }
 0x3bf   :  { %v2275_v15 = vmul.f32 %v2243_v60, %v1621_v3  ;;  %v2277_v16 = vmul.f32 %v2251_v61, %v1826_v12  ;;  %v1623_v6 = vpop.f32.mrb[9].mxu1  ;;  %v1828_v19 = vpop.f32.mrb[13].mxu0  ;;  %v790_v60 = vld [vmem:[#allocation3 + $0x678] sm:$0xff]  ;;  %v805_v3 = vld [vmem:[#allocation3 + $0x6f0] sm:$0xff] }
 0x3c0   :  { %v2276_v22 = vmul.f32 %v2247_v62, %v1623_v6  ;;  %v2278_v24 = vmul.f32 %v2255_v63, %v1828_v19  ;;  %v1625_v25 = vpop.f32.mrb[10].mxu1  ;;  %v1830_v27 = vpop.f32.mrb[14].mxu0  ;;  %1967 = vmatpush1.bf16.msra.mxu1 %v1238_v0  ;;  %v1273_v61 = vunpack.c.l.s8.bf16 %v790_v60  ;;  %v1281_v62 = vunpack.c.h.s8.bf16 %v791_v58  ;;  %v798_v63 = vld [vmem:[#allocation3 + $0x6b8] sm:$0xff] }
 0x3c1   :  { %v2319_v29 = vadd.f32 %v2287_v8, %v2275_v15  ;;  %v2321_v30 = vadd.f32 %v2295_v9, %v2277_v16  ;;  %v1626_v31 = vpop.f32.mrb[11].mxu1  ;;  %v1831_v32 = vpop.f32.mrb[15].mxu0  ;;  %1968 = vmatprep.subr.bf16.mxu1 %v1246_v10  ;;  %v1280_v0 = vunpack.c.h.s8.bf16 %v790_v60  ;;  %v1288_v8 = vunpack.c.l.s8.bf16 %v798_v63  ;;  %v797_v9 = vld [vmem:[#allocation3 + $0x6b0] sm:$0xff]  ;;  %v812_v27 = vld [vmem:[#allocation3 + $0x728] sm:$0xff] }
 0x3c2   :  { %v2320_v34 = vadd.f32 %v2291_v13, %v2276_v22  ;;  %v2322_v35 = vadd.f32 %v2299_v14, %v2278_v24  ;;  %v1287_v10 = vunpack.c.l.s8.bf16 %v797_v9  ;;  %v1295_v11 = vunpack.c.h.s8.bf16 %v798_v63  ;;  %v804_v14 = vld [vmem:[#allocation3 + $0x6e8] sm:$0xff] }
 0x3c3   :  { %vm2326_vm11 = vcmp.gt.f32.partialorder %v2319_v29, 0.0  ;;  %v2334_v38 = vmul.f32 %v4979_v20, %v2319_v29  ;;  %vm2328_vm12 = vcmp.gt.f32.partialorder %v2321_v30, 0.0  ;;  %v2336_v40 = vmul.f32 %v4979_v20, %v2321_v30 }
 0x3c4   :  { %vm2327_vm13 = vcmp.gt.f32.partialorder %v2320_v34, 0.0  ;;  %v2335_v36 = vmul.f32 %v4979_v20, %v2320_v34  ;;  %vm2329_vm14 = vcmp.gt.f32.partialorder %v2322_v35, 0.0  ;;  %v2337_v43 = vmul.f32 %v4979_v20, %v2322_v35  ;;  %1969 = vmatpush1.bf16.msra.mxu1 %v1245_v28 }
 0x3c5   :  { %v2341_v47 = vsel %vm2326_vm11, %v2319_v29, %v2334_v38  ;;  %v2343_v48 = vsel %vm2328_vm12, %v2321_v30, %v2336_v40  ;;  %1970 = vmatprep.subr.bf16.mxu1 %v1253_v33  ;;  %v1294_v12 = vunpack.c.h.s8.bf16 %v797_v9  ;;  %v1302_v13 = vunpack.c.l.s8.bf16 %v805_v3  ;;  %v811_v30 = vld [vmem:[#allocation3 + $0x720] sm:$0xff]  ;;  %v826_v40 = vld [vmem:[#allocation3 + $0x798] sm:$0xff] }
 0x3c6   :  { %v4985_v53 = vpack.c.bf16 %v2341_v47, %v2341_v47  ;;  %v4987_v21 = vpack.c.bf16 %v2343_v48, %v2343_v48  ;;  %v2342_v54 = vsel %vm2327_vm13, %v2320_v34, %v2335_v36  ;;  %v2344_v55 = vsel %vm2329_vm14, %v2322_v35, %v2337_v43  ;;  %v819_v33 = vld [vmem:[#allocation3 + $0x760] sm:$0xff]  ;;  %v825_v47 = vld [vmem:[#allocation3 + $0x790] sm:$0xff] }
 0x3c7   :  { %v4989_v45 = vpack.c.bf16 %v2342_v54, %v2342_v54  ;;  %v4991_v39 = vpack.c.bf16 %v2344_v55, %v2344_v55  ;;  %v1301_v6 = vunpack.c.l.s8.bf16 %v804_v14  ;;  %v1309_v24 = vunpack.c.h.s8.bf16 %v805_v3  ;;  %v832_v54 = vld [vmem:[#allocation3 + $0x7c8] sm:$0xff] }
 0x3c8   :  { %1971 = vmatpush1.bf16.msra.mxu1 %v1252_v37  ;;  %v1308_v28 = vunpack.c.h.s8.bf16 %v804_v14  ;;  %v1316_v29 = vunpack.c.l.s8.bf16 %v812_v27  ;;  %v1315_v31 = vunpack.c.l.s8.bf16 %v811_v30  ;;  %v1323_v32 = vunpack.c.h.s8.bf16 %v812_v27  ;;  %v818_v37 = vld [vmem:[#allocation3 + $0x758] sm:$0xff]  ;;  %v861_v27 = vld [vmem:[#allocation3 + $0x8b0] sm:$0xff] }
 0x3c9   :  { %1972 = vmatprep.subr.bf16.mxu1 %v1260_v49  ;;  %v1322_v34 = vunpack.c.h.s8.bf16 %v811_v30  ;;  %v1330_v35 = vunpack.c.l.s8.bf16 %v819_v33  ;;  %v1329_v42 = vunpack.c.l.s8.bf16 %v818_v37  ;;  %v1337_v38 = vunpack.c.h.s8.bf16 %v819_v33  ;;  %v833_v49 = vld [vmem:[#allocation3 + $0x7d0] sm:$0xff]  ;;  %v860_v30 = vld [vmem:[#allocation3 + $0x8a8] sm:$0xff] }
 0x3ca   :  { %v1336_v36 = vunpack.c.h.s8.bf16 %v818_v37  ;;  %v1344_v43 = vunpack.c.l.s8.bf16 %v826_v40  ;;  %v1343_v48 = vunpack.c.l.s8.bf16 %v825_v47  ;;  %v1358_v51 = vunpack.c.l.s8.bf16 %v833_v49 }
 0x3cb   :  { %v1364_v63 = vunpack.c.h.s8.bf16 %v832_v54  ;;  %v1413_v33 = vunpack.c.l.s8.bf16 %v860_v30  ;;  %v1421_v37 = vunpack.c.h.s8.bf16 %v861_v27 }
 0x3cc   :  { %1973 = vmatpush1.bf16.msra.mxu1 %v1259_v56 }
 0x3cd   :  { %1974 = vmatprep.subr.bf16.mxu1 %v1267_v57  ;;  %v1357_v57 = vunpack.c.l.s8.bf16 %v832_v54 }
 0x3d0   :  { %1975 = vmatpush1.bf16.msra.mxu1 %v1266_v59 }
 0x3d1   :  { %1976 = vmatprep.subr.bf16.mxu1 %v1274_v17  ;;  %v1365_v17 = vunpack.c.h.s8.bf16 %v833_v49 }
 0x3d4   :  { %1977 = vmatpush1.bf16.msra.mxu1 %v1273_v61  ;;  %v840_v61 = vld [vmem:[#allocation3 + $0x808] sm:$0xff] }
 0x3d5   :  { %1978 = vmatprep.subr.bf16.mxu1 %v1281_v62 }
 0x3d8   :  { %1979 = vmatpush1.bf16.msra.mxu1 %v1280_v0  ;;  %v1372_v0 = vunpack.c.l.s8.bf16 %v840_v61 }
 0x3d9   :  { %1980 = vmatprep.subr.bf16.mxu1 %v1288_v8  ;;  %v839_v8 = vld [vmem:[#allocation3 + $0x800] sm:$0xff] }
 0x3da   :  { %v1371_v9 = vunpack.c.l.s8.bf16 %v839_v8  ;;  %v1378_v3 = vunpack.c.h.s8.bf16 %v839_v8  ;;  %v2303_v8 = vrot.slane %v4960_v26, %v4872_v41 }
 0x3dc   :  { %1981 = vmatpush1.bf16.msra.mxu1 %v1287_v10  ;;  %v1379_v10 = vunpack.c.h.s8.bf16 %v840_v61 }
 0x3dd   :  { %1982 = vmatprep.subr.bf16.mxu1 %v1295_v11  ;;  %v847_v11 = vld [vmem:[#allocation3 + $0x840] sm:$0xff] }
 0x3de   :  { %v4054_v15 = vpop.f32.mrb[16].mxu0 }
 0x3df   :  { %v4055_v16 = vpop.f32.mrb[17].mxu0 }
 0x3e0   :  { %1983 = vmatpush1.bf16.msra.mxu1 %v1294_v12  ;;  %v4056_v19 = vadd.f32 %v4055_v16, %v4054_v15  ;;  %v4057_v22 = vpop.f32.mrb[18].mxu0  ;;  %v1386_v12 = vunpack.c.l.s8.bf16 %v847_v11  ;;  %v1393_v15 = vunpack.c.h.s8.bf16 %v847_v11  ;;  %v854_v16 = vld [vmem:[#allocation3 + $0x878] sm:$0xff] }
 0x3e1   :  { %1984 = vmatprep.subr.bf16.mxu1 %v1302_v13  ;;  %v4058_v25 = vpop.f32.mrb[19].mxu0  ;;  %v846_v13 = vld [vmem:[#allocation3 + $0x838] sm:$0xff]  ;;  %v853_v22 = vld [vmem:[#allocation3 + $0x870] sm:$0xff] }
 0x3e2   :  { %v1385_v14 = vunpack.c.l.s8.bf16 %v846_v13  ;;  %v1407_v25 = vunpack.c.h.s8.bf16 %v854_v16 }
 0x3e4   :  { %1985 = vmatpush1.bf16.msra.mxu1 %v1301_v6  ;;  %v1392_v6 = vunpack.c.h.s8.bf16 %v846_v13 }
 0x3e5   :  { %1986 = vmatprep.subr.bf16.mxu1 %v1309_v24  ;;  %v1399_v24 = vunpack.c.l.s8.bf16 %v853_v22 }
 0x3e8   :  { %1987 = vmatpush1.bf16.msra.mxu1 %v1308_v28  ;;  %v1406_v28 = vunpack.c.h.s8.bf16 %v853_v22 }
 0x3e9   :  { %1997 = vmatprep.subr.bf16.mxu1 %v1316_v29  ;;  %v1414_v29 = vunpack.c.l.s8.bf16 %v861_v27 }
 0x3eb   :  { %1989 = vmatmul.mubr.bf16.vlgmr.msra.gmra.mrb[12].mxu1 %v4907_v23  ;;  %v1351_v23 = vunpack.c.h.s8.bf16 %v826_v40  ;;  %v1420_v40 = vunpack.c.h.s8.bf16 %v860_v30 }
 0x3ec   :  { %1998 = vmatpush1.bf16.msra.mxu1 %v1315_v31  ;;  %2029 = vmatprep.mubr.bf16.mxu1 %v4919_v52  ;;  %v1350_v52 = vunpack.c.h.s8.bf16 %v825_v47 }
 0x3ed   :  { %1999 = vmatprep.subr.bf16.mxu1 %v1323_v32 }
 0x3f0   :  { %2000 = vmatpush1.bf16.msra.mxu1 %v1322_v34 }
 0x3f1   :  { %2001 = vmatprep.subr.bf16.mxu1 %v1330_v35 }
 0x3f4   :  { %2002 = vmatpush1.bf16.msra.mxu1 %v1329_v42 }
 0x3f5   :  { %2003 = vmatprep.subr.bf16.mxu1 %v1337_v38 }
 0x3f8   :  { %2004 = vmatpush1.bf16.msra.mxu1 %v1336_v36 }
 0x3f9   :  { %2005 = vmatprep.subr.bf16.mxu1 %v1344_v43 }
 0x3fc   :  { %2006 = vmatpush1.bf16.msra.mxu1 %v1343_v48 }
 0x3fd   :  { %2007 = vmatprep.subr.bf16.mxu1 %v1351_v23 }
 0x3fe   :  { %v4076_v55 = vpop.f32.mrb[20].mxu0 }
 0x3ff   :  { %v4077_v56 = vpop.f32.mrb[21].mxu0 }
 0x400   :  { %2008 = vmatpush1.bf16.msra.mxu1 %v1350_v52  ;;  %v4078_v58 = vadd.f32 %v4077_v56, %v4076_v55  ;;  %v4079_v59 = vpop.f32.mrb[22].mxu0  ;;  %v2267_v55 = vrot.slane %v4958_v18, %v4882_v46 }
 0x401   :  { %2009 = vmatprep.subr.bf16.mxu1 %v1358_v51  ;;  %v4080_v60 = vpop.f32.mrb[23].mxu0  ;;  %v2311_v59 = vrot.slane %v4960_v26, %v4882_v46  ;;  %v2307_v46 = vrot.slane %v4960_v26, %v4877_v44 }
 0x402   :  { %v2113_v62 = vadd.f32 %v4078_v58, %v4056_v19  ;;  %v1400_v19 = vunpack.c.l.s8.bf16 %v854_v16 }
 0x404   :  { %2010 = vmatpush1.bf16.msra.mxu1 %v1357_v57 }
 0x405   :  { %2011 = vmatprep.subr.bf16.mxu1 %v1365_v17 }
 0x408   :  { %2012 = vmatpush1.bf16.msra.mxu1 %v1364_v63  ;;  %v2259_v63 = vrot.slane %v4958_v18, %v4872_v41 }
 0x409   :  { %2013 = vmatprep.subr.bf16.mxu1 %v1372_v0  ;;  %v2263_v0 = vrot.slane %v4958_v18, %v4877_v44 }
 0x40c   :  { %2014 = vmatpush1.bf16.msra.mxu1 %v1371_v9 }
 0x40d   :  { %2015 = vmatprep.subr.bf16.mxu1 %v1379_v10 }
 0x410   :  { %2016 = vmatpush1.bf16.msra.mxu1 %v1378_v3 }
 0x411   :  { %2017 = vmatprep.subr.bf16.mxu1 %v1386_v12 }
 0x414   :  { %2018 = vmatpush1.bf16.msra.mxu1 %v1385_v14 }
 0x415   :  { %2019 = vmatprep.subr.bf16.mxu1 %v1393_v15 }
 0x418   :  { %2020 = vmatpush1.bf16.msra.mxu1 %v1392_v6 }
 0x419   :  { %2021 = vmatprep.subr.bf16.mxu1 %v1400_v19 }
 0x41c   :  { %2022 = vmatpush1.bf16.msra.mxu1 %v1399_v24 }
 0x41d   :  { %2023 = vmatprep.subr.bf16.mxu1 %v1407_v25 }
 0x41e   :  { %v4098_v31 = vpop.f32.mrb[24].mxu0 }
 0x41f   :  { %v4099_v32 = vpop.f32.mrb[25].mxu0 }
 0x420   :  { %2024 = vmatpush1.bf16.msra.mxu1 %v1406_v28  ;;  %v4100_v34 = vadd.f32 %v4099_v32, %v4098_v31  ;;  %v4101_v35 = vpop.f32.mrb[26].mxu0 }
 0x421   :  { %2025 = vmatprep.subr.bf16.mxu1 %v1414_v29  ;;  %v4102_v42 = vpop.f32.mrb[27].mxu0 }
 0x422   :  { %v2153_v38 = vadd.f32 %v4100_v34, %v2113_v62 }
 0x424   :  { %2026 = vmatpush1.bf16.msra.mxu1 %v1413_v33 }
 0x425   :  { %2027 = vmatprep.subr.bf16.mxu1 %v1421_v37 }
 0x428   :  { %2028 = vmatpush1.bf16.msra.mxu1 %v1420_v40 }
 0x42b   :  { %2030 = vmatmul.mubr.bf16.vlgmr.msra.gmra.mrb[12].mxu1 %v4917_v50 }
 0x43e   :  { %v4120_v36 = vpop.f32.mrb[28].mxu0 }
 0x43f   :  { %v4121_v43 = vpop.f32.mrb[29].mxu0 }
 0x440   :  { %v4122_v47 = vadd.f32 %v4121_v43, %v4120_v36  ;;  %v4123_v48 = vpop.f32.mrb[30].mxu0 }
 0x441   :  { %v4124_v23 = vpop.f32.mrb[31].mxu0 }
 0x442   :  { %v2193_v49 = vadd.f32 %v4122_v47, %v2153_v38 }
 0x45e   :  { %v4142_v52 = vpop.f32.mrb[32].mxu0 }
 0x45f   :  { %v4143_v51 = vpop.f32.mrb[33].mxu0 }
 0x460   :  { %v4144_v54 = vadd.f32 %v4143_v51, %v4142_v52  ;;  %v4145_v56 = vpop.f32.mrb[34].mxu0 }
 0x461   :  { %v4146_v57 = vpop.f32.mrb[35].mxu0 }
 0x462   :  { %v2233_v58 = vadd.f32 %v4144_v54, %v2193_v49 }
 0x464   :  { %v2281_v17 = vmul.f32 %v2267_v55, %v2233_v58 }
 0x466   :  { %v2325_v50 = vadd.f32 %v2311_v59, %v2281_v17 }
 0x468   :  { %vm2332_vm15 = vcmp.gt.f32.partialorder %v2325_v50, 0.0  ;;  %v2340_v60 = vmul.f32 %v4979_v20, %v2325_v50 }
 0x46a   :  { %v2347_v61 = vsel %vm2332_vm15, %v2325_v50, %v2340_v60 }
 0x46b   :  { %v5001_v62 = vpack.c.bf16 %v2347_v61, %v2347_v61 }
 0x4fe   :  { %v2031_v9 = vpop.f32.mrb[12].mxu1 }
 0x4ff   :  { %v2279_v10 = vmul.f32 %v2259_v63, %v2031_v9  ;;  %v2033_v11 = vpop.f32.mrb[13].mxu1 }
 0x500   :  { %v2280_v3 = vmul.f32 %v2263_v0, %v2033_v11  ;;  %v2035_v12 = vpop.f32.mrb[14].mxu1 }
 0x501   :  { %v2323_v13 = vadd.f32 %v2303_v8, %v2279_v10  ;;  %v2036_v14 = vpop.f32.mrb[15].mxu1 }
 0x502   :  { %v2324_v15 = vadd.f32 %v2307_v46, %v2280_v3 }
 0x503   :  { %vm2330_vm0 = vcmp.gt.f32.partialorder %v2323_v13, 0.0  ;;  %v2338_v16 = vmul.f32 %v4979_v20, %v2323_v13 }
 0x504   :  { %vm2331_vm1 = vcmp.gt.f32.partialorder %v2324_v15, 0.0  ;;  %v2339_v18 = vmul.f32 %v4979_v20, %v2324_v15 }
 0x505   :  { %v2345_v6 = vsel %vm2330_vm0, %v2323_v13, %v2338_v16 }
 0x506   :  { %v5013_v19 = vpack.c.bf16 %v2345_v6, %v2345_v6  ;;  %v2346_v41 = vsel %vm2331_vm1, %v2324_v15, %v2339_v18 }
 0x507   :  { %v5015_v22 = vpack.c.bf16 %v2346_v41, %v2346_v41 }
 0x508   :  { %4612 = dma.done.wait [#allocation8 + $0x2], 14336 }
 0x509   :  { %4613 = vsyncadd [#allocation8 + $0x2], 4294952960  ;;  %2727 = vmatprep.mubr.bf16.mxu0 %v4989_v45  ;;  %2891 = vmatprep.mubr.bf16.mxu1 %v4989_v45  ;;  %v2360_v44 = vld [vmem:[#allocation4 + $0x8] sm:$0xff]  ;;  %v2362_v26 = vld [vmem:[#allocation4 + $0x18] sm:$0xff] }
 0x50a   :  { %v2359_v24 = vld [vmem:[#allocation4] sm:$0xff]  ;;  %v2472_v25 = vunpack.c.l.s8.bf16 %v2360_v44  ;;  %v2476_v27 = vunpack.c.h.s8.bf16 %v2360_v44  ;;  %v2474_v28 = vunpack.c.l.s8.bf16 %v2362_v26  ;;  %v2478_v29 = vunpack.c.h.s8.bf16 %v2362_v26  ;;  %v2361_v20 = vld [vmem:[#allocation4 + $0x10] sm:$0xff]  ;;  %v2364_v32 = vld [vmem:[#allocation4 + $0x28] sm:$0xff] }
 0x50b   :  { %v2471_v30 = vunpack.c.l.s8.bf16 %v2359_v24  ;;  %v2473_v31 = vunpack.c.l.s8.bf16 %v2361_v20  ;;  %v2366_v33 = vld [vmem:[#allocation4 + $0x38] sm:$0xff]  ;;  %v2475_v34 = vunpack.c.h.s8.bf16 %v2359_v24  ;;  %v2477_v35 = vunpack.c.h.s8.bf16 %v2361_v20  ;;  %v2363_v42 = vld [vmem:[#allocation4 + $0x20] sm:$0xff]  ;;  %v2365_v38 = vld [vmem:[#allocation4 + $0x30] sm:$0xff] }
 0x50c   :  { %2695 = vmatprep.subr.bf16.mxu0 %v2472_v25  ;;  %2859 = vmatprep.subr.bf16.mxu1 %v2474_v28  ;;  %v2480_v45 = vunpack.c.l.s8.bf16 %v2364_v32  ;;  %v2482_v37 = vunpack.c.l.s8.bf16 %v2366_v33  ;;  %v2479_v40 = vunpack.c.l.s8.bf16 %v2363_v42  ;;  %v2481_v36 = vunpack.c.l.s8.bf16 %v2365_v38  ;;  %v2368_v48 = vld [vmem:[#allocation4 + $0x48] sm:$0xff]  ;;  %v2370_v23 = vld [vmem:[#allocation4 + $0x58] sm:$0xff]  ;;  %v2367_v55 = vld [vmem:[#allocation4 + $0x40] sm:$0xff] }
 0x50d   :  { %2696 = vmatpush1.bf16.msra.mxu0 %v2471_v30  ;;  %2860 = vmatpush1.bf16.msra.mxu1 %v2473_v31  ;;  %v2484_v43 = vunpack.c.h.s8.bf16 %v2364_v32  ;;  %v2486_v47 = vunpack.c.h.s8.bf16 %v2366_v33  ;;  %v2483_v49 = vunpack.c.h.s8.bf16 %v2363_v42  ;;  %v2485_v52 = vunpack.c.h.s8.bf16 %v2365_v38  ;;  %v2369_v56 = vld [vmem:[#allocation4 + $0x50] sm:$0xff]  ;;  %v2372_v50 = vld [vmem:[#allocation4 + $0x68] sm:$0xff]  ;;  %v2374_v60 = vld [vmem:[#allocation4 + $0x78] sm:$0xff] }
 0x50e   :  { %2697 = vmatprep.subr.bf16.mxu0 %v2476_v27  ;;  %2861 = vmatprep.subr.bf16.mxu1 %v2478_v29  ;;  %v2488_v51 = vunpack.c.l.s8.bf16 %v2368_v48  ;;  %v2490_v54 = vunpack.c.l.s8.bf16 %v2370_v23  ;;  %v2487_v57 = vunpack.c.l.s8.bf16 %v2367_v55  ;;  %v2489_v58 = vunpack.c.l.s8.bf16 %v2369_v56  ;;  %v2371_v9 = vld [vmem:[#allocation4 + $0x60] sm:$0xff]  ;;  %v2373_v46 = vld [vmem:[#allocation4 + $0x70] sm:$0xff]  ;;  %v2376_v13 = vld [vmem:[#allocation4 + $0x88] sm:$0xff] }
 0x50f   :  { %v2492_v59 = vunpack.c.h.s8.bf16 %v2368_v48  ;;  %v2494_v17 = vunpack.c.h.s8.bf16 %v2370_v23  ;;  %v2491_v61 = vunpack.c.h.s8.bf16 %v2367_v55  ;;  %v2493_v63 = vunpack.c.h.s8.bf16 %v2369_v56  ;;  %v2378_v14 = vld [vmem:[#allocation4 + $0x98] sm:$0xff]  ;;  %v2375_v41 = vld [vmem:[#allocation4 + $0x80] sm:$0xff]  ;;  %v2377_v44 = vld [vmem:[#allocation4 + $0x90] sm:$0xff] }
 0x510   :  { %v2496_v0 = vunpack.c.l.s8.bf16 %v2372_v50  ;;  %v2498_v8 = vunpack.c.l.s8.bf16 %v2374_v60  ;;  %v2495_v10 = vunpack.c.l.s8.bf16 %v2371_v9  ;;  %v2497_v11 = vunpack.c.l.s8.bf16 %v2373_v46  ;;  %v2380_v28 = vld [vmem:[#allocation4 + $0xa8] sm:$0xff]  ;;  %v2382_v29 = vld [vmem:[#allocation4 + $0xb8] sm:$0xff]  ;;  %v2379_v33 = vld [vmem:[#allocation4 + $0xa0] sm:$0xff] }
 0x511   :  { %2698 = vmatpush1.bf16.msra.mxu0 %v2475_v34  ;;  %2862 = vmatpush1.bf16.msra.mxu1 %v2477_v35  ;;  %v2500_v3 = vunpack.c.h.s8.bf16 %v2372_v50  ;;  %v2502_v12 = vunpack.c.h.s8.bf16 %v2374_v60  ;;  %v2499_v15 = vunpack.c.h.s8.bf16 %v2371_v9  ;;  %v2501_v16 = vunpack.c.h.s8.bf16 %v2373_v46  ;;  %v2381_v34 = vld [vmem:[#allocation4 + $0xb0] sm:$0xff]  ;;  %v2384_v38 = vld [vmem:[#allocation4 + $0xc8] sm:$0xff]  ;;  %v2383_v23 = vld [vmem:[#allocation4 + $0xc0] sm:$0xff] }
 0x512   :  { %2699 = vmatprep.subr.bf16.mxu0 %v2480_v45  ;;  %2863 = vmatprep.subr.bf16.mxu1 %v2482_v37  ;;  %v2504_v18 = vunpack.c.l.s8.bf16 %v2376_v13  ;;  %v2506_v6 = vunpack.c.l.s8.bf16 %v2378_v14  ;;  %v2503_v26 = vunpack.c.l.s8.bf16 %v2375_v41  ;;  %v2505_v24 = vunpack.c.l.s8.bf16 %v2377_v44  ;;  %v2388_v56 = vld [vmem:[#allocation4 + $0xe8] sm:$0xff]  ;;  %v2387_v60 = vld [vmem:[#allocation4 + $0xe0] sm:$0xff] }
 0x513   :  { %v2508_v25 = vunpack.c.h.s8.bf16 %v2376_v13  ;;  %v2510_v27 = vunpack.c.h.s8.bf16 %v2378_v14  ;;  %v2507_v20 = vunpack.c.h.s8.bf16 %v2375_v41  ;;  %v2509_v30 = vunpack.c.h.s8.bf16 %v2377_v44  ;;  %v2392_v46 = vld [vmem:[#allocation4 + $0x108] sm:$0xff]  ;;  %v2391_v14 = vld [vmem:[#allocation4 + $0x100] sm:$0xff] }
 0x514   :  { %v2512_v31 = vunpack.c.l.s8.bf16 %v2380_v28  ;;  %v2514_v32 = vunpack.c.l.s8.bf16 %v2382_v29  ;;  %v2511_v35 = vunpack.c.l.s8.bf16 %v2379_v33  ;;  %v2513_v45 = vunpack.c.l.s8.bf16 %v2381_v34  ;;  %v2396_v44 = vld [vmem:[#allocation4 + $0x128] sm:$0xff] }
 0x515   :  { %2700 = vmatpush1.bf16.msra.mxu0 %v2479_v40  ;;  %2864 = vmatpush1.bf16.msra.mxu1 %v2481_v36  ;;  %v2516_v37 = vunpack.c.h.s8.bf16 %v2380_v28  ;;  %v2518_v42 = vunpack.c.h.s8.bf16 %v2382_v29  ;;  %v2386_v40 = vld [vmem:[#allocation4 + $0xd8] sm:$0xff]  ;;  %v2515_v36 = vunpack.c.h.s8.bf16 %v2379_v33  ;;  %v2395_v29 = vld [vmem:[#allocation4 + $0x120] sm:$0xff]  ;;  %v2400_v33 = vld [vmem:[#allocation4 + $0x148] sm:$0xff] }
 0x516   :  { %2701 = vmatprep.subr.bf16.mxu0 %v2484_v43  ;;  %2865 = vmatprep.subr.bf16.mxu1 %v2486_v47  ;;  %v2517_v43 = vunpack.c.h.s8.bf16 %v2381_v34  ;;  %v2520_v47 = vunpack.c.l.s8.bf16 %v2384_v38  ;;  %v2522_v48 = vunpack.c.l.s8.bf16 %v2386_v40  ;;  %v2526_v55 = vunpack.c.h.s8.bf16 %v2386_v40  ;;  %v2402_v34 = vld [vmem:[#allocation4 + $0x158] sm:$0xff] }
 0x519   :  { %2702 = vmatpush1.bf16.msra.mxu0 %v2483_v49  ;;  %2866 = vmatpush1.bf16.msra.mxu1 %v2485_v52  ;;  %v2385_v49 = vld [vmem:[#allocation4 + $0xd0] sm:$0xff]  ;;  %v2519_v52 = vunpack.c.l.s8.bf16 %v2383_v23 }
 0x51a   :  { %2703 = vmatprep.subr.bf16.mxu0 %v2488_v51  ;;  %2867 = vmatprep.subr.bf16.mxu1 %v2490_v54  ;;  %v2521_v51 = vunpack.c.l.s8.bf16 %v2385_v49  ;;  %v2524_v54 = vunpack.c.h.s8.bf16 %v2384_v38  ;;  %v2399_v38 = vld [vmem:[#allocation4 + $0x140] sm:$0xff] }
 0x51b   :  { %v2551_v40 = vunpack.c.l.s8.bf16 %v2399_v38 }
 0x51d   :  { %2704 = vmatpush1.bf16.msra.mxu0 %v2487_v57  ;;  %2868 = vmatpush1.bf16.msra.mxu1 %v2489_v58  ;;  %v2390_v57 = vld [vmem:[#allocation4 + $0xf8] sm:$0xff]  ;;  %v2523_v58 = vunpack.c.h.s8.bf16 %v2383_v23 }
 0x51e   :  { %2705 = vmatprep.subr.bf16.mxu0 %v2492_v59  ;;  %2869 = vmatprep.subr.bf16.mxu1 %v2494_v17  ;;  %v2525_v59 = vunpack.c.h.s8.bf16 %v2385_v49  ;;  %v2528_v17 = vunpack.c.l.s8.bf16 %v2388_v56  ;;  %v2530_v50 = vunpack.c.l.s8.bf16 %v2390_v57  ;;  %v2534_v9 = vunpack.c.h.s8.bf16 %v2390_v57  ;;  %v2406_v23 = vld [vmem:[#allocation4 + $0x178] sm:$0xff] }
 0x51f   :  { %v2555_v49 = vunpack.c.h.s8.bf16 %v2399_v38  ;;  %v2422_v38 = vld [vmem:[#allocation4 + $0x1f8] sm:$0xff] }
 0x521   :  { %2706 = vmatpush1.bf16.msra.mxu0 %v2491_v61  ;;  %2870 = vmatpush1.bf16.msra.mxu1 %v2493_v63  ;;  %v2389_v61 = vld [vmem:[#allocation4 + $0xf0] sm:$0xff]  ;;  %v2527_v63 = vunpack.c.l.s8.bf16 %v2387_v60 }
 0x522   :  { %2707 = vmatprep.subr.bf16.mxu0 %v2496_v0  ;;  %2871 = vmatprep.subr.bf16.mxu1 %v2498_v8  ;;  %v2529_v0 = vunpack.c.l.s8.bf16 %v2389_v61  ;;  %v2532_v8 = vunpack.c.h.s8.bf16 %v2388_v56  ;;  %v2405_v56 = vld [vmem:[#allocation4 + $0x170] sm:$0xff] }
 0x525   :  { %2708 = vmatpush1.bf16.msra.mxu0 %v2495_v10  ;;  %2872 = vmatpush1.bf16.msra.mxu1 %v2497_v11  ;;  %v2394_v10 = vld [vmem:[#allocation4 + $0x118] sm:$0xff]  ;;  %v2531_v11 = vunpack.c.h.s8.bf16 %v2387_v60 }
 0x526   :  { %2709 = vmatprep.subr.bf16.mxu0 %v2500_v3  ;;  %2873 = vmatprep.subr.bf16.mxu1 %v2502_v12  ;;  %v2533_v3 = vunpack.c.h.s8.bf16 %v2389_v61  ;;  %v2536_v12 = vunpack.c.l.s8.bf16 %v2392_v46  ;;  %v2538_v13 = vunpack.c.l.s8.bf16 %v2394_v10  ;;  %v2542_v41 = vunpack.c.h.s8.bf16 %v2394_v10  ;;  %v2410_v60 = vld [vmem:[#allocation4 + $0x198] sm:$0xff] }
 0x529   :  { %2710 = vmatpush1.bf16.msra.mxu0 %v2499_v15  ;;  %2874 = vmatpush1.bf16.msra.mxu1 %v2501_v16  ;;  %v2393_v15 = vld [vmem:[#allocation4 + $0x110] sm:$0xff]  ;;  %v2535_v16 = vunpack.c.l.s8.bf16 %v2391_v14 }
 0x52a   :  { %2711 = vmatprep.subr.bf16.mxu0 %v2504_v18  ;;  %2875 = vmatprep.subr.bf16.mxu1 %v2506_v6  ;;  %v2537_v18 = vunpack.c.l.s8.bf16 %v2393_v15  ;;  %v2540_v6 = vunpack.c.h.s8.bf16 %v2392_v46  ;;  %v2409_v46 = vld [vmem:[#allocation4 + $0x190] sm:$0xff] }
 0x52d   :  { %2712 = vmatpush1.bf16.msra.mxu0 %v2503_v26  ;;  %2876 = vmatpush1.bf16.msra.mxu1 %v2505_v24  ;;  %v2398_v26 = vld [vmem:[#allocation4 + $0x138] sm:$0xff]  ;;  %v2539_v24 = vunpack.c.h.s8.bf16 %v2391_v14 }
 0x52e   :  { %2713 = vmatprep.subr.bf16.mxu0 %v2508_v25  ;;  %2877 = vmatprep.subr.bf16.mxu1 %v2510_v27  ;;  %v2541_v25 = vunpack.c.h.s8.bf16 %v2393_v15  ;;  %v2544_v27 = vunpack.c.l.s8.bf16 %v2396_v44  ;;  %v2546_v28 = vunpack.c.l.s8.bf16 %v2398_v26  ;;  %v2414_v14 = vld [vmem:[#allocation4 + $0x1b8] sm:$0xff] }
 0x531   :  { %2714 = vmatpush1.bf16.msra.mxu0 %v2507_v20  ;;  %2878 = vmatpush1.bf16.msra.mxu1 %v2509_v30  ;;  %v2397_v20 = vld [vmem:[#allocation4 + $0x130] sm:$0xff]  ;;  %v2543_v30 = vunpack.c.l.s8.bf16 %v2395_v29 }
 0x532   :  { %2715 = vmatprep.subr.bf16.mxu0 %v2512_v31  ;;  %2879 = vmatprep.subr.bf16.mxu1 %v2514_v32  ;;  %v2545_v31 = vunpack.c.l.s8.bf16 %v2397_v20  ;;  %v2550_v32 = vunpack.c.h.s8.bf16 %v2398_v26 }
 0x535   :  { %2716 = vmatpush1.bf16.msra.mxu0 %v2511_v35  ;;  %2880 = vmatpush1.bf16.msra.mxu1 %v2513_v45  ;;  %v2547_v35 = vunpack.c.h.s8.bf16 %v2395_v29  ;;  %v2549_v45 = vunpack.c.h.s8.bf16 %v2397_v20  ;;  %v2418_v29 = vld [vmem:[#allocation4 + $0x1d8] sm:$0xff] }
 0x536   :  { %2717 = vmatprep.subr.bf16.mxu0 %v2516_v37  ;;  %2881 = vmatprep.subr.bf16.mxu1 %v2518_v42  ;;  %v2552_v37 = vunpack.c.l.s8.bf16 %v2400_v33  ;;  %v2554_v42 = vunpack.c.l.s8.bf16 %v2402_v34 }
 0x539   :  { %2718 = vmatpush1.bf16.msra.mxu0 %v2515_v36  ;;  %2882 = vmatpush1.bf16.msra.mxu1 %v2517_v43  ;;  %v2556_v43 = vunpack.c.h.s8.bf16 %v2400_v33  ;;  %v2417_v33 = vld [vmem:[#allocation4 + $0x1d0] sm:$0xff] }
 0x53a   :  { %2719 = vmatprep.subr.bf16.mxu0 %v2520_v47  ;;  %2883 = vmatprep.subr.bf16.mxu1 %v2522_v48  ;;  %v2558_v47 = vunpack.c.h.s8.bf16 %v2402_v34  ;;  %v2404_v48 = vld [vmem:[#allocation4 + $0x168] sm:$0xff] }
 0x53d   :  { %2720 = vmatpush1.bf16.msra.mxu0 %v2519_v52  ;;  %2884 = vmatpush1.bf16.msra.mxu1 %v2521_v51  ;;  %v2560_v51 = vunpack.c.l.s8.bf16 %v2404_v48 }
 0x53e   :  { %2721 = vmatprep.subr.bf16.mxu0 %v2524_v54  ;;  %2885 = vmatprep.subr.bf16.mxu1 %v2526_v55  ;;  %v2562_v54 = vunpack.c.l.s8.bf16 %v2406_v23  ;;  %v2403_v55 = vld [vmem:[#allocation4 + $0x160] sm:$0xff] }
 0x53f   :  { %v2559_v57 = vunpack.c.l.s8.bf16 %v2403_v55  ;;  %v2563_v61 = vunpack.c.h.s8.bf16 %v2403_v55  ;;  %v2426_v55 = vld [vmem:[#allocation4 + $0x218] sm:$0xff] }
 0x541   :  { %2722 = vmatpush1.bf16.msra.mxu0 %v2523_v58  ;;  %2886 = vmatpush1.bf16.msra.mxu1 %v2525_v59  ;;  %v2561_v58 = vunpack.c.l.s8.bf16 %v2405_v56  ;;  %v2564_v59 = vunpack.c.h.s8.bf16 %v2404_v48  ;;  %v2421_v48 = vld [vmem:[#allocation4 + $0x1f0] sm:$0xff] }
 0x542   :  { %2723 = vmatprep.subr.bf16.mxu0 %v2528_v17  ;;  %2887 = vmatprep.subr.bf16.mxu1 %v2530_v50  ;;  %v2566_v17 = vunpack.c.h.s8.bf16 %v2406_v23  ;;  %v2408_v50 = vld [vmem:[#allocation4 + $0x188] sm:$0xff] }
 0x545   :  { %2724 = vmatpush1.bf16.msra.mxu0 %v2527_v63  ;;  %2888 = vmatpush1.bf16.msra.mxu1 %v2529_v0  ;;  %v2565_v63 = vunpack.c.h.s8.bf16 %v2405_v56  ;;  %v2568_v0 = vunpack.c.l.s8.bf16 %v2408_v50 }
 0x546   :  { %2725 = vmatprep.subr.bf16.mxu0 %v2532_v8  ;;  %2889 = vmatprep.subr.bf16.mxu1 %v2534_v9  ;;  %v2570_v8 = vunpack.c.l.s8.bf16 %v2410_v60  ;;  %v2407_v9 = vld [vmem:[#allocation4 + $0x180] sm:$0xff] }
 0x547   :  { %v2567_v10 = vunpack.c.l.s8.bf16 %v2407_v9  ;;  %v2571_v15 = vunpack.c.h.s8.bf16 %v2407_v9  ;;  %v2430_v9 = vld [vmem:[#allocation4 + $0x238] sm:$0xff] }
 0x549   :  { %2726 = vmatpush1.bf16.msra.mxu0 %v2531_v11  ;;  %2890 = vmatpush1.bf16.msra.mxu1 %v2533_v3  ;;  %v2569_v11 = vunpack.c.l.s8.bf16 %v2409_v46  ;;  %v2572_v3 = vunpack.c.h.s8.bf16 %v2408_v50  ;;  %v2425_v50 = vld [vmem:[#allocation4 + $0x210] sm:$0xff] }
 0x54a   :  { %2736 = vmatprep.subr.bf16.mxu0 %v2536_v12  ;;  %2900 = vmatprep.subr.bf16.mxu1 %v2538_v13  ;;  %v2574_v12 = vunpack.c.h.s8.bf16 %v2410_v60  ;;  %v2412_v13 = vld [vmem:[#allocation4 + $0x1a8] sm:$0xff] }
 0x54c   :  { %2728 = vmatmul.mubr.bf16.vlgmr.msra.gmra.mrb[36].mxu0 %v4985_v53  ;;  %2892 = vmatmul.mubr.bf16.vlgmr.msra.gmra.mrb[16].mxu1 %v4985_v53  ;;  %v2548_v53 = vunpack.c.h.s8.bf16 %v2396_v44  ;;  %v2413_v44 = vld [vmem:[#allocation4 + $0x1b0] sm:$0xff] }
 0x54d   :  { %2737 = vmatpush1.bf16.msra.mxu0 %v2535_v16  ;;  %2901 = vmatpush1.bf16.msra.mxu1 %v2537_v18  ;;  %v2573_v16 = vunpack.c.h.s8.bf16 %v2409_v46  ;;  %v2576_v18 = vunpack.c.l.s8.bf16 %v2412_v13 }
 0x54e   :  { %2738 = vmatprep.subr.bf16.mxu0 %v2540_v6  ;;  %2902 = vmatprep.subr.bf16.mxu1 %v2542_v41  ;;  %v2578_v6 = vunpack.c.l.s8.bf16 %v2414_v14  ;;  %v2411_v41 = vld [vmem:[#allocation4 + $0x1a0] sm:$0xff] }
 0x54f   :  { %2768 = vmatprep.mubr.bf16.mxu0 %v4991_v39  ;;  %2932 = vmatprep.mubr.bf16.mxu1 %v4991_v39  ;;  %v2401_v39 = vld [vmem:[#allocation4 + $0x150] sm:$0xff]  ;;  %v2575_v26 = vunpack.c.l.s8.bf16 %v2411_v41  ;;  %v2579_v20 = vunpack.c.h.s8.bf16 %v2411_v41 }
 0x550   :  { %v2553_v36 = vunpack.c.l.s8.bf16 %v2401_v39  ;;  %v2557_v52 = vunpack.c.h.s8.bf16 %v2401_v39 }
 0x551   :  { %2739 = vmatpush1.bf16.msra.mxu0 %v2539_v24  ;;  %2903 = vmatpush1.bf16.msra.mxu1 %v2541_v25  ;;  %v2577_v24 = vunpack.c.l.s8.bf16 %v2413_v44  ;;  %v2580_v25 = vunpack.c.h.s8.bf16 %v2412_v13  ;;  %v2429_v13 = vld [vmem:[#allocation4 + $0x230] sm:$0xff] }
 0x552   :  { %2740 = vmatprep.subr.bf16.mxu0 %v2544_v27  ;;  %2904 = vmatprep.subr.bf16.mxu1 %v2546_v28  ;;  %v2582_v27 = vunpack.c.h.s8.bf16 %v2414_v14  ;;  %v2416_v28 = vld [vmem:[#allocation4 + $0x1c8] sm:$0xff] }
 0x555   :  { %2741 = vmatpush1.bf16.msra.mxu0 %v2543_v30  ;;  %2905 = vmatpush1.bf16.msra.mxu1 %v2545_v31  ;;  %v2581_v30 = vunpack.c.h.s8.bf16 %v2413_v44  ;;  %v2584_v31 = vunpack.c.l.s8.bf16 %v2416_v28  ;;  %v2613_v44 = vunpack.c.h.s8.bf16 %v2429_v13 }
 0x556   :  { %2742 = vmatprep.subr.bf16.mxu0 %v2548_v53  ;;  %2906 = vmatprep.subr.bf16.mxu1 %v2550_v32  ;;  %v2586_v53 = vunpack.c.l.s8.bf16 %v2418_v29  ;;  %v2415_v32 = vld [vmem:[#allocation4 + $0x1c0] sm:$0xff] }
 0x557   :  { %v2583_v34 = vunpack.c.l.s8.bf16 %v2415_v32  ;;  %v2587_v39 = vunpack.c.h.s8.bf16 %v2415_v32 }
 0x559   :  { %2743 = vmatpush1.bf16.msra.mxu0 %v2547_v35  ;;  %2907 = vmatpush1.bf16.msra.mxu1 %v2549_v45  ;;  %v2585_v35 = vunpack.c.l.s8.bf16 %v2417_v33  ;;  %v2588_v45 = vunpack.c.h.s8.bf16 %v2416_v28 }
 0x55a   :  { %2744 = vmatprep.subr.bf16.mxu0 %v2552_v37  ;;  %2908 = vmatprep.subr.bf16.mxu1 %v2554_v42  ;;  %v2590_v37 = vunpack.c.h.s8.bf16 %v2418_v29  ;;  %v2420_v42 = vld [vmem:[#allocation4 + $0x1e8] sm:$0xff] }
 0x55d   :  { %2745 = vmatpush1.bf16.msra.mxu0 %v2551_v40  ;;  %2909 = vmatpush1.bf16.msra.mxu1 %v2553_v36  ;;  %v2589_v40 = vunpack.c.h.s8.bf16 %v2417_v33  ;;  %v2592_v36 = vunpack.c.l.s8.bf16 %v2420_v42 }
 0x55e   :  { %2746 = vmatprep.subr.bf16.mxu0 %v2556_v43  ;;  %2910 = vmatprep.subr.bf16.mxu1 %v2558_v47  ;;  %v2594_v43 = vunpack.c.l.s8.bf16 %v2422_v38  ;;  %v2419_v47 = vld [vmem:[#allocation4 + $0x1e0] sm:$0xff] }
 0x55f   :  { %v2591_v23 = vunpack.c.l.s8.bf16 %v2419_v47  ;;  %v2595_v56 = vunpack.c.h.s8.bf16 %v2419_v47 }
 0x561   :  { %2747 = vmatpush1.bf16.msra.mxu0 %v2555_v49  ;;  %2911 = vmatpush1.bf16.msra.mxu1 %v2557_v52  ;;  %v2593_v49 = vunpack.c.l.s8.bf16 %v2421_v48  ;;  %v2596_v52 = vunpack.c.h.s8.bf16 %v2420_v42 }
 0x562   :  { %2748 = vmatprep.subr.bf16.mxu0 %v2560_v51  ;;  %2912 = vmatprep.subr.bf16.mxu1 %v2562_v54  ;;  %v2598_v51 = vunpack.c.h.s8.bf16 %v2422_v38  ;;  %v2424_v54 = vld [vmem:[#allocation4 + $0x208] sm:$0xff] }
 0x565   :  { %2749 = vmatpush1.bf16.msra.mxu0 %v2559_v57  ;;  %2913 = vmatpush1.bf16.msra.mxu1 %v2561_v58  ;;  %v2597_v57 = vunpack.c.h.s8.bf16 %v2421_v48  ;;  %v2600_v58 = vunpack.c.l.s8.bf16 %v2424_v54 }
 0x566   :  { %2750 = vmatprep.subr.bf16.mxu0 %v2564_v59  ;;  %2914 = vmatprep.subr.bf16.mxu1 %v2566_v17  ;;  %v2602_v59 = vunpack.c.l.s8.bf16 %v2426_v55  ;;  %v2423_v17 = vld [vmem:[#allocation4 + $0x200] sm:$0xff] }
 0x567   :  { %v2599_v60 = vunpack.c.l.s8.bf16 %v2423_v17  ;;  %v2603_v46 = vunpack.c.h.s8.bf16 %v2423_v17 }
 0x569   :  { %2751 = vmatpush1.bf16.msra.mxu0 %v2563_v61  ;;  %2915 = vmatpush1.bf16.msra.mxu1 %v2565_v63  ;;  %v2601_v61 = vunpack.c.l.s8.bf16 %v2425_v50  ;;  %v2604_v63 = vunpack.c.h.s8.bf16 %v2424_v54 }
 0x56a   :  { %2752 = vmatprep.subr.bf16.mxu0 %v2568_v0  ;;  %2916 = vmatprep.subr.bf16.mxu1 %v2570_v8  ;;  %v2606_v0 = vunpack.c.h.s8.bf16 %v2426_v55  ;;  %v2428_v8 = vld [vmem:[#allocation4 + $0x228] sm:$0xff] }
 0x56d   :  { %2753 = vmatpush1.bf16.msra.mxu0 %v2567_v10  ;;  %2917 = vmatpush1.bf16.msra.mxu1 %v2569_v11  ;;  %v2605_v10 = vunpack.c.h.s8.bf16 %v2425_v50  ;;  %v2608_v11 = vunpack.c.l.s8.bf16 %v2428_v8 }
 0x56e   :  { %2754 = vmatprep.subr.bf16.mxu0 %v2572_v3  ;;  %2918 = vmatprep.subr.bf16.mxu1 %v2574_v12  ;;  %v2610_v3 = vunpack.c.l.s8.bf16 %v2430_v9  ;;  %v2427_v12 = vld [vmem:[#allocation4 + $0x220] sm:$0xff] }
 0x56f   :  { %v2607_v14 = vunpack.c.l.s8.bf16 %v2427_v12  ;;  %v2611_v41 = vunpack.c.h.s8.bf16 %v2427_v12 }
 0x571   :  { %2755 = vmatpush1.bf16.msra.mxu0 %v2571_v15  ;;  %2919 = vmatpush1.bf16.msra.mxu1 %v2573_v16  ;;  %v2609_v15 = vunpack.c.l.s8.bf16 %v2429_v13  ;;  %v2614_v16 = vunpack.c.h.s8.bf16 %v2430_v9 }
 0x572   :  { %2756 = vmatprep.subr.bf16.mxu0 %v2576_v18  ;;  %2920 = vmatprep.subr.bf16.mxu1 %v2578_v6  ;;  %v2432_v18 = vld [vmem:[#allocation4 + $0x248] sm:$0xff]  ;;  %v2434_v6 = vld [vmem:[#allocation4 + $0x258] sm:$0xff] }
 0x573   :  { %v2620_v29 = vunpack.c.h.s8.bf16 %v2432_v18 }
 0x575   :  { %2757 = vmatpush1.bf16.msra.mxu0 %v2575_v26  ;;  %2921 = vmatpush1.bf16.msra.mxu1 %v2577_v24  ;;  %v2616_v26 = vunpack.c.l.s8.bf16 %v2432_v18  ;;  %v2618_v24 = vunpack.c.l.s8.bf16 %v2434_v6 }
 0x576   :  { %2758 = vmatprep.subr.bf16.mxu0 %v2580_v25  ;;  %2922 = vmatprep.subr.bf16.mxu1 %v2582_v27  ;;  %v2431_v25 = vld [vmem:[#allocation4 + $0x240] sm:$0xff] }
 0x577   :  { %v2615_v27 = vunpack.c.l.s8.bf16 %v2431_v25 }
 0x579   :  { %2759 = vmatpush1.bf16.msra.mxu0 %v2579_v20  ;;  %2923 = vmatpush1.bf16.msra.mxu1 %v2581_v30  ;;  %v2622_v20 = vunpack.c.h.s8.bf16 %v2434_v6  ;;  %v2436_v30 = vld [vmem:[#allocation4 + $0x268] sm:$0xff] }
 0x57a   :  { %2760 = vmatprep.subr.bf16.mxu0 %v2584_v31  ;;  %2924 = vmatprep.subr.bf16.mxu1 %v2586_v53  ;;  %v2438_v31 = vld [vmem:[#allocation4 + $0x278] sm:$0xff]  ;;  %v2619_v53 = vunpack.c.h.s8.bf16 %v2431_v25  ;;  %v2624_v33 = vunpack.c.l.s8.bf16 %v2436_v30  ;;  %v2628_v38 = vunpack.c.h.s8.bf16 %v2436_v30 }
 0x57d   :  { %2761 = vmatpush1.bf16.msra.mxu0 %v2583_v34  ;;  %2925 = vmatpush1.bf16.msra.mxu1 %v2585_v35  ;;  %v2626_v34 = vunpack.c.l.s8.bf16 %v2438_v31  ;;  %v2435_v35 = vld [vmem:[#allocation4 + $0x260] sm:$0xff] }
 0x57e   :  { %2762 = vmatprep.subr.bf16.mxu0 %v2588_v45  ;;  %2926 = vmatprep.subr.bf16.mxu1 %v2590_v37  ;;  %v2437_v45 = vld [vmem:[#allocation4 + $0x270] sm:$0xff]  ;;  %v2623_v37 = vunpack.c.l.s8.bf16 %v2435_v35 }
 0x57f   :  { %v2625_v42 = vunpack.c.l.s8.bf16 %v2437_v45  ;;  %v2629_v47 = vunpack.c.h.s8.bf16 %v2437_v45 }
 0x581   :  { %2763 = vmatpush1.bf16.msra.mxu0 %v2587_v39  ;;  %2927 = vmatpush1.bf16.msra.mxu1 %v2589_v40  ;;  %v2630_v39 = vunpack.c.h.s8.bf16 %v2438_v31  ;;  %v2440_v40 = vld [vmem:[#allocation4 + $0x288] sm:$0xff] }
 0x582   :  { %2764 = vmatprep.subr.bf16.mxu0 %v2592_v36  ;;  %2928 = vmatprep.subr.bf16.mxu1 %v2594_v43  ;;  %v2442_v36 = vld [vmem:[#allocation4 + $0x298] sm:$0xff]  ;;  %v2627_v43 = vunpack.c.h.s8.bf16 %v2435_v35  ;;  %v2632_v48 = vunpack.c.l.s8.bf16 %v2440_v40  ;;  %v2636_v55 = vunpack.c.h.s8.bf16 %v2440_v40 }
 0x585   :  { %2765 = vmatpush1.bf16.msra.mxu0 %v2591_v23  ;;  %2929 = vmatpush1.bf16.msra.mxu1 %v2593_v49  ;;  %v2634_v23 = vunpack.c.l.s8.bf16 %v2442_v36  ;;  %v2439_v49 = vld [vmem:[#allocation4 + $0x280] sm:$0xff] }
 0x586   :  { %2766 = vmatprep.subr.bf16.mxu0 %v2596_v52  ;;  %2930 = vmatprep.subr.bf16.mxu1 %v2598_v51  ;;  %v2441_v52 = vld [vmem:[#allocation4 + $0x290] sm:$0xff]  ;;  %v2631_v51 = vunpack.c.l.s8.bf16 %v2439_v49 }
 0x587   :  { %v2633_v54 = vunpack.c.l.s8.bf16 %v2441_v52  ;;  %v2637_v17 = vunpack.c.h.s8.bf16 %v2441_v52 }
 0x589   :  { %2767 = vmatpush1.bf16.msra.mxu0 %v2595_v56  ;;  %2931 = vmatpush1.bf16.msra.mxu1 %v2597_v57  ;;  %v2638_v56 = vunpack.c.h.s8.bf16 %v2442_v36  ;;  %v2444_v57 = vld [vmem:[#allocation4 + $0x2a8] sm:$0xff] }
 0x58a   :  { %2777 = vmatprep.subr.bf16.mxu0 %v2600_v58  ;;  %2941 = vmatprep.subr.bf16.mxu1 %v2602_v59  ;;  %v2446_v58 = vld [vmem:[#allocation4 + $0x2b8] sm:$0xff]  ;;  %v2635_v59 = vunpack.c.h.s8.bf16 %v2439_v49  ;;  %v2640_v50 = vunpack.c.l.s8.bf16 %v2444_v57  ;;  %v2644_v9 = vunpack.c.h.s8.bf16 %v2444_v57 }
 0x58c   :  { %2769 = vmatmul.mubr.bf16.vlgmr.msra.gmra.mrb[36].mxu0 %v4987_v21  ;;  %2933 = vmatmul.mubr.bf16.vlgmr.msra.gmra.mrb[16].mxu1 %v4987_v21  ;;  %v2612_v21 = vunpack.c.h.s8.bf16 %v2428_v8 }
 0x58d   :  { %2778 = vmatpush1.bf16.msra.mxu0 %v2599_v60  ;;  %2942 = vmatpush1.bf16.msra.mxu1 %v2601_v61  ;;  %v2642_v60 = vunpack.c.l.s8.bf16 %v2446_v58  ;;  %v2443_v61 = vld [vmem:[#allocation4 + $0x2a0] sm:$0xff] }
 0x58e   :  { %2779 = vmatprep.subr.bf16.mxu0 %v2604_v63  ;;  %2943 = vmatprep.subr.bf16.mxu1 %v2606_v0  ;;  %v2445_v63 = vld [vmem:[#allocation4 + $0x2b0] sm:$0xff]  ;;  %v2639_v0 = vunpack.c.l.s8.bf16 %v2443_v61 }
 0x58f   :  { %2809 = vmatprep.mubr.bf16.mxu0 %v5015_v22  ;;  %2973 = vmatprep.mubr.bf16.mxu1 %v5015_v22  ;;  %v2433_v22 = vld [vmem:[#allocation4 + $0x250] sm:$0xff]  ;;  %v2641_v8 = vunpack.c.l.s8.bf16 %v2445_v63  ;;  %v2645_v12 = vunpack.c.h.s8.bf16 %v2445_v63 }
 0x590   :  { %v2617_v28 = vunpack.c.l.s8.bf16 %v2433_v22  ;;  %v2621_v32 = vunpack.c.h.s8.bf16 %v2433_v22 }
 0x591   :  { %2780 = vmatpush1.bf16.msra.mxu0 %v2603_v46  ;;  %2944 = vmatpush1.bf16.msra.mxu1 %v2605_v10  ;;  %v2646_v46 = vunpack.c.h.s8.bf16 %v2446_v58  ;;  %v2448_v10 = vld [vmem:[#allocation4 + $0x2c8] sm:$0xff] }
 0x592   :  { %2781 = vmatprep.subr.bf16.mxu0 %v2608_v11  ;;  %2945 = vmatprep.subr.bf16.mxu1 %v2610_v3  ;;  %v2450_v11 = vld [vmem:[#allocation4 + $0x2d8] sm:$0xff]  ;;  %v2643_v3 = vunpack.c.h.s8.bf16 %v2443_v61  ;;  %v2648_v13 = vunpack.c.l.s8.bf16 %v2448_v10  ;;  %v2652_v6 = vunpack.c.h.s8.bf16 %v2448_v10 }
 0x595   :  { %2782 = vmatpush1.bf16.msra.mxu0 %v2607_v14  ;;  %2946 = vmatpush1.bf16.msra.mxu1 %v2609_v15  ;;  %v2650_v14 = vunpack.c.l.s8.bf16 %v2450_v11  ;;  %v2447_v15 = vld [vmem:[#allocation4 + $0x2c0] sm:$0xff] }
 0x596   :  { %2783 = vmatprep.subr.bf16.mxu0 %v2612_v21  ;;  %2947 = vmatprep.subr.bf16.mxu1 %v2614_v16  ;;  %v2449_v21 = vld [vmem:[#allocation4 + $0x2d0] sm:$0xff]  ;;  %v2647_v16 = vunpack.c.l.s8.bf16 %v2447_v15 }
 0x597   :  { %v2649_v18 = vunpack.c.l.s8.bf16 %v2449_v21  ;;  %v2653_v25 = vunpack.c.h.s8.bf16 %v2449_v21 }
 0x599   :  { %2784 = vmatpush1.bf16.msra.mxu0 %v2611_v41  ;;  %2948 = vmatpush1.bf16.msra.mxu1 %v2613_v44  ;;  %v2654_v41 = vunpack.c.h.s8.bf16 %v2450_v11  ;;  %v2452_v44 = vld [vmem:[#allocation4 + $0x2e8] sm:$0xff] }
 0x59a   :  { %2785 = vmatprep.subr.bf16.mxu0 %v2616_v26  ;;  %2949 = vmatprep.subr.bf16.mxu1 %v2618_v24  ;;  %v2454_v26 = vld [vmem:[#allocation4 + $0x2f8] sm:$0xff]  ;;  %v2651_v24 = vunpack.c.h.s8.bf16 %v2447_v15  ;;  %v2656_v22 = vunpack.c.l.s8.bf16 %v2452_v44  ;;  %v2660_v31 = vunpack.c.h.s8.bf16 %v2452_v44 }
 0x59d   :  { %2786 = vmatpush1.bf16.msra.mxu0 %v2615_v27  ;;  %2950 = vmatpush1.bf16.msra.mxu1 %v2617_v28  ;;  %v2658_v27 = vunpack.c.l.s8.bf16 %v2454_v26  ;;  %v2451_v28 = vld [vmem:[#allocation4 + $0x2e0] sm:$0xff] }
 0x59e   :  { %2787 = vmatprep.subr.bf16.mxu0 %v2620_v29  ;;  %2951 = vmatprep.subr.bf16.mxu1 %v2622_v20  ;;  %v2453_v29 = vld [vmem:[#allocation4 + $0x2f0] sm:$0xff]  ;;  %v2655_v20 = vunpack.c.l.s8.bf16 %v2451_v28 }
 0x59f   :  { %v2657_v30 = vunpack.c.l.s8.bf16 %v2453_v29  ;;  %v2661_v35 = vunpack.c.h.s8.bf16 %v2453_v29 }
 0x5a1   :  { %2788 = vmatpush1.bf16.msra.mxu0 %v2619_v53  ;;  %2952 = vmatpush1.bf16.msra.mxu1 %v2621_v32  ;;  %v2662_v53 = vunpack.c.h.s8.bf16 %v2454_v26  ;;  %v2456_v32 = vld [vmem:[#allocation4 + $0x308] sm:$0xff] }
 0x5a2   :  { %2789 = vmatprep.subr.bf16.mxu0 %v2624_v33  ;;  %2953 = vmatprep.subr.bf16.mxu1 %v2626_v34  ;;  %v2458_v33 = vld [vmem:[#allocation4 + $0x318] sm:$0xff]  ;;  %v2659_v34 = vunpack.c.h.s8.bf16 %v2451_v28  ;;  %v2664_v45 = vunpack.c.l.s8.bf16 %v2456_v32  ;;  %v2668_v36 = vunpack.c.h.s8.bf16 %v2456_v32 }
 0x5a5   :  { %2790 = vmatpush1.bf16.msra.mxu0 %v2623_v37  ;;  %2954 = vmatpush1.bf16.msra.mxu1 %v2625_v42  ;;  %v2666_v37 = vunpack.c.l.s8.bf16 %v2458_v33  ;;  %v2455_v42 = vld [vmem:[#allocation4 + $0x300] sm:$0xff] }
 0x5a6   :  { %2791 = vmatprep.subr.bf16.mxu0 %v2628_v38  ;;  %2955 = vmatprep.subr.bf16.mxu1 %v2630_v39  ;;  %v2457_v38 = vld [vmem:[#allocation4 + $0x310] sm:$0xff]  ;;  %v2663_v39 = vunpack.c.l.s8.bf16 %v2455_v42 }
 0x5a7   :  { %v2665_v40 = vunpack.c.l.s8.bf16 %v2457_v38  ;;  %v2669_v49 = vunpack.c.h.s8.bf16 %v2457_v38  ;;  %v3079_v38 = vstv %s4727_s22 }
 0x5a9   :  { %2792 = vmatpush1.bf16.msra.mxu0 %v2627_v43  ;;  %2956 = vmatpush1.bf16.msra.mxu1 %v2629_v47  ;;  %v2670_v43 = vunpack.c.h.s8.bf16 %v2458_v33  ;;  %v2460_v47 = vld [vmem:[#allocation4 + $0x328] sm:$0xff] }
 0x5aa   :  { %2793 = vmatprep.subr.bf16.mxu0 %v2632_v48  ;;  %2957 = vmatprep.subr.bf16.mxu1 %v2634_v23  ;;  %v2462_v48 = vld [vmem:[#allocation4 + $0x338] sm:$0xff]  ;;  %v2667_v23 = vunpack.c.h.s8.bf16 %v2455_v42  ;;  %v2672_v52 = vunpack.c.l.s8.bf16 %v2460_v47 }
 0x5ab   :  { %v2678_v58 = vunpack.c.h.s8.bf16 %v2462_v48 }
 0x5ad   :  { %2794 = vmatpush1.bf16.msra.mxu0 %v2631_v51  ;;  %2958 = vmatpush1.bf16.msra.mxu1 %v2633_v54  ;;  %v2674_v51 = vunpack.c.l.s8.bf16 %v2462_v48  ;;  %v2459_v54 = vld [vmem:[#allocation4 + $0x320] sm:$0xff] }
 0x5ae   :  { %2795 = vmatprep.subr.bf16.mxu0 %v2636_v55  ;;  %2959 = vmatprep.subr.bf16.mxu1 %v2638_v56  ;;  %v2461_v55 = vld [vmem:[#allocation4 + $0x330] sm:$0xff]  ;;  %v2671_v56 = vunpack.c.l.s8.bf16 %v2459_v54 }
 0x5af   :  { %v2673_v57 = vunpack.c.l.s8.bf16 %v2461_v55 }
 0x5b1   :  { %2796 = vmatpush1.bf16.msra.mxu0 %v2635_v59  ;;  %2960 = vmatpush1.bf16.msra.mxu1 %v2637_v17  ;;  %v2464_v59 = vld [vmem:[#allocation4 + $0x348] sm:$0xff]  ;;  %v2466_v17 = vld [vmem:[#allocation4 + $0x358] sm:$0xff] }
 0x5b2   :  { %2797 = vmatprep.subr.bf16.mxu0 %v2640_v50  ;;  %2961 = vmatprep.subr.bf16.mxu1 %v2642_v60  ;;  %v2675_v50 = vunpack.c.h.s8.bf16 %v2459_v54  ;;  %v2677_v60 = vunpack.c.h.s8.bf16 %v2461_v55  ;;  %v2680_v61 = vunpack.c.l.s8.bf16 %v2464_v59  ;;  %v2682_v63 = vunpack.c.l.s8.bf16 %v2466_v17 }
 0x5b3   :  { %v2684_v10 = vunpack.c.h.s8.bf16 %v2464_v59  ;;  %v2686_v11 = vunpack.c.h.s8.bf16 %v2466_v17 }
 0x5b5   :  { %2798 = vmatpush1.bf16.msra.mxu0 %v2639_v0  ;;  %2962 = vmatpush1.bf16.msra.mxu1 %v2641_v8  ;;  %v2463_v0 = vld [vmem:[#allocation4 + $0x340] sm:$0xff]  ;;  %v2465_v8 = vld [vmem:[#allocation4 + $0x350] sm:$0xff] }
 0x5b6   :  { %2799 = vmatprep.subr.bf16.mxu0 %v2644_v9  ;;  %2963 = vmatprep.subr.bf16.mxu1 %v2646_v46  ;;  %v2679_v9 = vunpack.c.l.s8.bf16 %v2463_v0  ;;  %v2681_v46 = vunpack.c.l.s8.bf16 %v2465_v8 }
 0x5b9   :  { %2800 = vmatpush1.bf16.msra.mxu0 %v2643_v3  ;;  %2964 = vmatpush1.bf16.msra.mxu1 %v2645_v12  ;;  %v2468_v3 = vld [vmem:[#allocation4 + $0x368] sm:$0xff]  ;;  %v2470_v12 = vld [vmem:[#allocation4 + $0x378] sm:$0xff] }
 0x5ba   :  { %2801 = vmatprep.subr.bf16.mxu0 %v2648_v13  ;;  %2965 = vmatprep.subr.bf16.mxu1 %v2650_v14  ;;  %v2683_v13 = vunpack.c.h.s8.bf16 %v2463_v0  ;;  %v2685_v14 = vunpack.c.h.s8.bf16 %v2465_v8  ;;  %v2688_v15 = vunpack.c.l.s8.bf16 %v2468_v3  ;;  %v2690_v21 = vunpack.c.l.s8.bf16 %v2470_v12 }
 0x5bb   :  { %v2692_v44 = vunpack.c.h.s8.bf16 %v2468_v3  ;;  %v2694_v26 = vunpack.c.h.s8.bf16 %v2470_v12 }
 0x5bd   :  { %2802 = vmatpush1.bf16.msra.mxu0 %v2647_v16  ;;  %2966 = vmatpush1.bf16.msra.mxu1 %v2649_v18  ;;  %v2467_v16 = vld [vmem:[#allocation4 + $0x360] sm:$0xff]  ;;  %v2469_v18 = vld [vmem:[#allocation4 + $0x370] sm:$0xff] }
 0x5be   :  { %2803 = vmatprep.subr.bf16.mxu0 %v2652_v6  ;;  %2967 = vmatprep.subr.bf16.mxu1 %v2654_v41  ;;  %v2687_v6 = vunpack.c.l.s8.bf16 %v2467_v16  ;;  %v2689_v41 = vunpack.c.l.s8.bf16 %v2469_v18 }
 0x5c1   :  { %2804 = vmatpush1.bf16.msra.mxu0 %v2651_v24  ;;  %2968 = vmatpush1.bf16.msra.mxu1 %v2653_v25  ;;  %v2691_v24 = vunpack.c.h.s8.bf16 %v2467_v16  ;;  %v2693_v25 = vunpack.c.h.s8.bf16 %v2469_v18 }
 0x5c2   :  { %2805 = vmatprep.subr.bf16.mxu0 %v2656_v22  ;;  %2969 = vmatprep.subr.bf16.mxu1 %v2658_v27  ;;  %v3023_v22 = vld [vmem:[#allocation13 + $0x11] sm:$0xf] }
 0x5c3   :  { %v3049_v27 = vld [vmem:[#allocation13 + $0x2f] sm:$0xf]  ;;  %v3028_v28 = vrot.slane %v3023_v22, %v4829_v2  ;;  %v3036_v29 = vrot.slane %v3023_v22, %v4837_v5 }
 0x5c5   :  { %2806 = vmatpush1.bf16.msra.mxu0 %v2655_v20  ;;  %2970 = vmatpush1.bf16.msra.mxu1 %v2657_v30  ;;  %v3032_v20 = vrot.slane %v3023_v22, %v4834_v4  ;;  %v3040_v30 = vrot.slane %v3023_v22, %v4842_v7 }
 0x5c6   :  { %2807 = vmatprep.subr.bf16.mxu0 %v2660_v31  ;;  %2971 = vmatprep.subr.bf16.mxu1 %v2662_v53  ;;  %v3054_v31 = vrot.slane %v3049_v27, %v4829_v2  ;;  %v3062_v53 = vrot.slane %v3049_v27, %v4837_v5 }
 0x5c9   :  { %2808 = vmatpush1.bf16.msra.mxu0 %v2659_v34  ;;  %2972 = vmatpush1.bf16.msra.mxu1 %v2661_v35  ;;  %v3058_v34 = vrot.slane %v3049_v27, %v4834_v4 }
 0x5ca   :  { %2818 = vmatprep.subr.bf16.mxu0 %v2664_v45  ;;  %2982 = vmatprep.subr.bf16.mxu1 %v2666_v37 }
 0x5cc   :  { %2810 = vmatmul.mubr.bf16.vlgmr.msra.gmra.mrb[36].mxu0 %v5013_v19  ;;  %2974 = vmatmul.mubr.bf16.vlgmr.msra.gmra.mrb[16].mxu1 %v5013_v19  ;;  %v2676_v19 = vunpack.c.h.s8.bf16 %v2460_v47 }
 0x5cd   :  { %2819 = vmatpush1.bf16.msra.mxu0 %v2663_v39  ;;  %2983 = vmatpush1.bf16.msra.mxu1 %v2665_v40 }
 0x5ce   :  { %2820 = vmatprep.subr.bf16.mxu0 %v2668_v36  ;;  %2984 = vmatprep.subr.bf16.mxu1 %v2670_v43 }
 0x5cf   :  { %2850 = vmatprep.mubr.bf16.mxu0 %v4631_v1  ;;  %3014 = vmatprep.mubr.bf16.mxu1 %v4631_v1 }
 0x5d1   :  { %2821 = vmatpush1.bf16.msra.mxu0 %v2667_v23  ;;  %2985 = vmatpush1.bf16.msra.mxu1 %v2669_v49 }
 0x5d2   :  { %2822 = vmatprep.subr.bf16.mxu0 %v2672_v52  ;;  %2986 = vmatprep.subr.bf16.mxu1 %v2674_v51 }
 0x5d5   :  { %2823 = vmatpush1.bf16.msra.mxu0 %v2671_v56  ;;  %2987 = vmatpush1.bf16.msra.mxu1 %v2673_v57 }
 0x5d6   :  { %2824 = vmatprep.subr.bf16.mxu0 %v2676_v19  ;;  %2988 = vmatprep.subr.bf16.mxu1 %v2678_v58 }
 0x5d9   :  { %2825 = vmatpush1.bf16.msra.mxu0 %v2675_v50  ;;  %2989 = vmatpush1.bf16.msra.mxu1 %v2677_v60 }
 0x5da   :  { %2826 = vmatprep.subr.bf16.mxu0 %v2680_v61  ;;  %2990 = vmatprep.subr.bf16.mxu1 %v2682_v63 }
 0x5dd   :  { %2827 = vmatpush1.bf16.msra.mxu0 %v2679_v9  ;;  %2991 = vmatpush1.bf16.msra.mxu1 %v2681_v46 }
 0x5de   :  { %2828 = vmatprep.subr.bf16.mxu0 %v2684_v10  ;;  %2992 = vmatprep.subr.bf16.mxu1 %v2686_v11 }
 0x5e1   :  { %2829 = vmatpush1.bf16.msra.mxu0 %v2683_v13  ;;  %2993 = vmatpush1.bf16.msra.mxu1 %v2685_v14 }
 0x5e2   :  { %2830 = vmatprep.subr.bf16.mxu0 %v2688_v15  ;;  %2994 = vmatprep.subr.bf16.mxu1 %v2690_v21 }
 0x5e5   :  { %2831 = vmatpush1.bf16.msra.mxu0 %v2687_v6  ;;  %2995 = vmatpush1.bf16.msra.mxu1 %v2689_v41 }
 0x5e6   :  { %2832 = vmatprep.subr.bf16.mxu0 %v2692_v44  ;;  %2996 = vmatprep.subr.bf16.mxu1 %v2694_v26 }
 0x5e9   :  { %2833 = vmatpush1.bf16.msra.mxu0 %v2691_v24  ;;  %2997 = vmatpush1.bf16.msra.mxu1 %v2693_v25 }
 0x5ec   :  { %2851 = vmatmul.mubr.bf16.vlgmr.msra.gmra.mrb[36].mxu0 %v5001_v62  ;;  %3015 = vmatmul.mubr.bf16.vlgmr.msra.gmra.mrb[16].mxu1 %v5001_v62  ;;  %v3066_v62 = vrot.slane %v3049_v27, %v4842_v7 }
 0x6bf   :  { %v2852_v32 = vpop.f32.mrb[36].mxu0  ;;  %v3016_v33 = vpop.f32.mrb[16].mxu1 }
 0x6c0   :  { %v3045_v35 = vmul.f32 %v3028_v28, %v2852_v32  ;;  %v3047_v45 = vmul.f32 %v3036_v29, %v3016_v33  ;;  %v2854_v37 = vpop.f32.mrb[37].mxu0  ;;  %v3018_v42 = vpop.f32.mrb[17].mxu1 }
 0x6c1   :  { %v3046_v39 = vmul.f32 %v3032_v20, %v2854_v37  ;;  %v3048_v40 = vmul.f32 %v3040_v30, %v3018_v42  ;;  %v2856_v36 = vpop.f32.mrb[38].mxu0  ;;  %v3020_v43 = vpop.f32.mrb[18].mxu1 }
 0x6c2   :  { %v3071_v47 = vadd.f32 %v3054_v31, %v3045_v35  ;;  %v3073_v48 = vadd.f32 %v3062_v53, %v3047_v45  ;;  %v2857_v23 = vpop.f32.mrb[39].mxu0  ;;  %v3021_v49 = vpop.f32.mrb[19].mxu1 }
 0x6c3   :  { %v3072_v52 = vadd.f32 %v3058_v34, %v3046_v39  ;;  %v3074_v51 = vadd.f32 %v3066_v62, %v3048_v40 }
 0x6c4   :  { %vm3075_vm2 = vcmp.gt.f32.partialorder %v3071_v47, 0.0  ;;  %v3080_v54 = vmul.f32 %v3079_v38, %v3071_v47  ;;  %vm3077_vm3 = vcmp.gt.f32.partialorder %v3073_v48, 0.0  ;;  %v3082_v55 = vmul.f32 %v3079_v38, %v3073_v48 }
 0x6c5   :  { %vm3076_vm4 = vcmp.gt.f32.partialorder %v3072_v52, 0.0  ;;  %v3081_v7 = vmul.f32 %v3079_v38, %v3072_v52  ;;  %vm3078_vm5 = vcmp.gt.f32.partialorder %v3074_v51, 0.0  ;;  %v3083_v56 = vmul.f32 %v3079_v38, %v3074_v51 }
 0x6c6   :  { %v3084_v57 = vsel %vm3075_vm2, %v3071_v47, %v3080_v54  ;;  %v3086_v19 = vsel %vm3077_vm3, %v3073_v48, %v3082_v55 }
 0x6c7   :  { %v5042_v58 = vpack.c.bf16 %v3084_v57, %v3084_v57  ;;  %v5044_v59 = vpack.c.bf16 %v3086_v19, %v3086_v19  ;;  %v3085_v17 = vsel %vm3076_vm4, %v3072_v52, %v3081_v7  ;;  %v3087_v50 = vsel %vm3078_vm5, %v3074_v51, %v3083_v56 }
 0x6c8   :  { %v5046_v60 = vpack.c.bf16 %v3085_v17, %v3085_v17  ;;  %v5048_v61 = vpack.c.bf16 %v3087_v50, %v3087_v50 }
 0x6c9   :  { %4614 = dma.done.wait [#allocation8 + $0x3], 6144 }
 0x6ca   :  { %4615 = vsyncadd [#allocation8 + $0x3], 4294961152  ;;  %3272 = vmatprep.mubr.bf16.mxu0 %v5046_v60  ;;  %3394 = vmatprep.mubr.bf16.mxu1 %v5048_v61  ;;  %v3097_v63 = vld [vmem:[#allocation5 + $0x8] sm:$0xff]  ;;  %v3096_v0 = vld [vmem:[#allocation5] sm:$0xff] }
 0x6cb   :  { %v3145_v8 = vunpack.c.l.s8.bf16 %v3097_v63  ;;  %v3148_v9 = vunpack.c.h.s8.bf16 %v3097_v63  ;;  %v3144_v46 = vunpack.c.l.s8.bf16 %v3096_v0  ;;  %v3100_v10 = vld [vmem:[#allocation5 + $0x20] sm:$0xff]  ;;  %v3147_v11 = vunpack.c.h.s8.bf16 %v3096_v0  ;;  %v3099_v12 = vld [vmem:[#allocation5 + $0x18] sm:$0xff]  ;;  %v3102_v18 = vld [vmem:[#allocation5 + $0x30] sm:$0xff] }
 0x6cc   :  { %v3151_v3 = vunpack.c.l.s8.bf16 %v3100_v10  ;;  %v3150_v13 = vunpack.c.l.s8.bf16 %v3099_v12  ;;  %v3154_v14 = vunpack.c.h.s8.bf16 %v3100_v10  ;;  %v3103_v15 = vld [vmem:[#allocation5 + $0x38] sm:$0xff]  ;;  %v3153_v21 = vunpack.c.h.s8.bf16 %v3099_v12  ;;  %v3134_v6 = vld [vmem:[#allocation5 + $0x130] sm:$0xff]  ;;  %v3137_v28 = vld [vmem:[#allocation5 + $0x148] sm:$0xff] }
 0x6cd   :  { %3240 = vmatprep.subr.bf16.mxu0 %v3145_v8  ;;  %v3157_v16 = vunpack.c.l.s8.bf16 %v3103_v15  ;;  %v3122_v41 = vld [vmem:[#allocation5 + $0xd0] sm:$0xff]  ;;  %v3156_v44 = vunpack.c.l.s8.bf16 %v3102_v18  ;;  %v3160_v26 = vunpack.c.h.s8.bf16 %v3103_v15  ;;  %v3218_v24 = vunpack.c.l.s8.bf16 %v3134_v6  ;;  %v3105_v31 = vld [vmem:[#allocation5 + $0x48] sm:$0xff]  ;;  %v3140_v37 = vld [vmem:[#allocation5 + $0x160] sm:$0xff] }
 0x6ce   :  { %3241 = vmatpush1.bf16.msra.mxu0 %v3144_v46  ;;  %v3221_v25 = vunpack.c.h.s8.bf16 %v3134_v6  ;;  %v3194_v22 = vunpack.c.l.s8.bf16 %v3122_v41  ;;  %v3106_v27 = vld [vmem:[#allocation5 + $0x50] sm:$0xff]  ;;  %v3159_v29 = vunpack.c.h.s8.bf16 %v3102_v18  ;;  %v3197_v20 = vunpack.c.h.s8.bf16 %v3122_v41  ;;  %v3125_v32 = vld [vmem:[#allocation5 + $0xe8] sm:$0xff]  ;;  %v3108_v40 = vld [vmem:[#allocation5 + $0x60] sm:$0xff] }
 0x6cf   :  { %3242 = vmatprep.subr.bf16.mxu0 %v3148_v9  ;;  %4170 = vmatprep.subr.bf16.mxu1 %v3218_v24  ;;  %v3163_v30 = vunpack.c.l.s8.bf16 %v3106_v27  ;;  %v3224_v53 = vunpack.c.l.s8.bf16 %v3137_v28  ;;  %v3162_v33 = vunpack.c.l.s8.bf16 %v3105_v31  ;;  %v3200_v34 = vunpack.c.l.s8.bf16 %v3125_v32  ;;  %v3109_v45 = vld [vmem:[#allocation5 + $0x68] sm:$0xff]  ;;  %v3128_v43 = vld [vmem:[#allocation5 + $0x100] sm:$0xff]  ;;  %v3143_v51 = vld [vmem:[#allocation5 + $0x178] sm:$0xff] }
 0x6d0   :  { %4171 = vmatpush3.bf16.msra.mxu1 %v3194_v22  ;;  %v3166_v62 = vunpack.c.h.s8.bf16 %v3106_v27  ;;  %v3227_v35 = vunpack.c.h.s8.bf16 %v3137_v28  ;;  %v3165_v42 = vunpack.c.h.s8.bf16 %v3105_v31  ;;  %v3203_v38 = vunpack.c.h.s8.bf16 %v3125_v32  ;;  %v3112_v52 = vld [vmem:[#allocation5 + $0x80] sm:$0xff]  ;;  %v3111_v56 = vld [vmem:[#allocation5 + $0x78] sm:$0xff]  ;;  %v3121_v6 = vld [vmem:[#allocation5 + $0xc8] sm:$0xff] }
 0x6d1   :  { %4172 = vmatprep.subr.bf16.mxu1 %v3221_v25  ;;  %v3169_v39 = vunpack.c.l.s8.bf16 %v3109_v45  ;;  %v3230_v36 = vunpack.c.l.s8.bf16 %v3140_v37  ;;  %v3168_v47 = vunpack.c.l.s8.bf16 %v3108_v40  ;;  %v3206_v48 = vunpack.c.l.s8.bf16 %v3128_v43  ;;  %v3131_v19 = vld [vmem:[#allocation5 + $0x118] sm:$0xff]  ;;  %v3124_v22 = vld [vmem:[#allocation5 + $0xe0] sm:$0xff] }
 0x6d2   :  { %3243 = vmatpush1.bf16.msra.mxu0 %v3147_v11  ;;  %v3172_v23 = vunpack.c.h.s8.bf16 %v3109_v45  ;;  %v3233_v49 = vunpack.c.h.s8.bf16 %v3140_v37  ;;  %v3171_v54 = vunpack.c.h.s8.bf16 %v3108_v40  ;;  %v3209_v55 = vunpack.c.h.s8.bf16 %v3128_v43  ;;  %v3115_v8 = vld [vmem:[#allocation5 + $0x98] sm:$0xff]  ;;  %v3114_v11 = vld [vmem:[#allocation5 + $0x90] sm:$0xff]  ;;  %v3129_v37 = vld [vmem:[#allocation5 + $0x108] sm:$0xff] }
 0x6d3   :  { %3244 = vmatprep.subr.bf16.mxu0 %v3151_v3  ;;  %v3175_v7 = vunpack.c.l.s8.bf16 %v3112_v52  ;;  %v3236_v57 = vunpack.c.l.s8.bf16 %v3143_v51  ;;  %v3174_v17 = vunpack.c.l.s8.bf16 %v3111_v56  ;;  %v3212_v50 = vunpack.c.l.s8.bf16 %v3131_v19  ;;  %v3127_v31 = vld [vmem:[#allocation5 + $0xf8] sm:$0xff]  ;;  %v3132_v43 = vld [vmem:[#allocation5 + $0x120] sm:$0xff] }
 0x6d4   :  { %4173 = vmatpush3.bf16.msra.mxu1 %v3197_v20  ;;  %v3178_v63 = vunpack.c.h.s8.bf16 %v3112_v52  ;;  %v3239_v0 = vunpack.c.h.s8.bf16 %v3143_v51  ;;  %v3177_v9 = vunpack.c.h.s8.bf16 %v3111_v56  ;;  %v3215_v46 = vunpack.c.h.s8.bf16 %v3131_v19  ;;  %v3135_v51 = vld [vmem:[#allocation5 + $0x138] sm:$0xff]  ;;  %v3138_v19 = vld [vmem:[#allocation5 + $0x150] sm:$0xff] }
 0x6d5   :  { %4174 = vmatprep.subr.bf16.mxu1 %v3224_v53  ;;  %v3181_v10 = vunpack.c.l.s8.bf16 %v3115_v8  ;;  %v3180_v3 = vunpack.c.l.s8.bf16 %v3114_v11  ;;  %v3184_v12 = vunpack.c.h.s8.bf16 %v3115_v8  ;;  %v3196_v25 = vunpack.c.h.s8.bf16 %v3121_v6 }
 0x6d6   :  { %3245 = vmatpush1.bf16.msra.mxu0 %v3150_v13  ;;  %v3118_v13 = vld [vmem:[#allocation5 + $0xb0] sm:$0xff]  ;;  %v3199_v28 = vunpack.c.l.s8.bf16 %v3124_v22  ;;  %v3205_v32 = vunpack.c.l.s8.bf16 %v3127_v31  ;;  %v3213_v40 = vunpack.c.h.s8.bf16 %v3129_v37  ;;  %v3225_v56 = vunpack.c.h.s8.bf16 %v3135_v51 }
 0x6d7   :  { %3246 = vmatprep.subr.bf16.mxu0 %v3154_v14  ;;  %v3183_v14 = vunpack.c.h.s8.bf16 %v3114_v11  ;;  %v3187_v15 = vunpack.c.l.s8.bf16 %v3118_v13  ;;  %v3190_v18 = vunpack.c.h.s8.bf16 %v3118_v13  ;;  %v3110_v11 = vld [vmem:[#allocation5 + $0x70] sm:$0xff] }
 0x6d8   :  { %4175 = vmatpush3.bf16.msra.mxu1 %v3200_v34  ;;  %v3098_v13 = vld [vmem:[#allocation5 + $0x10] sm:$0xff] }
 0x6d9   :  { %4176 = vmatprep.subr.bf16.mxu1 %v3227_v35  ;;  %v3130_v35 = vld [vmem:[#allocation5 + $0x110] sm:$0xff] }
 0x6da   :  { %3247 = vmatpush1.bf16.msra.mxu0 %v3153_v21  ;;  %v3117_v21 = vld [vmem:[#allocation5 + $0xa8] sm:$0xff]  ;;  %v3211_v45 = vunpack.c.l.s8.bf16 %v3130_v35 }
 0x6db   :  { %3248 = vmatprep.subr.bf16.mxu0 %v3157_v16  ;;  %v3186_v16 = vunpack.c.l.s8.bf16 %v3117_v21  ;;  %v3189_v41 = vunpack.c.h.s8.bf16 %v3117_v21  ;;  %v3113_v21 = vld [vmem:[#allocation5 + $0x88] sm:$0xff] }
 0x6dc   :  { %4177 = vmatpush3.bf16.msra.mxu1 %v3203_v38  ;;  %v3214_v38 = vunpack.c.h.s8.bf16 %v3130_v35 }
 0x6dd   :  { %4178 = vmatprep.subr.bf16.mxu1 %v3230_v36 }
 0x6de   :  { %3249 = vmatpush1.bf16.msra.mxu0 %v3156_v44  ;;  %v3193_v44 = vunpack.c.l.s8.bf16 %v3121_v6  ;;  %v3101_v6 = vld [vmem:[#allocation5 + $0x28] sm:$0xff] }
 0x6df   :  { %3250 = vmatprep.subr.bf16.mxu0 %v3160_v26  ;;  %v3120_v26 = vld [vmem:[#allocation5 + $0xc0] sm:$0xff] }
 0x6e0   :  { %4179 = vmatpush3.bf16.msra.mxu1 %v3206_v48  ;;  %v3192_v24 = vunpack.c.l.s8.bf16 %v3120_v26  ;;  %v3195_v27 = vunpack.c.h.s8.bf16 %v3120_v26  ;;  %v3116_v26 = vld [vmem:[#allocation5 + $0xa0] sm:$0xff] }
 0x6e1   :  { %4180 = vmatprep.subr.bf16.mxu1 %v3233_v49  ;;  %v3219_v49 = vunpack.c.h.s8.bf16 %v3132_v43 }
 0x6e2   :  { %3251 = vmatpush1.bf16.msra.mxu0 %v3159_v29  ;;  %v3123_v29 = vld [vmem:[#allocation5 + $0xd8] sm:$0xff] }
 0x6e3   :  { %3252 = vmatprep.subr.bf16.mxu0 %v3163_v30  ;;  %v3198_v20 = vunpack.c.l.s8.bf16 %v3123_v29  ;;  %v3202_v30 = vunpack.c.h.s8.bf16 %v3124_v22  ;;  %v3201_v53 = vunpack.c.h.s8.bf16 %v3123_v29  ;;  %v3104_v22 = vld [vmem:[#allocation5 + $0x40] sm:$0xff] }
 0x6e4   :  { %4181 = vmatpush3.bf16.msra.mxu1 %v3209_v55 }
 0x6e5   :  { %4182 = vmatprep.subr.bf16.mxu1 %v3236_v57 }
 0x6e6   :  { %3253 = vmatpush1.bf16.msra.mxu0 %v3162_v33  ;;  %v3126_v33 = vld [vmem:[#allocation5 + $0xf0] sm:$0xff] }
 0x6e7   :  { %3254 = vmatprep.subr.bf16.mxu0 %v3166_v62  ;;  %v3204_v34 = vunpack.c.l.s8.bf16 %v3126_v33  ;;  %v3208_v62 = vunpack.c.h.s8.bf16 %v3127_v31 }
 0x6e8   :  { %4183 = vmatpush3.bf16.msra.mxu1 %v3212_v50 }
 0x6e9   :  { %4184 = vmatprep.subr.bf16.mxu1 %v3239_v0  ;;  %v3231_v0 = vunpack.c.h.s8.bf16 %v3138_v19 }
 0x6ea   :  { %3255 = vmatpush1.bf16.msra.mxu0 %v3165_v42  ;;  %v3210_v42 = vunpack.c.l.s8.bf16 %v3129_v37 }
 0x6eb   :  { %3256 = vmatprep.subr.bf16.mxu0 %v3169_v39  ;;  %v3133_v39 = vld [vmem:[#allocation5 + $0x128] sm:$0xff] }
 0x6ec   :  { %4185 = vmatpush3.bf16.msra.mxu1 %v3215_v46  ;;  %v3217_v36 = vunpack.c.l.s8.bf16 %v3133_v39  ;;  %v3220_v48 = vunpack.c.h.s8.bf16 %v3133_v39 }
 0x6ee   :  { %3257 = vmatpush1.bf16.msra.mxu0 %v3168_v47  ;;  %v3216_v47 = vunpack.c.l.s8.bf16 %v3132_v43 }
 0x6ef   :  { %3258 = vmatprep.subr.bf16.mxu0 %v3172_v23  ;;  %3395 = vmatmul.mubr.bf16.vlgmr.msra.gmra.mrb[20].mxu1 %v5044_v59  ;;  %v3136_v23 = vld [vmem:[#allocation5 + $0x140] sm:$0xff] }
 0x6f0   :  { %v3223_v52 = vunpack.c.l.s8.bf16 %v3136_v23  ;;  %v3226_v55 = vunpack.c.h.s8.bf16 %v3136_v23 }
 0x6f2   :  { %3259 = vmatpush1.bf16.msra.mxu0 %v3171_v54  ;;  %v3222_v54 = vunpack.c.l.s8.bf16 %v3135_v51 }
 0x6f3   :  { %3260 = vmatprep.subr.bf16.mxu0 %v3175_v7  ;;  %v3139_v7 = vld [vmem:[#allocation5 + $0x158] sm:$0xff] }
 0x6f4   :  { %v3229_v57 = vunpack.c.l.s8.bf16 %v3139_v7  ;;  %v3232_v50 = vunpack.c.h.s8.bf16 %v3139_v7 }
 0x6f6   :  { %3261 = vmatpush1.bf16.msra.mxu0 %v3174_v17  ;;  %v3228_v17 = vunpack.c.l.s8.bf16 %v3138_v19 }
 0x6f7   :  { %3262 = vmatprep.subr.bf16.mxu0 %v3178_v63  ;;  %v3142_v63 = vld [vmem:[#allocation5 + $0x170] sm:$0xff] }
 0x6f8   :  { %v3235_v8 = vunpack.c.l.s8.bf16 %v3142_v63 }
 0x6fa   :  { %3263 = vmatpush1.bf16.msra.mxu0 %v3177_v9  ;;  %v3141_v9 = vld [vmem:[#allocation5 + $0x168] sm:$0xff] }
 0x6fb   :  { %3264 = vmatprep.subr.bf16.mxu0 %v3181_v10  ;;  %v3234_v46 = vunpack.c.l.s8.bf16 %v3141_v9  ;;  %v3238_v10 = vunpack.c.h.s8.bf16 %v3142_v63 }
 0x6fe   :  { %3265 = vmatpush1.bf16.msra.mxu0 %v3180_v3  ;;  %v3237_v3 = vunpack.c.h.s8.bf16 %v3141_v9 }
 0x6ff   :  { %3266 = vmatprep.subr.bf16.mxu0 %v3184_v12  ;;  %v3170_v12 = vunpack.c.l.s8.bf16 %v3110_v11 }
 0x702   :  { %3267 = vmatpush1.bf16.msra.mxu0 %v3183_v14  ;;  %v3146_v14 = vunpack.c.l.s8.bf16 %v3098_v13 }
 0x703   :  { %3268 = vmatprep.subr.bf16.mxu0 %v3187_v15  ;;  %v3173_v15 = vunpack.c.h.s8.bf16 %v3110_v11 }
 0x706   :  { %3269 = vmatpush1.bf16.msra.mxu0 %v3186_v16  ;;  %v3149_v16 = vunpack.c.h.s8.bf16 %v3098_v13 }
 0x707   :  { %3270 = vmatprep.subr.bf16.mxu0 %v3190_v18  ;;  %v3176_v18 = vunpack.c.l.s8.bf16 %v3113_v21 }
 0x70a   :  { %3271 = vmatpush1.bf16.msra.mxu0 %v3189_v41  ;;  %v3152_v41 = vunpack.c.l.s8.bf16 %v3101_v6 }
 0x70b   :  { %3281 = vmatprep.subr.bf16.mxu0 %v3193_v44  ;;  %v3179_v44 = vunpack.c.h.s8.bf16 %v3113_v21 }
 0x70d   :  { %3273 = vmatmul.mubr.bf16.vlgmr.msra.gmra.mrb[40].mxu0 %v5042_v58 }
 0x70e   :  { %3282 = vmatpush1.bf16.msra.mxu0 %v3192_v24  ;;  %3313 = vmatprep.mubr.bf16.mxu0 %v5048_v61  ;;  %v3207_v61 = vunpack.c.h.s8.bf16 %v3126_v33  ;;  %v3155_v24 = vunpack.c.h.s8.bf16 %v3101_v6 }
 0x70f   :  { %3283 = vmatprep.subr.bf16.mxu0 %v3196_v25  ;;  %v3182_v25 = vunpack.c.l.s8.bf16 %v3116_v26 }
 0x712   :  { %3284 = vmatpush1.bf16.msra.mxu0 %v3195_v27  ;;  %v3158_v27 = vunpack.c.l.s8.bf16 %v3104_v22 }
 0x713   :  { %3285 = vmatprep.subr.bf16.mxu0 %v3199_v28  ;;  %v3119_v28 = vld [vmem:[#allocation5 + $0xb8] sm:$0xff] }
 0x714   :  { %v3188_v29 = vunpack.c.l.s8.bf16 %v3119_v28  ;;  %v3191_v31 = vunpack.c.h.s8.bf16 %v3119_v28 }
 0x716   :  { %3286 = vmatpush1.bf16.msra.mxu0 %v3198_v20  ;;  %v3107_v20 = vld [vmem:[#allocation5 + $0x58] sm:$0xff] }
 0x717   :  { %3287 = vmatprep.subr.bf16.mxu0 %v3202_v30  ;;  %v3164_v30 = vunpack.c.l.s8.bf16 %v3107_v20 }
 0x71a   :  { %3288 = vmatpush1.bf16.msra.mxu0 %v3201_v53  ;;  %v3167_v53 = vunpack.c.h.s8.bf16 %v3107_v20 }
 0x71b   :  { %3289 = vmatprep.subr.bf16.mxu0 %v3205_v32 }
 0x71e   :  { %3290 = vmatpush1.bf16.msra.mxu0 %v3204_v34 }
 0x71f   :  { %3291 = vmatprep.subr.bf16.mxu0 %v3208_v62 }
 0x722   :  { %3292 = vmatpush1.bf16.msra.mxu0 %v3207_v61  ;;  %v3402_v61 = vld [vmem:[#allocation13 + $0x15] sm:$0x7] }
 0x723   :  { %3293 = vmatprep.subr.bf16.mxu0 %v3211_v45  ;;  %v3422_v45 = vld [vmem:[#allocation13 + $0x33] sm:$0x7]  ;;  %v3407_v37 = vrot.slane %v3402_v61, %v4829_v2  ;;  %v3415_v63 = vrot.slane %v3402_v61, %v4837_v5 }
 0x726   :  { %3294 = vmatpush1.bf16.msra.mxu0 %v3210_v42  ;;  %v3411_v42 = vrot.slane %v3402_v61, %v4834_v4 }
 0x727   :  { %3295 = vmatprep.subr.bf16.mxu0 %v3214_v38  ;;  %v3427_v38 = vrot.slane %v3422_v45, %v4829_v2 }
 0x72a   :  { %3296 = vmatpush1.bf16.msra.mxu0 %v3213_v40  ;;  %v3431_v40 = vrot.slane %v3422_v45, %v4834_v4 }
 0x72b   :  { %3297 = vmatprep.subr.bf16.mxu0 %v3217_v36 }
 0x72e   :  { %3298 = vmatpush1.bf16.msra.mxu0 %v3216_v47  ;;  %v3445_v47 = vstv %s4729_s23 }
 0x72f   :  { %3299 = vmatprep.subr.bf16.mxu0 %v3220_v48 }
 0x732   :  { %3300 = vmatpush1.bf16.msra.mxu0 %v3219_v49 }
 0x733   :  { %3301 = vmatprep.subr.bf16.mxu0 %v3223_v52 }
 0x736   :  { %3302 = vmatpush1.bf16.msra.mxu0 %v3222_v54 }
 0x737   :  { %3303 = vmatprep.subr.bf16.mxu0 %v3226_v55 }
 0x73a   :  { %3304 = vmatpush1.bf16.msra.mxu0 %v3225_v56 }
 0x73b   :  { %3305 = vmatprep.subr.bf16.mxu0 %v3229_v57 }
 0x73e   :  { %3306 = vmatpush1.bf16.msra.mxu0 %v3228_v17 }
 0x73f   :  { %3307 = vmatprep.subr.bf16.mxu0 %v3232_v50 }
 0x742   :  { %3308 = vmatpush1.bf16.msra.mxu0 %v3231_v0 }
 0x743   :  { %3309 = vmatprep.subr.bf16.mxu0 %v3235_v8 }
 0x746   :  { %3310 = vmatpush1.bf16.msra.mxu0 %v3234_v46  ;;  %v3435_v46 = vrot.slane %v3422_v45, %v4837_v5 }
 0x747   :  { %3311 = vmatprep.subr.bf16.mxu0 %v3238_v10 }
 0x74a   :  { %3312 = vmatpush1.bf16.msra.mxu0 %v3237_v3 }
 0x74b   :  { %4148 = vmatprep.subr.bf16.mxu0 %v3170_v12 }
 0x74d   :  { %3314 = vmatmul.mubr.bf16.vlgmr.msra.gmra.mrb[40].mxu0 %v5044_v59  ;;  %v3185_v59 = vunpack.c.h.s8.bf16 %v3116_v26 }
 0x74e   :  { %4149 = vmatpush3.bf16.msra.mxu0 %v3146_v14  ;;  %3354 = vmatprep.mubr.bf16.mxu0 %v5046_v60  ;;  %v3161_v60 = vunpack.c.h.s8.bf16 %v3104_v22 }
 0x74f   :  { %4150 = vmatprep.subr.bf16.mxu0 %v3173_v15 }
 0x752   :  { %4151 = vmatpush3.bf16.msra.mxu0 %v3149_v16 }
 0x753   :  { %4152 = vmatprep.subr.bf16.mxu0 %v3176_v18 }
 0x756   :  { %4153 = vmatpush3.bf16.msra.mxu0 %v3152_v41 }
 0x757   :  { %4154 = vmatprep.subr.bf16.mxu0 %v3179_v44 }
 0x75a   :  { %4155 = vmatpush3.bf16.msra.mxu0 %v3155_v24 }
 0x75b   :  { %4156 = vmatprep.subr.bf16.mxu0 %v3182_v25 }
 0x75e   :  { %4157 = vmatpush3.bf16.msra.mxu0 %v3158_v27 }
 0x75f   :  { %4158 = vmatprep.subr.bf16.mxu0 %v3185_v59 }
 0x762   :  { %4159 = vmatpush3.bf16.msra.mxu0 %v3161_v60 }
 0x763   :  { %4160 = vmatprep.subr.bf16.mxu0 %v3188_v29 }
 0x766   :  { %4161 = vmatpush3.bf16.msra.mxu0 %v3164_v30 }
 0x767   :  { %4162 = vmatprep.subr.bf16.mxu0 %v3191_v31 }
 0x76a   :  { %4163 = vmatpush3.bf16.msra.mxu0 %v3167_v53 }
 0x76d   :  { %3355 = vmatmul.mubr.bf16.vlgmr.msra.gmra.mrb[44].mxu0 %v5042_v58 }
 0x7c2   :  { %v4186_v32 = vpop.f32.mrb[20].mxu1 }
 0x7c3   :  { %v4187_v33 = vpop.f32.mrb[21].mxu1 }
 0x7c4   :  { %v4188_v34 = vadd.f32 %v4187_v33, %v4186_v32  ;;  %v4189_v62 = vpop.f32.mrb[22].mxu1 }
 0x7c5   :  { %v4190_v35 = vpop.f32.mrb[23].mxu1 }
 0x820   :  { %v3315_v39 = vpop.f32.mrb[40].mxu0 }
 0x821   :  { %v3419_v36 = vmul.f32 %v3407_v37, %v3315_v39  ;;  %v3317_v43 = vpop.f32.mrb[41].mxu0 }
 0x822   :  { %v3420_v58 = vmul.f32 %v3411_v42, %v3317_v43  ;;  %v3319_v48 = vpop.f32.mrb[42].mxu0 }
 0x823   :  { %v3439_v23 = vadd.f32 %v3427_v38, %v3419_v36  ;;  %v3320_v49 = vpop.f32.mrb[43].mxu0 }
 0x824   :  { %v3440_v52 = vadd.f32 %v3431_v40, %v3420_v58 }
 0x825   :  { %vm3442_vm6 = vcmp.gt.f32.partialorder %v3439_v23, 0.0  ;;  %v3446_v51 = vmul.f32 %v3445_v47, %v3439_v23 }
 0x826   :  { %vm3443_vm7 = vcmp.gt.f32.partialorder %v3440_v52, 0.0  ;;  %v3447_v54 = vmul.f32 %v3445_v47, %v3440_v52 }
 0x827   :  { %v5063_v55 = vsel %vm3442_vm6, %v3439_v23, %v3446_v51 }
 0x828   :  { %v3452_v7 = vpack.c.bf16 %v5063_v55, %v5063_v55  ;;  %v3450_v56 = vsel %vm3443_vm7, %v3440_v52, %v3447_v54 }
 0x829   :  { %v3453_v57 = vpack.c.bf16 %v3450_v56, %v3450_v56 }
 0x840   :  { %v4164_v19 = vpop.f32.mrb[44].mxu0 }
 0x841   :  { %v4165_v17 = vpop.f32.mrb[45].mxu0 }
 0x842   :  { %v4166_v50 = vadd.f32 %v4165_v17, %v4164_v19  ;;  %v4167_v0 = vpop.f32.mrb[46].mxu0 }
 0x843   :  { %v4168_v8 = vpop.f32.mrb[47].mxu0 }
 0x844   :  { %v3397_v9 = vadd.f32 %v4188_v34, %v4166_v50 }
 0x846   :  { %v3421_v10 = vmul.f32 %v3415_v63, %v3397_v9 }
 0x848   :  { %v3441_v11 = vadd.f32 %v3435_v46, %v3421_v10 }
 0x84a   :  { %vm3444_vm8 = vcmp.gt.f32.partialorder %v3441_v11, 0.0  ;;  %v3448_v3 = vmul.f32 %v3445_v47, %v3441_v11 }
 0x84c   :  { %v5069_v12 = vsel %vm3444_vm8, %v3441_v11, %v3448_v3 }
 0x84d   :  { %v3454_v13 = vpack.c.bf16 %v5069_v12, %v5069_v12 }
 0x84e   :  { %4616 = dma.done.wait [#allocation8 + $0x4], 3072 }
 0x84f   :  { %4617 = vsyncadd [#allocation8 + $0x4], 4294964224  ;;  %3563 = vmatprep.mubr.bf16.mxu0 %v3453_v57  ;;  %v3460_v14 = vld [vmem:[#allocation6 + $0x8] sm:$0xff]  ;;  %v3459_v15 = vld [vmem:[#allocation6] sm:$0xff] }
 0x850   :  { %v3484_v21 = vunpack.c.l.s8.bf16 %v3460_v14  ;;  %v3486_v16 = vunpack.c.h.s8.bf16 %v3460_v14  ;;  %v3483_v18 = vunpack.c.l.s8.bf16 %v3459_v15  ;;  %v3462_v6 = vld [vmem:[#allocation6 + $0x18] sm:$0xff]  ;;  %v3485_v5 = vunpack.c.h.s8.bf16 %v3459_v15  ;;  %v3461_v44 = vld [vmem:[#allocation6 + $0x10] sm:$0xff]  ;;  %v3464_v25 = vld [vmem:[#allocation6 + $0x28] sm:$0xff] }
 0x851   :  { %v3488_v41 = vunpack.c.l.s8.bf16 %v3462_v6  ;;  %v3487_v26 = vunpack.c.l.s8.bf16 %v3461_v44  ;;  %v3490_v24 = vunpack.c.h.s8.bf16 %v3462_v6  ;;  %v3489_v22 = vunpack.c.h.s8.bf16 %v3461_v44  ;;  %v3463_v59 = vld [vmem:[#allocation6 + $0x20] sm:$0xff]  ;;  %v3466_v29 = vld [vmem:[#allocation6 + $0x38] sm:$0xff]  ;;  %v3465_v31 = vld [vmem:[#allocation6 + $0x30] sm:$0xff] }
 0x852   :  { %3531 = vmatprep.subr.bf16.mxu0 %v3484_v21  ;;  %v3492_v27 = vunpack.c.l.s8.bf16 %v3464_v25  ;;  %v3491_v28 = vunpack.c.l.s8.bf16 %v3463_v59  ;;  %v3494_v60 = vunpack.c.h.s8.bf16 %v3464_v25  ;;  %v3493_v20 = vunpack.c.h.s8.bf16 %v3463_v59  ;;  %v3468_v33 = vld [vmem:[#allocation6 + $0x48] sm:$0xff]  ;;  %v3467_v35 = vld [vmem:[#allocation6 + $0x40] sm:$0xff]  ;;  %v3470_v37 = vld [vmem:[#allocation6 + $0x58] sm:$0xff] }
 0x853   :  { %3532 = vmatpush1.bf16.msra.mxu0 %v3483_v18  ;;  %v3496_v30 = vunpack.c.l.s8.bf16 %v3466_v29  ;;  %v3495_v53 = vunpack.c.l.s8.bf16 %v3465_v31  ;;  %v3498_v32 = vunpack.c.h.s8.bf16 %v3466_v29  ;;  %v3497_v34 = vunpack.c.h.s8.bf16 %v3465_v31  ;;  %v3469_v39 = vld [vmem:[#allocation6 + $0x50] sm:$0xff]  ;;  %v3472_v43 = vld [vmem:[#allocation6 + $0x68] sm:$0xff]  ;;  %v3471_v48 = vld [vmem:[#allocation6 + $0x60] sm:$0xff] }
 0x854   :  { %3533 = vmatprep.subr.bf16.mxu0 %v3486_v16  ;;  %v3500_v62 = vunpack.c.l.s8.bf16 %v3468_v33  ;;  %v3499_v61 = vunpack.c.l.s8.bf16 %v3467_v35  ;;  %v3502_v45 = vunpack.c.h.s8.bf16 %v3468_v33  ;;  %v3501_v42 = vunpack.c.h.s8.bf16 %v3467_v35  ;;  %v3474_v52 = vld [vmem:[#allocation6 + $0x78] sm:$0xff]  ;;  %v3473_v56 = vld [vmem:[#allocation6 + $0x70] sm:$0xff]  ;;  %v3476_v17 = vld [vmem:[#allocation6 + $0x88] sm:$0xff] }
 0x855   :  { %v3504_v38 = vunpack.c.l.s8.bf16 %v3470_v37  ;;  %v3503_v40 = vunpack.c.l.s8.bf16 %v3469_v39  ;;  %v3506_v36 = vunpack.c.h.s8.bf16 %v3470_v37  ;;  %v3505_v47 = vunpack.c.h.s8.bf16 %v3469_v39  ;;  %v3475_v0 = vld [vmem:[#allocation6 + $0x80] sm:$0xff]  ;;  %v3478_v46 = vld [vmem:[#allocation6 + $0x98] sm:$0xff]  ;;  %v3477_v3 = vld [vmem:[#allocation6 + $0x90] sm:$0xff] }
 0x856   :  { %v3508_v58 = vunpack.c.l.s8.bf16 %v3472_v43  ;;  %v3507_v23 = vunpack.c.l.s8.bf16 %v3471_v48  ;;  %v3510_v49 = vunpack.c.h.s8.bf16 %v3472_v43  ;;  %v3509_v51 = vunpack.c.h.s8.bf16 %v3471_v48  ;;  %v3480_v21 = vld [vmem:[#allocation6 + $0xa8] sm:$0xff]  ;;  %v3479_v6 = vld [vmem:[#allocation6 + $0xa0] sm:$0xff]  ;;  %v3481_v44 = vld [vmem:[#allocation6 + $0xb0] sm:$0xff] }
 0x857   :  { %3534 = vmatpush1.bf16.msra.mxu0 %v3485_v5  ;;  %v3512_v54 = vunpack.c.l.s8.bf16 %v3474_v52  ;;  %v3511_v57 = vunpack.c.l.s8.bf16 %v3473_v56  ;;  %v3514_v19 = vunpack.c.h.s8.bf16 %v3474_v52  ;;  %v3513_v50 = vunpack.c.h.s8.bf16 %v3473_v56  ;;  %v3482_v5 = vld [vmem:[#allocation6 + $0xb8] sm:$0xff] }
 0x858   :  { %3535 = vmatprep.subr.bf16.mxu0 %v3488_v41  ;;  %v3516_v63 = vunpack.c.l.s8.bf16 %v3476_v17  ;;  %v3515_v8 = vunpack.c.l.s8.bf16 %v3475_v0  ;;  %v3518_v9 = vunpack.c.h.s8.bf16 %v3476_v17  ;;  %v3517_v10 = vunpack.c.h.s8.bf16 %v3475_v0 }
 0x859   :  { %v3520_v11 = vunpack.c.l.s8.bf16 %v3478_v46  ;;  %v3519_v14 = vunpack.c.l.s8.bf16 %v3477_v3  ;;  %v3522_v15 = vunpack.c.h.s8.bf16 %v3478_v46  ;;  %v3521_v16 = vunpack.c.h.s8.bf16 %v3477_v3 }
 0x85a   :  { %v3524_v18 = vunpack.c.l.s8.bf16 %v3480_v21  ;;  %v3523_v55 = vunpack.c.l.s8.bf16 %v3479_v6  ;;  %v3528_v41 = vunpack.c.l.s8.bf16 %v3482_v5  ;;  %v3529_v25 = vunpack.c.h.s8.bf16 %v3481_v44 }
 0x85b   :  { %3536 = vmatpush1.bf16.msra.mxu0 %v3487_v26  ;;  %v3527_v26 = vunpack.c.l.s8.bf16 %v3481_v44 }
 0x85c   :  { %3537 = vmatprep.subr.bf16.mxu0 %v3490_v24  ;;  %v3530_v24 = vunpack.c.h.s8.bf16 %v3482_v5 }
 0x85f   :  { %3538 = vmatpush1.bf16.msra.mxu0 %v3489_v22  ;;  %v3613_v22 = vld [vmem:[#allocation13 + $0x18] sm:$0x3] }
 0x860   :  { %3539 = vmatprep.subr.bf16.mxu0 %v3492_v27  ;;  %v3627_v27 = vld [vmem:[#allocation13 + $0x36] sm:$0x3]  ;;  %v3618_v59 = vrot.slane %v3613_v22, %v4829_v2 }
 0x863   :  { %3540 = vmatpush1.bf16.msra.mxu0 %v3491_v28  ;;  %v3622_v28 = vrot.slane %v3613_v22, %v4834_v4 }
 0x864   :  { %3541 = vmatprep.subr.bf16.mxu0 %v3494_v60  ;;  %v3632_v60 = vrot.slane %v3627_v27, %v4829_v2 }
 0x867   :  { %3542 = vmatpush1.bf16.msra.mxu0 %v3493_v20  ;;  %v3636_v20 = vrot.slane %v3627_v27, %v4834_v4 }
 0x868   :  { %3543 = vmatprep.subr.bf16.mxu0 %v3496_v30 }
 0x86b   :  { %3544 = vmatpush1.bf16.msra.mxu0 %v3495_v53  ;;  %v3643_v53 = vstv %s4731_s24 }
 0x86c   :  { %3545 = vmatprep.subr.bf16.mxu0 %v3498_v32 }
 0x86f   :  { %3546 = vmatpush1.bf16.msra.mxu0 %v3497_v34 }
 0x870   :  { %3547 = vmatprep.subr.bf16.mxu0 %v3500_v62 }
 0x873   :  { %3548 = vmatpush1.bf16.msra.mxu0 %v3499_v61 }
 0x874   :  { %3549 = vmatprep.subr.bf16.mxu0 %v3502_v45 }
 0x877   :  { %3550 = vmatpush1.bf16.msra.mxu0 %v3501_v42 }
 0x878   :  { %3551 = vmatprep.subr.bf16.mxu0 %v3504_v38 }
 0x87b   :  { %3552 = vmatpush1.bf16.msra.mxu0 %v3503_v40 }
 0x87c   :  { %3553 = vmatprep.subr.bf16.mxu0 %v3506_v36 }
 0x87f   :  { %3554 = vmatpush1.bf16.msra.mxu0 %v3505_v47 }
 0x880   :  { %3555 = vmatprep.subr.bf16.mxu0 %v3508_v58 }
 0x883   :  { %3556 = vmatpush1.bf16.msra.mxu0 %v3507_v23 }
 0x884   :  { %3557 = vmatprep.subr.bf16.mxu0 %v3510_v49 }
 0x887   :  { %3558 = vmatpush1.bf16.msra.mxu0 %v3509_v51 }
 0x888   :  { %3559 = vmatprep.subr.bf16.mxu0 %v3512_v54 }
 0x88b   :  { %3560 = vmatpush1.bf16.msra.mxu0 %v3511_v57 }
 0x88c   :  { %3561 = vmatprep.subr.bf16.mxu0 %v3514_v19 }
 0x88f   :  { %3562 = vmatpush1.bf16.msra.mxu0 %v3513_v50 }
 0x890   :  { %3572 = vmatprep.subr.bf16.mxu0 %v3516_v63 }
 0x892   :  { %3564 = vmatmul.mubr.bf16.vlgmr.msra.gmra.mrb[48].mxu0 %v3452_v7  ;;  %v3526_v7 = vunpack.c.h.s8.bf16 %v3480_v21 }
 0x893   :  { %3573 = vmatpush1.bf16.msra.mxu0 %v3515_v8  ;;  %3604 = vmatprep.mubr.bf16.mxu0 %v4631_v1  ;;  %v3525_v1 = vunpack.c.h.s8.bf16 %v3479_v6 }
 0x894   :  { %3574 = vmatprep.subr.bf16.mxu0 %v3518_v9 }
 0x897   :  { %3575 = vmatpush1.bf16.msra.mxu0 %v3517_v10 }
 0x898   :  { %3576 = vmatprep.subr.bf16.mxu0 %v3520_v11 }
 0x89b   :  { %3577 = vmatpush1.bf16.msra.mxu0 %v3519_v14 }
 0x89c   :  { %3578 = vmatprep.subr.bf16.mxu0 %v3522_v15 }
 0x89f   :  { %3579 = vmatpush1.bf16.msra.mxu0 %v3521_v16 }
 0x8a0   :  { %3580 = vmatprep.subr.bf16.mxu0 %v3524_v18 }
 0x8a3   :  { %3581 = vmatpush1.bf16.msra.mxu0 %v3523_v55 }
 0x8a4   :  { %3582 = vmatprep.subr.bf16.mxu0 %v3526_v7 }
 0x8a7   :  { %3583 = vmatpush1.bf16.msra.mxu0 %v3525_v1 }
 0x8a8   :  { %3584 = vmatprep.subr.bf16.mxu0 %v3528_v41 }
 0x8ab   :  { %3585 = vmatpush1.bf16.msra.mxu0 %v3527_v26 }
 0x8ac   :  { %3586 = vmatprep.subr.bf16.mxu0 %v3530_v24 }
 0x8af   :  { %3587 = vmatpush1.bf16.msra.mxu0 %v3529_v25 }
 0x8b2   :  { %3605 = vmatmul.mubr.bf16.vlgmr.msra.gmra.mrb[48].mxu0 %v3454_v13 }
 0x985   :  { %v3606_v29 = vpop.f32.mrb[48].mxu0 }
 0x986   :  { %v3625_v30 = vmul.f32 %v3618_v59, %v3606_v29  ;;  %v3608_v31 = vpop.f32.mrb[49].mxu0 }
 0x987   :  { %v3626_v32 = vmul.f32 %v3622_v28, %v3608_v31  ;;  %v3610_v33 = vpop.f32.mrb[50].mxu0 }
 0x988   :  { %v3639_v34 = vadd.f32 %v3632_v60, %v3625_v30  ;;  %v3611_v62 = vpop.f32.mrb[51].mxu0 }
 0x989   :  { %v3640_v12 = vadd.f32 %v3636_v20, %v3626_v32 }
 0x98a   :  { %vm3641_vm9 = vcmp.gt.f32.partialorder %v3639_v34, 0.0  ;;  %v3644_v13 = vmul.f32 %v3643_v53, %v3639_v34 }
 0x98b   :  { %vm3642_vm10 = vcmp.gt.f32.partialorder %v3640_v12, 0.0  ;;  %v3645_v35 = vmul.f32 %v3643_v53, %v3640_v12 }
 0x98c   :  { %v3646_v61 = vsel %vm3641_vm9, %v3639_v34, %v3644_v13 }
 0x98d   :  { %v3648_v45 = vpack.c.bf16 %v3646_v61, %v3646_v61  ;;  %v3647_v37 = vsel %vm3642_vm10, %v3640_v12, %v3645_v35 }
 0x98e   :  { %v3649_v42 = vpack.c.bf16 %v3647_v37, %v3647_v37 }
 0x98f   :  { %4618 = dma.done.wait [#allocation8 + $0x5], 2560 }
 0x990   :  { %4619 = vsyncadd [#allocation8 + $0x5], 4294964736  ;;  %3710 = vmatprep.mubr.bf16.mxu1 %v3649_v42  ;;  %v4632_v2 = vmov 0.0   ;;  %v3658_v4 = vld [vmem:[#allocation7 + $0x20] sm:$0xff]  ;;  %v3659_v43 = vld [vmem:[#allocation7 + $0x28] sm:$0xff]  ;;  %vm4633_vm11 = vmmov 0   ;;  %v3735_v59 = vstv %s4733_s8 }
 0x991   :  { %4281 = vmatprep.subr.bf16.mxu0 %v4632_v2  ;;  %v3654_v38 = vld [vmem:[#allocation7] sm:$0xff]  ;;  %v3670_v39 = vunpack.c.l.s8.bf16 %v3658_v4  ;;  %v3671_v40 = vunpack.c.h.s8.bf16 %v3658_v4  ;;  %v3672_v58 = vunpack.c.l.s8.bf16 %v3659_v43  ;;  %v3655_v48 = vld [vmem:[#allocation7 + $0x8] sm:$0xff]  ;;  %v3673_v49 = vunpack.c.h.s8.bf16 %v3659_v43  ;;  %v3660_v52 = vld [vmem:[#allocation7 + $0x30] sm:$0xff]  ;;  %4297 = vmatprep.mubr.msk.bf16.mxu0 %vm4633_vm11, %v4632_v2  ;;  %s4634_s6 = smov [#allocation16]  }
 0x992   :  { %v3662_v36 = vunpack.c.l.s8.bf16 %v3654_v38  ;;  %v3663_v47 = vunpack.c.h.s8.bf16 %v3654_v38  ;;  %v3664_v23 = vunpack.c.l.s8.bf16 %v3655_v48  ;;  %v3665_v51 = vunpack.c.h.s8.bf16 %v3655_v48  ;;  %v3656_v56 = vld [vmem:[#allocation7 + $0x10] sm:$0xff]  ;;  %v3661_v17 = vld [vmem:[#allocation7 + $0x38] sm:$0xff]  ;;  %v3739_v10 = vld [vmem:[#allocation7 + $0x40] sm:$0xff]  ;;  %s3960_s7 = sshll.u32 %s4634_s6, 4  ;;  %s3961_s7 = int_to_ptr.vmem [resolvable:$true] %s3960_s7 }
 0x993   :  { %4192 = vmatprep.subr.bf16.mxu1 %v3670_v39  ;;  %v3674_v54 = vunpack.c.l.s8.bf16 %v3660_v52  ;;  %v3666_v57 = vunpack.c.l.s8.bf16 %v3656_v56  ;;  %v3675_v19 = vunpack.c.h.s8.bf16 %v3660_v52  ;;  %v3667_v50 = vunpack.c.h.s8.bf16 %v3656_v56  ;;  %v3657_v0 = vld [vmem:[#allocation7 + $0x18] sm:$0xff]  ;;  %v3740_v14 = vld [vmem:[#allocation7 + $0x48] sm:$0xff]  ;;  %v3741_v16 = vld [vmem:[#allocation7 + $0x50] sm:$0xff]  ;;  %s4580_s12 = scalar_lea.vmem %s3961_s7, 128  ;;  %p4585_p12 = scmp.lt.s32.totalorder %s3961_s7, %s3961_s7 }
 0x994   :  { %4193 = vmatpush3.bf16.msra.mxu1 %v3662_v36  ;;  %v3676_v63 = vunpack.c.l.s8.bf16 %v3661_v17  ;;  %v3668_v8 = vunpack.c.l.s8.bf16 %v3657_v0  ;;  %v3677_v9 = vunpack.c.h.s8.bf16 %v3661_v17  ;;  %v3669_v46 = vunpack.c.h.s8.bf16 %v3657_v0  ;;  %v3742_v55 = vld [vmem:[#allocation7 + $0x58] sm:$0xff]  ;;  %v3812_v60 = vld [vmem:[#allocation7 + $0x60] sm:$0xff]  ;;  %v3813_v32 = vld [vmem:[#allocation7 + $0x68] sm:$0xff]  ;;  %p4581_p11 = scmp.ne.s32.totalorder %s3961_s7, %s4580_s12  ;;  %p4586_p13 = scmp.lt.s32.totalorder %s4580_s12, %s4580_s12 }
 0x995   :  { %4194 = vmatprep.subr.bf16.mxu1 %v3671_v40  ;;  %v3743_v11 = vunpack.c.l.s8.bf16 %v3739_v10  ;;  %v3744_v3 = vunpack.c.h.s8.bf16 %v3739_v10  ;;  %v3745_v15 = vunpack.c.l.s8.bf16 %v3740_v14  ;;  %v3746_v21 = vunpack.c.h.s8.bf16 %v3740_v14  ;;  %v4024_v44 = vld [vmem:[#allocation13 + $0x1a] ss:$0 sm:$0xff]  ;;  %v4025_v25 = vld [vmem:[#allocation13 + $0x38] ss:$0 sm:$0xff]  ;;  %v3814_v62 = vld [vmem:[#allocation7 + $0x70] sm:$0xff] }
 0x996   :  { %v3747_v18 = vunpack.c.l.s8.bf16 %v3741_v16  ;;  %v3748_v6 = vunpack.c.h.s8.bf16 %v3741_v16  ;;  %v3749_v7 = vunpack.c.l.s8.bf16 %v3742_v55  ;;  %v3750_v5 = vunpack.c.h.s8.bf16 %v3742_v55  ;;  %v3815_v35 = vld [vmem:[#allocation7 + $0x78] sm:$0xff]  ;;  %v3885_v37 = vld [vmem:[#allocation7 + $0x80] sm:$0xff]  ;;  %v3886_v38 = vld [vmem:[#allocation7 + $0x88] sm:$0xff]  ;;  %p4587_p0 = por %p4586_p13, %p4585_p12 }
 0x997   :  { %v3816_v30 = vunpack.c.l.s8.bf16 %v3812_v60  ;;  %v3817_v53 = vunpack.c.h.s8.bf16 %v3812_v60  ;;  %v3818_v33 = vunpack.c.l.s8.bf16 %v3813_v32  ;;  %v3819_v34 = vunpack.c.h.s8.bf16 %v3813_v32  ;;  %v3887_v36 = vld [vmem:[#allocation7 + $0x90] sm:$0xff]  ;;  %v4029_v10 = vld [vmem:[#allocation13 + $0x3a] ss:$0 sm:$0xff] }
 0x998   :  { %4195 = vmatpush3.bf16.msra.mxu1 %v3663_v47  ;;  %v3820_v12 = vunpack.c.l.s8.bf16 %v3814_v62  ;;  %v3821_v13 = vunpack.c.h.s8.bf16 %v3814_v62  ;;  %v3822_v61 = vunpack.c.l.s8.bf16 %v3815_v35  ;;  %v3889_v42 = vunpack.c.l.s8.bf16 %v3885_v37  ;;  %p4588_p1 = pnand %p4587_p0, %p4581_p11 }
 0x999   :  { %4196 = vmatprep.subr.bf16.mxu1 %v3672_v58  ;;  %v3890_v4 = vunpack.c.h.s8.bf16 %v3885_v37  ;;  %v3891_v39 = vunpack.c.l.s8.bf16 %v3886_v38  ;;  %v3892_v40 = vunpack.c.h.s8.bf16 %v3886_v38  ;;  %v3893_v43 = vunpack.c.l.s8.bf16 %v3887_v36  ;;  %v4026_v58 = vld [vmem:[#allocation13 + $0x1b] ss:$0 sm:$0xff] }
 0x99a   :  { %4282 = vmatpush3.bf16.msra.mxu0 %v3889_v42  ;;  %v3894_v47 = vunpack.c.h.s8.bf16 %v3887_v36  ;;  %v3881_v14 = vstv %s4737_s26 }
 0x99b   :  { %4283 = vmatprep.subr.bf16.mxu0 %v4632_v2 }
 0x99c   :  { %4197 = vmatpush3.bf16.msra.mxu1 %v3664_v23  ;;  %v4027_v23 = vld [vmem:[#allocation13 + $0x39] ss:$0 sm:$0xff] }
 0x99d   :  { %4198 = vmatprep.subr.bf16.mxu1 %v3673_v49 }
 0x99e   :  { %4284 = vmatpush3.bf16.msra.mxu0 %v3890_v4 }
 0x99f   :  { %4285 = vmatprep.subr.bf16.mxu0 %v4632_v2 }
 0x9a0   :  { %4199 = vmatpush3.bf16.msra.mxu1 %v3665_v51  ;;  %v3808_v51 = vstv %s4735_s25 }
 0x9a1   :  { %4200 = vmatprep.subr.bf16.mxu1 %v3674_v54 }
 0x9a2   :  { %4286 = vmatpush3.bf16.msra.mxu0 %v3891_v39 }
 0x9a3   :  { %4287 = vmatprep.subr.bf16.mxu0 %v4632_v2 }
 0x9a4   :  { %4201 = vmatpush3.bf16.msra.mxu1 %v3666_v57 }
 0x9a5   :  { %4202 = vmatprep.subr.bf16.mxu1 %v3675_v19 }
 0x9a6   :  { %4288 = vmatpush3.bf16.msra.mxu0 %v3892_v40 }
 0x9a7   :  { %4289 = vmatprep.subr.bf16.mxu0 %v4632_v2 }
 0x9a8   :  { %4203 = vmatpush3.bf16.msra.mxu1 %v3667_v50 }
 0x9a9   :  { %4204 = vmatprep.subr.bf16.mxu1 %v3676_v63  ;;  %v3888_v63 = vld [vmem:[#allocation7 + $0x98] sm:$0xff] }
 0x9aa   :  { %4290 = vmatpush3.bf16.msra.mxu0 %v3893_v43  ;;  %v3895_v0 = vunpack.c.l.s8.bf16 %v3888_v63 }
 0x9ab   :  { %4291 = vmatprep.subr.bf16.mxu0 %v4632_v2 }
 0x9ac   :  { %4205 = vmatpush3.bf16.msra.mxu1 %v3668_v8  ;;  %v3896_v8 = vunpack.c.h.s8.bf16 %v3888_v63 }
 0x9ad   :  { %4206 = vmatprep.subr.bf16.mxu1 %v3677_v9  ;;  %v4028_v9 = vld [vmem:[#allocation13 + $0x1c] ss:$0 sm:$0xff] }
 0x9ae   :  { %4292 = vmatpush3.bf16.msra.mxu0 %v3894_v47 }
 0x9af   :  { %4293 = vmatprep.subr.bf16.mxu0 %v4632_v2 }
 0x9b0   :  { %4207 = vmatpush3.bf16.msra.mxu1 %v3669_v46 }
 0x9b1   :  { %4241 = vmatprep.subr.bf16.mxu1 %v4632_v2 }
 0x9b2   :  { %4294 = vmatpush3.bf16.msra.mxu0 %v3895_v0 }
 0x9b3   :  { %3711 = vmatmul.mubr.bf16.vlgmr.msra.gmra.mrb[24].mxu1 %v3648_v45  ;;  %v3823_v45 = vunpack.c.h.s8.bf16 %v3815_v35  ;;  %4295 = vmatprep.subr.bf16.mxu0 %v4632_v2 }
 0x9b4   :  { %4242 = vmatpush3.bf16.msra.mxu1 %v3743_v11  ;;  %4257 = vmatprep.mubr.msk.bf16.mxu1 %vm4633_vm11, %v4632_v2 }
 0x9b5   :  { %4243 = vmatprep.subr.bf16.mxu1 %v4632_v2 }
 0x9b6   :  { %4296 = vmatpush3.bf16.msra.mxu0 %v3896_v8 }
 0x9b8   :  { %4244 = vmatpush3.bf16.msra.mxu1 %v3744_v3 }
 0x9b9   :  { %4245 = vmatprep.subr.bf16.mxu1 %v4632_v2 }
 0x9bc   :  { %4246 = vmatpush3.bf16.msra.mxu1 %v3745_v15 }
 0x9bd   :  { %4247 = vmatprep.subr.bf16.mxu1 %v4632_v2 }
 0x9c0   :  { %4248 = vmatpush3.bf16.msra.mxu1 %v3746_v21 }
 0x9c1   :  { %4249 = vmatprep.subr.bf16.mxu1 %v4632_v2 }
 0x9c4   :  { %4250 = vmatpush3.bf16.msra.mxu1 %v3747_v18 }
 0x9c5   :  { %4251 = vmatprep.subr.bf16.mxu1 %v4632_v2 }
 0x9c8   :  { %4252 = vmatpush3.bf16.msra.mxu1 %v3748_v6 }
 0x9c9   :  { %4253 = vmatprep.subr.bf16.mxu1 %v4632_v2 }
 0x9cc   :  { %4254 = vmatpush3.bf16.msra.mxu1 %v3749_v7  ;;  %v4030_v7 = vld [vmem:[#allocation13 + $0x1d] ss:$0 sm:$0xff] }
 0x9cd   :  { %4255 = vmatprep.subr.bf16.mxu1 %v4632_v2 }
 0x9d0   :  { %4256 = vmatpush3.bf16.msra.mxu1 %v3750_v5 }
 0x9d1   :  { %4261 = vmatprep.subr.bf16.mxu1 %v4632_v2 }
 0xa86   :  { %v4208_v1 = vpop.f32.mrb[24].mxu1 }
 0xa87   :  { %v4209_v41 = vpop.f32.mrb[25].mxu1 }
 0xa88   :  { %v4210_v26 = vadd.f32 %v4209_v41, %v4208_v1  ;;  %v4211_v24 = vpop.f32.mrb[26].mxu1  ;;  %v4031_v1 = vld [vmem:[#allocation13 + $0x3b] ss:$0 sm:$0xff] }
 0xa89   :  { %v4212_v22 = vpop.f32.mrb[27].mxu1 }
 0xa8a   :  { %v3725_v27 = vmul.f32 %v4210_v26, %v4024_v44 }
 0xa8c   :  { %v3733_v28 = vadd.f32 %v4025_v25, %v3725_v27 }
 0xa8e   :  { %vm3734_vm12 = vcmp.gt.f32.partialorder %v3733_v28, 0.0  ;;  %v3736_v29 = vmul.f32 %v3735_v59, %v3733_v28 }
 0xa90   :  { %v3737_v20 = vsel %vm3734_vm12, %v3733_v28, %v3736_v29 }
 0xa91   :  { %v3738_v31 = vpack.c.bf16 %v3737_v20, %v3737_v20 }
 0xa93   :  { %4258 = vmatmul.mubr.bf16.vlgmr.msra.gmra.mrb[28].mxu1 %v3738_v31 }
 0xa94   :  { %4262 = vmatpush3.bf16.msra.mxu1 %v3816_v30  ;;  %4277 = vmatprep.mubr.msk.bf16.mxu1 %vm4633_vm11, %v4632_v2 }
 0xa95   :  { %4263 = vmatprep.subr.bf16.mxu1 %v4632_v2 }
 0xa98   :  { %4264 = vmatpush3.bf16.msra.mxu1 %v3817_v53 }
 0xa99   :  { %4265 = vmatprep.subr.bf16.mxu1 %v4632_v2 }
 0xa9c   :  { %4266 = vmatpush3.bf16.msra.mxu1 %v3818_v33 }
 0xa9d   :  { %4267 = vmatprep.subr.bf16.mxu1 %v4632_v2 }
 0xaa0   :  { %4268 = vmatpush3.bf16.msra.mxu1 %v3819_v34 }
 0xaa1   :  { %4269 = vmatprep.subr.bf16.mxu1 %v4632_v2 }
 0xaa4   :  { %4270 = vmatpush3.bf16.msra.mxu1 %v3820_v12 }
 0xaa5   :  { %4271 = vmatprep.subr.bf16.mxu1 %v4632_v2 }
 0xaa8   :  { %4272 = vmatpush3.bf16.msra.mxu1 %v3821_v13 }
 0xaa9   :  { %4273 = vmatprep.subr.bf16.mxu1 %v4632_v2 }
 0xaac   :  { %4274 = vmatpush3.bf16.msra.mxu1 %v3822_v61 }
 0xaad   :  { %4275 = vmatprep.subr.bf16.mxu1 %v4632_v2 }
 0xab0   :  { %4276 = vmatpush3.bf16.msra.mxu1 %v3823_v45 }
 0xb66   :  { %v3785_v48 = vpop.f32.mrb[28].mxu1 }
 0xb67   :  { %v3798_v49 = vmul.f32 %v4026_v58, %v3785_v48  ;;  %v4259_v52 = vpop.f32.mrb[29].mxu1 }
 0xb68   :  { %v3788_v54 = vpop.f32.mrb[30].mxu1 }
 0xb69   :  { %v3806_v56 = vadd.f32 %v4027_v23, %v3798_v49  ;;  %v4260_v57 = vpop.f32.mrb[31].mxu1 }
 0xb6b   :  { %vm3807_vm13 = vcmp.gt.f32.partialorder %v3806_v56, 0.0  ;;  %v3809_v19 = vmul.f32 %v3808_v51, %v3806_v56 }
 0xb6d   :  { %v3810_v17 = vsel %vm3807_vm13, %v3806_v56, %v3809_v19 }
 0xb6e   :  { %v3811_v50 = vpack.c.bf16 %v3810_v17, %v3810_v17 }
 0xb70   :  { %4278 = vmatmul.mubr.bf16.vlgmr.msra.gmra.mrb[32].mxu1 %v3811_v50 }
 0xc43   :  { %v3858_v46 = vpop.f32.mrb[32].mxu1 }
 0xc44   :  { %v3871_v11 = vmul.f32 %v4028_v9, %v3858_v46  ;;  %v4279_v3 = vpop.f32.mrb[33].mxu1 }
 0xc45   :  { %v3861_v15 = vpop.f32.mrb[34].mxu1 }
 0xc46   :  { %v3879_v21 = vadd.f32 %v4029_v10, %v3871_v11  ;;  %v4280_v16 = vpop.f32.mrb[35].mxu1 }
 0xc48   :  { %v3882_v18 = vmul.f32 %v3881_v14, %v3879_v21  ;;  %vm3880_vm14 = vcmp.gt.f32.partialorder %v3879_v21, 0.0 }
 0xc4a   :  { %v3883_v6 = vsel %vm3880_vm14, %v3879_v21, %v3882_v18 }
 0xc4b   :  { %v3884_v55 = vpack.c.bf16 %v3883_v6, %v3883_v6 }
 0xc4d   :  { %4298 = vmatmul.mubr.bf16.vlgmr.msra.gmra.mrb[52].mxu0 %v3884_v55 }
 0xd20   :  { %v3931_v5 = vpop.f32.mrb[52].mxu0 }
 0xd21   :  { %v3944_v2 = vmul.f32 %v4030_v7, %v3931_v5  ;;  %v4299_v41 = vpop.f32.mrb[53].mxu0 }
 0xd22   :  { %v3934_v44 = vpop.f32.mrb[54].mxu0 }
 0xd23   :  { %v3952_v26 = vadd.f32 %v4031_v1, %v3944_v2  ;;  %v4300_v24 = vpop.f32.mrb[55].mxu0 }
 0xd25   :  { %3953 = vst [vmem:[#allocation16] sm:$0xff] %v3952_v26 }
 0xd26   :  { %4591 = shalt.err (!%p4588_p1)
}
 0xd27   :  { %s4592_s24 = scalar_lea.hbm %s5139_s9, 128 }
 0xd28   :  { %p4593_p2 = scmp.ne.s32.totalorder %s5139_s9, %s4592_s24  ;;  %p4596_p3 = scmp.lt.u32.totalorder %s4592_s24, %s5139_s9 }
 0xd2a   :  { %p4598_p4 = pnand %p4596_p3, %p4593_p2 }
 0xd2c   :  { %4601 = shalt.err (!%p4598_p4)
}
 0xd2d   :  { %3963 = dma.vmem_to_hbm [thread:$0]  %s3961_s7, 128, %s5139_s9, [#allocation11]  }
 0xd2e   :  { %4620 = dma.done.wait [#allocation11], 128  }
 0xd2f   :  { %4621 = vsyncadd [#allocation11], 4294967168 }
 0xd30   :  { %3967 = vsyncpa [#allocation10], 1 }
 0xd31   :  { %3968 = vsyncpa [#allocation14], 1 }
 0xd32   :  { %3969 = vsyncpa [#allocation11], 1 }
 0xd33   :  { %3970 = vsyncpa [#allocation12], 1 }
 0xd34   :  { %3971 = vsyncmov [#allocation8] }
 0xd37   :  { %s3972_s30 = vpop.sfrf %3971 }
 0xd38   :  { %p4032_p5 = scmp.ne.s32.totalorder %s3972_s30, 0 }
 0xd3a   :  { %3976 = shalt.err (%p4032_p5)  }
 0xd3b   :  { %3978 = vsyncmov [#allocation8 + $0x1] }
 0xd3e   :  { %s3979_s10 = vpop.sfrf %3978 }
 0xd3f   :  { %p4033_p6 = scmp.ne.s32.totalorder %s3979_s10, 0 }
 0xd41   :  { %3983 = shalt.err (%p4033_p6)  }
 0xd42   :  { %3985 = vsyncmov [#allocation8 + $0x2] }
 0xd45   :  { %s3986_s11 = vpop.sfrf %3985 }
 0xd46   :  { %p4034_p7 = scmp.ne.s32.totalorder %s3986_s11, 0 }
 0xd48   :  { %3990 = shalt.err (%p4034_p7)  }
 0xd49   :  { %3992 = vsyncmov [#allocation8 + $0x3] }
 0xd4c   :  { %s3993_s9 = vpop.sfrf %3992 }
 0xd4d   :  { %p4035_p8 = scmp.ne.s32.totalorder %s3993_s9, 0 }
 0xd4f   :  { %3997 = shalt.err (%p4035_p8)  }
 0xd50   :  { %3999 = vsyncmov [#allocation8 + $0x4] }
 0xd53   :  { %s4000_s13 = vpop.sfrf %3999 }
 0xd54   :  { %p4036_p9 = scmp.ne.s32.totalorder %s4000_s13, 0 }
 0xd56   :  { %4004 = shalt.err (%p4036_p9)  }
 0xd57   :  { %4006 = vsyncmov [#allocation8 + $0x5] }
 0xd5a   :  { %s4007_s1 = vpop.sfrf %4006 }
 0xd5b   :  { %p4037_p10 = scmp.ne.s32.totalorder %s4007_s1, 0 }
 0xd5d   :  { %4011 = shalt.err (%p4037_p10)  }

</bundles_post_ra>
